<compile_context>
chip_gen: v7x
topology: tpu7x:2x2x1
jax: 0.10.0
libtpu: 0.0.40
codegen_flags: <defaults>
</compile_context>

<pallas_src>
import functools
import math

import jax
import jax.numpy as jnp
from jax import lax
from jax.experimental import pallas as pl
from jax.experimental.pallas import tpu as pltpu

# The pure-JAX reference uses full-precision matmuls/convs so it is a trustworthy
# baseline.  The Pallas kernels pass explicit precision, so they are unaffected.
jax.config.update("jax_default_matmul_precision", "highest")

BF16_DOT = dict(preferred_element_type=jnp.float32, precision=lax.Precision.DEFAULT)
F32_DOT = dict(preferred_element_type=jnp.float32, precision=lax.Precision.HIGHEST)


@functools.lru_cache(maxsize=None)
def _vmem_limit_bytes():
    # Generation-aware scoped-VMEM budget (perf review): ~3/4 of physical VMEM,
    # capped at 96 MiB -> ~48 MiB on v7x (64 MiB parts), 96 MiB on v5e/v6e
    # (128 MiB parts).  Falls back to a universally-safe 32 MiB.
    try:
        cap = int(pltpu.get_tpu_info().vmem_capacity_bytes)
        return min(96 * 1024 * 1024, (cap * 3) // 4)
    except Exception:
        return 32 * 1024 * 1024


def _compiler_params():
    # grid=(B,) stays "parallel" so multi-TensorCore parts shard batch elements.
    return pltpu.CompilerParams(dimension_semantics=("parallel",),
                                vmem_limit_bytes=_vmem_limit_bytes())


# ----------------------------- Pallas kernels -----------------------------

def gn_silu_conv3x3_kernel(*refs, Wp, has_res, res_proj):
    """Fused GroupNorm(eps=1e-5) + SiLU + 3x3 conv (+bias) [+ fused residual].

    One padded image per grid step.  Input is the padded-flat (Np, Cin) tile
    (zero conv-padding ring); output is the full padded-flat (Np, Cout) tile in
    the requested dtype with the ring rows zeroed, so the next stage consumes
    it directly (no wrapper-side jnp.pad / extra HBM pass).

    3x3 conv = 3 row-tap matmuls with K = 3*Cin: the three column taps are
    merged into the contraction via three one-time column-shifted copies of the
    activation (replaces the previous 9 unaligned sublane slices / 9 skinny
    matmuls, filling the MXU contraction depth for small channel counts).
    """
    if has_res and res_proj:
        (x_ref, mask_ref, a_ref, gamma_ref, beta_ref, w_ref, bias_ref,
         xres_ref, scw_ref, scb_ref, o_ref) = refs
    elif has_res:
        (x_ref, mask_ref, a_ref, gamma_ref, beta_ref, w_ref, bias_ref,
         xres_ref, o_ref) = refs
    else:
        (x_ref, mask_ref, a_ref, gamma_ref, beta_ref, w_ref, bias_ref,
         o_ref) = refs

    Np = x_ref.shape[1]
    Nmid = Np - 2 * Wp
    cout = o_ref.shape[-1]

    x32 = x_ref[0].astype(jnp.float32)               # (Np, Cin), ring rows are 0
    mask = mask_ref[...]                             # (Np, 1)   1.0 = real pixel

    # --- GroupNorm statistics: channel sums + one (2,C)@(C,C) group-average matmul.
    #     Ring rows/columns are zero so they do not perturb the sums; the averaging
    #     matrix already divides by (group_size * H * W).
    s1 = jnp.sum(x32, axis=0, keepdims=True)
    s2 = jnp.sum(x32 * x32, axis=0, keepdims=True)
    stats = jnp.dot(jnp.concatenate([s1, s2], axis=0), a_ref[...], **F32_DOT)
    mean = stats[0:1, :]
    var = stats[1:2, :] - mean * mean                # one-pass variance (f32)
    inv = lax.rsqrt(var + 1e-5)
    scale = inv * gamma_ref[...]                     # per-channel scale (1, Cin)
    shift = beta_ref[...] - mean * scale             # per-channel shift (1, Cin)

    # --- normalize + SiLU (mul/add on VPU, sigmoid on EUP), then re-zero the
    #     padding ring (conv zero-padding semantics).
    y = x32 * scale + shift
    y = y * jax.nn.sigmoid(y)
    y = y * mask                                     # (Np, Cin) f32

    # --- one-time column-shifted copies: z[p] = [y[p-1], y[p], y[p+1]] (3*Cin lanes)
    zr = jnp.zeros((1, y.shape[1]), jnp.float32)
    ym1 = jnp.concatenate([zr, y[:Np - 1, :]], axis=0)      # y[p-1]
    yp1 = jnp.concatenate([y[1:, :], zr], axis=0)           # y[p+1]
    z = jnp.concatenate([ym1, y, yp1], axis=-1).astype(jnp.bfloat16)   # (Np, 3Cin)

    # --- 3x3 conv: 3 row-tap bf16 matmuls with K = 3*Cin, f32 accumulation.
    #     Output rows cover padded rows [Wp, Np-Wp); slice starts are multiples of
    #     Wp (Wp is rounded to a multiple of 8), so the views are (near-)aligned.
    acc = jnp.dot(z[0:Nmid, :], w_ref[0], **BF16_DOT)
    acc = acc + jnp.dot(z[Wp:Wp + Nmid, :], w_ref[1], **BF16_DOT)
    acc = acc + jnp.dot(z[2 * Wp:2 * Wp + Nmid, :], w_ref[2], **BF16_DOT)

    out = (acc + bias_ref[0]) * mask[Wp:Np - Wp, :]  # conv bias (+time emb), ring->0

    if has_res:                                      # fused residual / 1x1 shortcut
        xr = xres_ref[0, Wp:Np - Wp, :]
        if res_proj:
            out = out + jnp.dot(xr.astype(jnp.bfloat16), scw_ref[...], **BF16_DOT) \
                      + scb_ref[...]
        else:
            out = out + xr.astype(jnp.float32)

    zero = jnp.zeros((Wp, cout), o_ref.dtype)
    o_ref[0, 0:Wp, :] = zero                         # top ring row-line
    o_ref[0, Np - Wp:Np, :] = zero                   # bottom ring row-line
    o_ref[0, Wp:Np - Wp, :] = out.astype(o_ref.dtype)
    # TODO(synk): for large H*W / C the whole padded image + weights will not fit
    # v7x's 64 MiB VMEM; split into a GN-stats pass plus a row-block-tiled (halo'd)
    # apply+conv pass so the grid is long enough to pipeline DMA against the MXU.
    # TODO(synk): single-buffer the grid-invariant weight operands
    # (pipeline_mode=pl.Buffered(1)) once verified on this JAX version.


def attention_residual_kernel(*refs, heads, dim_head, res_proj):
    """Multi-head self-attention + fused residual for one batch element.

    Projections are wide 2-D matmuls (one fused QKV matmul, one (N, inner)@(inner, C)
    output projection) instead of head-broadcast einsums; only the (N,N) score
    matmuls are per-head.  Softmax stays f32 with an exact reciprocal.
    """
    if res_proj:
        (x_ref, wqkv_ref, wo_ref, bo_ref, xres_ref, scw_ref, scb_ref, o_ref) = refs
    else:
        (x_ref, wqkv_ref, wo_ref, bo_ref, xres_ref, o_ref) = refs

    inner = heads * dim_head
    x = x_ref[0].astype(jnp.bfloat16)                            # (N, C)
    qkv = jnp.dot(x, wqkv_ref[...], **BF16_DOT)                  # (N, 3*inner) f32
    scl = dim_head ** -0.5

    outs = []
    for h in range(heads):
        q = (qkv[:, h * dim_head:(h + 1) * dim_head] * scl).astype(jnp.bfloat16)
        k = qkv[:, inner + h * dim_head:inner + (h + 1) * dim_head].astype(jnp.bfloat16)
        v = qkv[:, 2 * inner + h * dim_head:2 * inner + (h + 1) * dim_head].astype(jnp.bfloat16)
        s = jnp.dot(q, k.T, **BF16_DOT)                          # (N, N) f32
        s = s - jnp.max(s, axis=-1, keepdims=True)
        e = jnp.exp(s)
        p = e * (1.0 / jnp.sum(e, axis=-1, keepdims=True))       # exact recip: (N,1)
        outs.append(jnp.dot(p.astype(jnp.bfloat16), v, **BF16_DOT))
    # TODO(synk): for large N, tile keys/values along a grid axis with an online
    # (flash-style) softmax instead of materializing full (N, N) scores in VMEM.

    o = jnp.concatenate(outs, axis=-1).astype(jnp.bfloat16)      # (N, inner)
    o = jnp.dot(o, wo_ref[...], **BF16_DOT) + bo_ref[...]        # (N, C), one wide matmul
    # TODO(synk): nn.Dropout(0.1) in SelfAttention.to_out omitted (eval-mode identity).

    xr = xres_ref[0]                                             # fused residual
    if res_proj:
        res = jnp.dot(xr.astype(jnp.bfloat16), scw_ref[...], **BF16_DOT) + scb_ref[...]
    else:
        res = xr.astype(jnp.float32)
    o_ref[0] = (o + res).astype(o_ref.dtype)


# ----------------------------- pallas_call wrappers -----------------------------

def gn_silu_conv3x3(xp, mask, gamma, beta, conv_w, bias, *, H, W, Wp, num_groups,
                    out_dtype, xres=None, sc_w=None, sc_b=None):
    B, Np, Cin = xp.shape
    Cout = conv_w.shape[-1]

    gsz = Cin // num_groups
    gid = jnp.arange(Cin) // gsz
    a = (gid[:, None] == gid[None, :]).astype(jnp.float32) / (gsz * H * W)
    # (ty, tx*Cin, Cout): kernel-row-major, column taps flattened into the K axis
    w3 = conv_w.reshape(3, 3 * Cin, Cout).astype(jnp.bfloat16)

    has_res = xres is not None
    res_proj = sc_w is not None

    in_specs = [
        pl.BlockSpec((1, Np, Cin), lambda b: (b, 0, 0)),
        pl.BlockSpec((Np, 1), lambda b: (0, 0)),
        pl.BlockSpec((Cin, Cin), lambda b: (0, 0)),
        pl.BlockSpec((1, Cin), lambda b: (0, 0)),
        pl.BlockSpec((1, Cin), lambda b: (0, 0)),
        pl.BlockSpec((3, 3 * Cin, Cout), lambda b: (0, 0, 0)),
        pl.BlockSpec((1, 1, Cout), lambda b: (b, 0, 0)),
    ]
    args = [xp, mask, a, gamma.reshape(1, Cin), beta.reshape(1, Cin),
            w3, bias.reshape(B, 1, Cout)]
    if has_res:
        Cr = xres.shape[-1]
        in_specs.append(pl.BlockSpec((1, Np, Cr), lambda b: (b, 0, 0)))
        args.append(xres)
        if res_proj:
            in_specs += [pl.BlockSpec((Cr, Cout), lambda b: (0, 0)),
                         pl.BlockSpec((1, Cout), lambda b: (0, 0))]
            args += [sc_w.astype(jnp.bfloat16), sc_b.reshape(1, Cout)]

    kern = functools.partial(gn_silu_conv3x3_kernel, Wp=Wp,
                             has_res=has_res, res_proj=res_proj)
    return pl.pallas_call(
        kern,
        out_shape=jax.ShapeDtypeStruct((B, Np, Cout), out_dtype),
        grid=(B,),
        in_specs=in_specs,
        out_specs=pl.BlockSpec((1, Np, Cout), lambda b: (b, 0, 0)),
        compiler_params=_compiler_params(),
    )(*args)


def attention_residual(tokens, xres, wqkv, wo, bo, *, heads, dim_head,
                       sc_w=None, sc_b=None):
    B, N, C = tokens.shape
    inner = heads * dim_head
    Cr = xres.shape[-1]
    res_proj = sc_w is not None

    in_specs = [
        pl.BlockSpec((1, N, C), lambda b: (b, 0, 0)),
        pl.BlockSpec((C, 3 * inner), lambda b: (0, 0)),
        pl.BlockSpec((inner, C), lambda b: (0, 0)),
        pl.BlockSpec((1, C), lambda b: (0, 0)),
        pl.BlockSpec((1, N, Cr), lambda b: (b, 0, 0)),
    ]
    args = [tokens, wqkv.astype(jnp.bfloat16), wo.astype(jnp.bfloat16),
            bo.reshape(1, C), xres]
    if res_proj:
        in_specs += [pl.BlockSpec((Cr, C), lambda b: (0, 0)),
                     pl.BlockSpec((1, C), lambda b: (0, 0))]
        args += [sc_w.astype(jnp.bfloat16), sc_b.reshape(1, C)]

    kern = functools.partial(attention_residual_kernel, heads=heads,
                             dim_head=dim_head, res_proj=res_proj)
    return pl.pallas_call(
        kern,
        out_shape=jax.ShapeDtypeStruct((B, N, C), jnp.float32),
        grid=(B,),
        in_specs=in_specs,
        out_specs=pl.BlockSpec((1, N, C), lambda b: (b, 0, 0)),
        compiler_params=_compiler_params(),
    )(*args)


# ----------------------------- forward pass (glue is cheap XLA ops) -----------------------------

def residual_block_forward(params, x_nchw, t, use_attention,
                           heads=8, dim_head=64, num_groups=32):
    B, Cin, H, W = x_nchw.shape
    Cout = params["conv1_w"].shape[-1]
    Hp = H + 2
    Wp = ((W + 2 + 7) // 8) * 8          # row stride multiple of 8 -> aligned ty taps
    Np = Hp * Wp
    HW = H * W

    x_nhwc = jnp.transpose(x_nchw, (0, 2, 3, 1))                       # NCHW -> NHWC
    xp = jnp.pad(x_nhwc, ((0, 0), (1, 1), (1, Wp - W - 1), (0, 0))).reshape(B, Np, Cin)

    rr = jnp.arange(Np) // Wp
    cc = jnp.arange(Np) % Wp
    mask = (((rr >= 1) & (rr <= H) & (cc >= 1) & (cc <= W))
            .astype(jnp.float32).reshape(Np, 1))

    # time-MLP hoisted out of the kernel (batch-constant O(Tc*Cout) work):
    # conv1 bias + time-Linear bias + SiLU(t) @ W_time folded into one per-batch add.
    t_silu = t * jax.nn.sigmoid(t)
    bias1 = params["conv1_b"] + params["time_b"] + t_silu @ params["time_w"]   # (B, Cout)
    bias2 = jnp.broadcast_to(params["conv2_b"][None, :], (B, Cout))

    has_sc = Cin != Cout
    sc_w = params.get("sc_w")
    sc_b = params.get("sc_b")

    # block1: GN + SiLU + conv3x3 + (bias + time emb), padded-flat bf16 out
    h = gn_silu_conv3x3(xp, mask, params["gn1_g"], params["gn1_b"],
                        params["conv1_w"], bias1, H=H, W=W, Wp=Wp,
                        num_groups=num_groups, out_dtype=jnp.bfloat16)

    if use_attention:
        # block2: same fused kernel, consuming block1's padded-flat bf16 directly
        h = gn_silu_conv3x3(h, mask, params["gn2_g"], params["gn2_b"],
                            params["conv2_w"], bias2, H=H, W=W, Wp=Wp,
                            num_groups=num_groups, out_dtype=jnp.bfloat16)
        # single crop: drop the conv-padding ring -> (B, H*W, Cout) tokens
        tok = h.reshape(B, Hp, Wp, Cout)[:, 1:H + 1, 1:W + 1, :].reshape(B, HW, Cout)
        x_flat = x_nhwc.reshape(B, HW, Cin)
        out = attention_residual(tok, x_flat, params["attn_wqkv"],
                                 params["attn_wo"], params["attn_bo"],
                                 heads=heads, dim_head=dim_head,
                                 sc_w=sc_w if has_sc else None,
                                 sc_b=sc_b if has_sc else None)
        out = out.reshape(B, H, W, Cout)
    else:
        # block2 with the residual (identity or 1x1-conv shortcut) fused in-kernel
        h = gn_silu_conv3x3(h, mask, params["gn2_g"], params["gn2_b"],
                            params["conv2_w"], bias2, H=H, W=W, Wp=Wp,
                            num_groups=num_groups, out_dtype=jnp.float32,
                            xres=xp,
                            sc_w=sc_w if has_sc else None,
                            sc_b=sc_b if has_sc else None)
        out = h.reshape(B, Hp, Wp, Cout)[:, 1:H + 1, 1:W + 1, :]

    return jnp.transpose(out, (0, 3, 1, 2))                            # back to NCHW


# ----------------------------- params & pure-JAX reference -----------------------------

def init_params(key, in_channels, out_channels, time_channels, use_attention,
                heads=8, dim_head=64):
    ks = jax.random.split(key, 16)
    inner = heads * dim_head

    def lin(k, fan_in, shape):
        return jax.random.normal(k, shape, jnp.float32) / math.sqrt(fan_in)

    p = {
        "time_w": lin(ks[0], time_channels, (time_channels, out_channels)),
        "time_b": 0.05 * jax.random.normal(ks[1], (out_channels,), jnp.float32),
        "gn1_g": 1.0 + 0.1 * jax.random.normal(ks[2], (in_channels,), jnp.float32),
        "gn1_b": 0.1 * jax.random.normal(ks[3], (in_channels,), jnp.float32),
        "conv1_w": lin(ks[4], 9 * in_channels, (3, 3, in_channels, out_channels)),   # HWIO
        "conv1_b": 0.05 * jax.random.normal(ks[5], (out_channels,), jnp.float32),
        "gn2_g": 1.0 + 0.1 * jax.random.normal(ks[6], (out_channels,), jnp.float32),
        "gn2_b": 0.1 * jax.random.normal(ks[7], (out_channels,), jnp.float32),
        "conv2_w": lin(ks[8], 9 * out_channels, (3, 3, out_channels, out_channels)),
        "conv2_b": 0.05 * jax.random.normal(ks[9], (out_channels,), jnp.float32),
    }
    if in_channels != out_channels:
        p["sc_w"] = lin(ks[10], in_channels, (in_channels, out_channels))
        p["sc_b"] = 0.05 * jax.random.normal(ks[11], (out_channels,), jnp.float32)
    if use_attention:
        p["attn_wqkv"] = lin(ks[12], out_channels, (out_channels, 3 * inner))
        p["attn_wo"] = lin(ks[13], inner, (inner, out_channels))
        p["attn_bo"] = 0.05 * jax.random.normal(ks[14], (out_channels,), jnp.float32)
    return p


def ref_forward(params, x_nchw, t, use_attention, heads=8, dim_head=64, num_groups=32):
    def silu(v):
        return v * jax.nn.sigmoid(v)

    def group_norm(v, gamma, beta):
        B, C, H, W = v.shape
        g = v.reshape(B, num_groups, C // num_groups, H, W)
        mean = g.mean(axis=(2, 3, 4), keepdims=True)
        var = g.var(axis=(2, 3, 4), keepdims=True)
        g = (g - mean) / jnp.sqrt(var + 1e-5)
        g = g.reshape(B, C, H, W)
        return g * gamma[None, :, None, None] + beta[None, :, None, None]

    def conv3x3(v, w, b):
        y = lax.conv_general_dilated(v, w, (1, 1), "SAME",
                                     dimension_numbers=("NCHW", "HWIO", "NCHW"))
        return y + b[None, :, None, None]

    B, Cin, H, W = x_nchw.shape
    Cout = params["conv1_w"].shape[-1]
    temb = silu(t) @ params["time_w"] + params["time_b"]

    h = conv3x3(silu(group_norm(x_nchw, params["gn1_g"], params["gn1_b"])),
                params["conv1_w"], params["conv1_b"])
    h = h + temb[:, :, None, None]
    h = conv3x3(silu(group_norm(h, params["gn2_g"], params["gn2_b"])),
                params["conv2_w"], params["conv2_b"])

    hseq = jnp.transpose(h, (0, 2, 3, 1)).reshape(B, H * W, Cout)
    if use_attention:
        inner = heads * dim_head
        qkv = hseq @ params["attn_wqkv"]
        q, k, v = qkv[..., :inner], qkv[..., inner:2 * inner], qkv[..., 2 * inner:]

        def split(u):
            return u.reshape(B, H * W, heads, dim_head).transpose(0, 2, 1, 3)

        q, k, v = split(q), split(k), split(v)
        dots = jnp.einsum("bhid,bhjd->bhij", q, k) * (dim_head ** -0.5)
        attn = jax.nn.softmax(dots, axis=-1)
        o = jnp.einsum("bhij,bhjd->bhid", attn, v)
        o = o.transpose(0, 2, 1, 3).reshape(B, H * W, inner)
        hseq = o @ params["attn_wo"] + params["attn_bo"]
    h = jnp.transpose(hseq.reshape(B, H, W, Cout), (0, 3, 1, 2))

    if Cin != Cout:
        sc = jnp.einsum("bchw,co->bohw", x_nchw, params["sc_w"]) \
             + params["sc_b"][None, :, None, None]
    else:
        sc = x_nchw
    return h + sc


# ----------------------------- main -----------------------------

if __name__ == "__main__":
    key = jax.random.PRNGKey(0)
    # GroupNorm(32, C) requires C to be a multiple of 32, hence the channel choices.
    B, Tc, H, W = 2, 32, 8, 8
    kx, kt, kp = jax.random.split(key, 3)
    t = jax.random.normal(kt, (B, Tc), jnp.float32)

    fwd = jax.jit(residual_block_forward, static_argnums=(3,))

    # (in_ch, out_ch, use_attention): exercises the 1x1-conv shortcut fused into
    # block2, the shortcut fused into the attention epilogue, and the identity
    # shortcut fused into block2.
    for (Cin, Cout, use_attention) in ((32, 64, False), (32, 64, True), (64, 64, False)):
        x = jax.random.normal(kx, (B, Cin, H, W), jnp.float32)
        params = init_params(kp, Cin, Cout, Tc, use_attention)
        out = jax.block_until_ready(fwd(params, x, t, use_attention))
        assert out.shape == (B, Cout, H, W)
        ref = jax.block_until_ready(ref_forward(params, x, t, use_attention))
        err = float(jnp.max(jnp.abs(out - ref)))
        # tolerance sized for bf16 MXU inputs / bf16 intermediate activations with
        # f32 accumulation through two convs (+ attention) vs. the full-f32 reference
        assert err < 1e-1, \
            f"max abs error {err} (Cin={Cin}, Cout={Cout}, attn={use_attention})"

    print("KERNEL_OK")
</pallas_src>

<mosaic_0001>
module attributes {stable_mosaic.version = 11 : i64} {
  func.func @gn_silu_conv3x3_kernel(%arg0: i32, %arg1: memref<1x160x32xf32, #tpu.memory_space<vmem>>, %arg2: memref<160x1xf32, #tpu.memory_space<vmem>>, %arg3: memref<32x32xf32, #tpu.memory_space<vmem>>, %arg4: memref<1x32xf32, #tpu.memory_space<vmem>>, %arg5: memref<1x32xf32, #tpu.memory_space<vmem>>, %arg6: memref<3x96x64xbf16, #tpu.memory_space<vmem>>, %arg7: memref<1x1x64xf32, #tpu.memory_space<vmem>>, %arg8: memref<1x160x64xbf16, #tpu.memory_space<vmem>>) attributes {dimension_semantics = [#tpu.dimension_semantics<parallel>], iteration_bounds = array<i64: 2>, scalar_prefetch = 0 : i64, scratch_operands = 0 : i64, tpu.core_type = #tpu.core_type<tc>, window_params = [{transform_indices = @transform_0, window_bounds = array<i64: 1, 160, 32>}, {pipeline_mode = #tpu.pipeline_mode<synchronous>, transform_indices = @transform_1, window_bounds = array<i64: 160, 1>}, {pipeline_mode = #tpu.pipeline_mode<synchronous>, transform_indices = @transform_2, window_bounds = array<i64: 32, 32>}, {pipeline_mode = #tpu.pipeline_mode<synchronous>, transform_indices = @transform_3, window_bounds = array<i64: 1, 32>}, {pipeline_mode = #tpu.pipeline_mode<synchronous>, transform_indices = @transform_4, window_bounds = array<i64: 1, 32>}, {pipeline_mode = #tpu.pipeline_mode<synchronous>, transform_indices = @transform_5, window_bounds = array<i64: 3, 96, 64>}, {transform_indices = @transform_6, window_bounds = array<i64: 1, 1, 64>}, {transform_indices = @transform_7, window_bounds = array<i64: 1, 160, 64>}]} {
    %c0 = arith.constant 0 : index
    %c0_0 = arith.constant 0 : index
    %c0_1 = arith.constant 0 : index
    %0 = vector.load %arg1[%c0, %c0_0, %c0_1] : memref<1x160x32xf32, #tpu.memory_space<vmem>>, vector<1x160x32xf32>
    %1 = vector.shape_cast %0 : vector<1x160x32xf32> to vector<160x32xf32>
    %c0_2 = arith.constant 0 : index
    %c0_3 = arith.constant 0 : index
    %2 = vector.load %arg2[%c0_2, %c0_3] : memref<160x1xf32, #tpu.memory_space<vmem>>, vector<160x1xf32>
    %cst = arith.constant dense<0.000000e+00> : vector<32xf32>
    %3 = vector.multi_reduction <add>, %1, %cst [0] : vector<160x32xf32> to vector<32xf32>
    %4 = vector.shape_cast %3 : vector<32xf32> to vector<1x32xf32>
    %5 = arith.mulf %1, %1 : vector<160x32xf32>
    %cst_4 = arith.constant dense<0.000000e+00> : vector<32xf32>
    %6 = vector.multi_reduction <add>, %5, %cst_4 [0] : vector<160x32xf32> to vector<32xf32>
    %7 = vector.shape_cast %6 : vector<32xf32> to vector<1x32xf32>
    %8 = tpu.concatenate %4, %7 in 0 : vector<1x32xf32>, vector<1x32xf32> -> vector<2x32xf32>
    %c0_5 = arith.constant 0 : index
    %c0_6 = arith.constant 0 : index
    %9 = vector.load %arg3[%c0_5, %c0_6] : memref<32x32xf32, #tpu.memory_space<vmem>>, vector<32x32xf32>
    %cst_7 = arith.constant dense<0.000000e+00> : vector<2x32xf32>
    %10 = tpu.matmul %8, %9, %cst_7 {dimension_numbers = #tpu.dot_dimension_numbers<[1], [0], [0], [1], [0, 0, 1, 1], [], []>, precision = #tpu.contract_precision<fp32>} : vector<2x32xf32>, vector<32x32xf32>, vector<2x32xf32> -> vector<2x32xf32>
    %11 = vector.extract_strided_slice %10 {offsets = [0, 0], sizes = [1, 32], strides = [1, 1]} : vector<2x32xf32> to vector<1x32xf32>
    %12 = vector.extract_strided_slice %10 {offsets = [1, 0], sizes = [1, 32], strides = [1, 1]} : vector<2x32xf32> to vector<1x32xf32>
    %13 = arith.mulf %11, %11 : vector<1x32xf32>
    %14 = arith.subf %12, %13 : vector<1x32xf32>
    %cst_8 = arith.constant 9.99999974E-6 : f32
    %15 = vector.broadcast %cst_8 : f32 to vector<1x32xf32>
    %16 = arith.addf %14, %15 : vector<1x32xf32>
    %17 = math.rsqrt %16 : vector<1x32xf32>
    %c0_9 = arith.constant 0 : index
    %c0_10 = arith.constant 0 : index
    %18 = vector.load %arg4[%c0_9, %c0_10] : memref<1x32xf32, #tpu.memory_space<vmem>>, vector<1x32xf32>
    %19 = arith.mulf %17, %18 : vector<1x32xf32>
    %c0_11 = arith.constant 0 : index
    %c0_12 = arith.constant 0 : index
    %20 = vector.load %arg5[%c0_11, %c0_12] : memref<1x32xf32, #tpu.memory_space<vmem>>, vector<1x32xf32>
    %21 = arith.mulf %11, %19 : vector<1x32xf32>
    %22 = arith.subf %20, %21 : vector<1x32xf32>
    %23 = vector.broadcast %19 : vector<1x32xf32> to vector<160x32xf32>
    %24 = arith.mulf %1, %23 : vector<160x32xf32>
    %25 = vector.broadcast %22 : vector<1x32xf32> to vector<160x32xf32>
    %26 = arith.addf %24, %25 : vector<160x32xf32>
    %27 = arith.negf %26 : vector<160x32xf32>
    %28 = math.exp %27 : vector<160x32xf32>
    %cst_13 = arith.constant 1.000000e+00 : f32
    %29 = vector.broadcast %cst_13 : f32 to vector<160x32xf32>
    %30 = arith.addf %29, %28 : vector<160x32xf32>
    %31 = arith.divf %29, %30 : vector<160x32xf32>
    %32 = arith.mulf %26, %31 : vector<160x32xf32>
    %33 = vector.broadcast %2 : vector<160x1xf32> to vector<160x32xf32>
    %34 = arith.mulf %32, %33 : vector<160x32xf32>
    %cst_14 = arith.constant 0.000000e+00 : f32
    %35 = vector.broadcast %cst_14 : f32 to vector<1x32xf32>
    %36 = vector.extract_strided_slice %34 {offsets = [0, 0], sizes = [159, 32], strides = [1, 1]} : vector<160x32xf32> to vector<159x32xf32>
    %37 = tpu.concatenate %35, %36 in 0 : vector<1x32xf32>, vector<159x32xf32> -> vector<160x32xf32>
    %38 = vector.extract_strided_slice %34 {offsets = [1, 0], sizes = [159, 32], strides = [1, 1]} : vector<160x32xf32> to vector<159x32xf32>
    %39 = tpu.concatenate %38, %35 in 0 : vector<159x32xf32>, vector<1x32xf32> -> vector<160x32xf32>
    %40 = tpu.concatenate %37, %34, %39 in 1 : vector<160x32xf32>, vector<160x32xf32>, vector<160x32xf32> -> vector<160x96xf32>
    %41 = arith.truncf %40 : vector<160x96xf32> to vector<160x96xbf16>
    %42 = vector.extract_strided_slice %41 {offsets = [0, 0], sizes = [128, 96], strides = [1, 1]} : vector<160x96xbf16> to vector<128x96xbf16>
    %c0_15 = arith.constant 0 : index
    %c0_16 = arith.constant 0 : index
    %c0_17 = arith.constant 0 : index
    %43 = vector.load %arg6[%c0_15, %c0_16, %c0_17] : memref<3x96x64xbf16, #tpu.memory_space<vmem>>, vector<1x96x64xbf16>
    %44 = vector.shape_cast %43 : vector<1x96x64xbf16> to vector<96x64xbf16>
    %cst_18 = arith.constant dense<0.000000e+00> : vector<128x64xf32>
    %45 = tpu.matmul %42, %44, %cst_18 {dimension_numbers = #tpu.dot_dimension_numbers<[1], [0], [0], [1], [0, 0, 1, 1], [], []>} : vector<128x96xbf16>, vector<96x64xbf16>, vector<128x64xf32> -> vector<128x64xf32>
    %46 = vector.extract_strided_slice %41 {offsets = [16, 0], sizes = [128, 96], strides = [1, 1]} : vector<160x96xbf16> to vector<128x96xbf16>
    %c1 = arith.constant 1 : index
    %c0_19 = arith.constant 0 : index
    %c0_20 = arith.constant 0 : index
    %47 = vector.load %arg6[%c1, %c0_19, %c0_20] : memref<3x96x64xbf16, #tpu.memory_space<vmem>>, vector<1x96x64xbf16>
    %48 = vector.shape_cast %47 : vector<1x96x64xbf16> to vector<96x64xbf16>
    %cst_21 = arith.constant dense<0.000000e+00> : vector<128x64xf32>
    %49 = tpu.matmul %46, %48, %cst_21 {dimension_numbers = #tpu.dot_dimension_numbers<[1], [0], [0], [1], [0, 0, 1, 1], [], []>} : vector<128x96xbf16>, vector<96x64xbf16>, vector<128x64xf32> -> vector<128x64xf32>
    %50 = arith.addf %45, %49 : vector<128x64xf32>
    %51 = vector.extract_strided_slice %41 {offsets = [32, 0], sizes = [128, 96], strides = [1, 1]} : vector<160x96xbf16> to vector<128x96xbf16>
    %c2 = arith.constant 2 : index
    %c0_22 = arith.constant 0 : index
    %c0_23 = arith.constant 0 : index
    %52 = vector.load %arg6[%c2, %c0_22, %c0_23] : memref<3x96x64xbf16, #tpu.memory_space<vmem>>, vector<1x96x64xbf16>
    %53 = vector.shape_cast %52 : vector<1x96x64xbf16> to vector<96x64xbf16>
    %cst_24 = arith.constant dense<0.000000e+00> : vector<128x64xf32>
    %54 = tpu.matmul %51, %53, %cst_24 {dimension_numbers = #tpu.dot_dimension_numbers<[1], [0], [0], [1], [0, 0, 1, 1], [], []>} : vector<128x96xbf16>, vector<96x64xbf16>, vector<128x64xf32> -> vector<128x64xf32>
    %55 = arith.addf %50, %54 : vector<128x64xf32>
    %c0_25 = arith.constant 0 : index
    %c0_26 = arith.constant 0 : index
    %c0_27 = arith.constant 0 : index
    %56 = vector.load %arg7[%c0_25, %c0_26, %c0_27] : memref<1x1x64xf32, #tpu.memory_space<vmem>>, vector<1x1x64xf32>
    %57 = vector.shape_cast %56 : vector<1x1x64xf32> to vector<1x64xf32>
    %58 = vector.broadcast %57 : vector<1x64xf32> to vector<128x64xf32>
    %59 = arith.addf %55, %58 : vector<128x64xf32>
    %60 = vector.extract_strided_slice %2 {offsets = [16, 0], sizes = [128, 1], strides = [1, 1]} : vector<160x1xf32> to vector<128x1xf32>
    %61 = vector.broadcast %60 : vector<128x1xf32> to vector<128x64xf32>
    %62 = arith.mulf %59, %61 : vector<128x64xf32>
    %cst_28 = arith.constant 0.000000e+00 : bf16
    %63 = vector.broadcast %cst_28 : bf16 to vector<16x64xbf16>
    %c0_29 = arith.constant 0 : index
    %c0_30 = arith.constant 0 : index
    %c0_31 = arith.constant 0 : index
    %64 = vector.load %arg8[%c0_29, %c0_30, %c0_31] : memref<1x160x64xbf16, #tpu.memory_space<vmem>>, vector<1x16x64xbf16>
    %65 = vector.shape_cast %64 : vector<1x16x64xbf16> to vector<16x64xbf16>
    %66 = vector.shape_cast %63 : vector<16x64xbf16> to vector<1x16x64xbf16>
    tpu.vector_store %arg8[%c0_29, %c0_30, %c0_31], %66 {strides = array<i32>} : memref<1x160x64xbf16, #tpu.memory_space<vmem>>, vector<1x16x64xbf16>,
    %c0_32 = arith.constant 0 : index
    %c144 = arith.constant 144 : index
    %c0_33 = arith.constant 0 : index
    %67 = vector.load %arg8[%c0_32, %c144, %c0_33] : memref<1x160x64xbf16, #tpu.memory_space<vmem>>, vector<1x16x64xbf16>
    %68 = vector.shape_cast %67 : vector<1x16x64xbf16> to vector<16x64xbf16>
    %69 = vector.shape_cast %63 : vector<16x64xbf16> to vector<1x16x64xbf16>
    tpu.vector_store %arg8[%c0_32, %c144, %c0_33], %69 {strides = array<i32>} : memref<1x160x64xbf16, #tpu.memory_space<vmem>>, vector<1x16x64xbf16>,
    %70 = arith.truncf %62 : vector<128x64xf32> to vector<128x64xbf16>
    %c0_34 = arith.constant 0 : index
    %c16 = arith.constant 16 : index
    %c0_35 = arith.constant 0 : index
    %71 = vector.load %arg8[%c0_34, %c16, %c0_35] : memref<1x160x64xbf16, #tpu.memory_space<vmem>>, vector<1x128x64xbf16>
    %72 = vector.shape_cast %71 : vector<1x128x64xbf16> to vector<128x64xbf16>
    %73 = vector.shape_cast %70 : vector<128x64xbf16> to vector<1x128x64xbf16>
    tpu.vector_store %arg8[%c0_34, %c16, %c0_35], %73 {strides = array<i32>} : memref<1x160x64xbf16, #tpu.memory_space<vmem>>, vector<1x128x64xbf16>,
    return
  }
  func.func @transform_0(%arg0: i32) -> (i32, i32, i32) {
    %c0_i32 = arith.constant 0 : i32
    %c0_i32_0 = arith.constant 0 : i32
    %c0_i32_1 = arith.constant 0 : i32
    return %arg0, %c0_i32, %c0_i32_0 : i32, i32, i32
  }
  func.func @transform_1(%arg0: i32) -> (i32, i32) {
    %c0_i32 = arith.constant 0 : i32
    %c0_i32_0 = arith.constant 0 : i32
    %c0_i32_1 = arith.constant 0 : i32
    return %c0_i32, %c0_i32_0 : i32, i32
  }
  func.func @transform_2(%arg0: i32) -> (i32, i32) {
    %c0_i32 = arith.constant 0 : i32
    %c0_i32_0 = arith.constant 0 : i32
    %c0_i32_1 = arith.constant 0 : i32
    return %c0_i32, %c0_i32_0 : i32, i32
  }
  func.func @transform_3(%arg0: i32) -> (i32, i32) {
    %c0_i32 = arith.constant 0 : i32
    %c0_i32_0 = arith.constant 0 : i32
    %c0_i32_1 = arith.constant 0 : i32
    return %c0_i32, %c0_i32_0 : i32, i32
  }
  func.func @transform_4(%arg0: i32) -> (i32, i32) {
    %c0_i32 = arith.constant 0 : i32
    %c0_i32_0 = arith.constant 0 : i32
    %c0_i32_1 = arith.constant 0 : i32
    return %c0_i32, %c0_i32_0 : i32, i32
  }
  func.func @transform_5(%arg0: i32) -> (i32, i32, i32) {
    %c0_i32 = arith.constant 0 : i32
    %c0_i32_0 = arith.constant 0 : i32
    %c0_i32_1 = arith.constant 0 : i32
    %c0_i32_2 = arith.constant 0 : i32
    return %c0_i32, %c0_i32_0, %c0_i32_1 : i32, i32, i32
  }
  func.func @transform_6(%arg0: i32) -> (i32, i32, i32) {
    %c0_i32 = arith.constant 0 : i32
    %c0_i32_0 = arith.constant 0 : i32
    %c0_i32_1 = arith.constant 0 : i32
    return %arg0, %c0_i32, %c0_i32_0 : i32, i32, i32
  }
  func.func @transform_7(%arg0: i32) -> (i32, i32, i32) {
    %c0_i32 = arith.constant 0 : i32
    %c0_i32_0 = arith.constant 0 : i32
    %c0_i32_1 = arith.constant 0 : i32
    return %arg0, %c0_i32, %c0_i32_0 : i32, i32, i32
  }
}

module attributes {stable_mosaic.version = 11 : i64} {
  func.func @gn_silu_conv3x3_kernel(%arg0: i32, %arg1: memref<1x160x64xbf16, #tpu.memory_space<vmem>>, %arg2: memref<160x1xf32, #tpu.memory_space<vmem>>, %arg3: memref<64x64xf32, #tpu.memory_space<vmem>>, %arg4: memref<1x64xf32, #tpu.memory_space<vmem>>, %arg5: memref<1x64xf32, #tpu.memory_space<vmem>>, %arg6: memref<3x192x64xbf16, #tpu.memory_space<vmem>>, %arg7: memref<1x1x64xf32, #tpu.memory_space<vmem>>, %arg8: memref<1x160x32xf32, #tpu.memory_space<vmem>>, %arg9: memref<32x64xbf16, #tpu.memory_space<vmem>>, %arg10: memref<1x64xf32, #tpu.memory_space<vmem>>, %arg11: memref<1x160x64xf32, #tpu.memory_space<vmem>>) attributes {dimension_semantics = [#tpu.dimension_semantics<parallel>], iteration_bounds = array<i64: 2>, scalar_prefetch = 0 : i64, scratch_operands = 0 : i64, tpu.core_type = #tpu.core_type<tc>, window_params = [{transform_indices = @transform_0, window_bounds = array<i64: 1, 160, 64>}, {pipeline_mode = #tpu.pipeline_mode<synchronous>, transform_indices = @transform_1, window_bounds = array<i64: 160, 1>}, {pipeline_mode = #tpu.pipeline_mode<synchronous>, transform_indices = @transform_2, window_bounds = array<i64: 64, 64>}, {pipeline_mode = #tpu.pipeline_mode<synchronous>, transform_indices = @transform_3, window_bounds = array<i64: 1, 64>}, {pipeline_mode = #tpu.pipeline_mode<synchronous>, transform_indices = @transform_4, window_bounds = array<i64: 1, 64>}, {pipeline_mode = #tpu.pipeline_mode<synchronous>, transform_indices = @transform_5, window_bounds = array<i64: 3, 192, 64>}, {transform_indices = @transform_6, window_bounds = array<i64: 1, 1, 64>}, {transform_indices = @transform_7, window_bounds = array<i64: 1, 160, 32>}, {pipeline_mode = #tpu.pipeline_mode<synchronous>, transform_indices = @transform_8, window_bounds = array<i64: 32, 64>}, {pipeline_mode = #tpu.pipeline_mode<synchronous>, transform_indices = @transform_9, window_bounds = array<i64: 1, 64>}, {transform_indices = @transform_10, window_bounds = array<i64: 1, 160, 64>}]} {
    %c0 = arith.constant 0 : index
    %c0_0 = arith.constant 0 : index
    %c0_1 = arith.constant 0 : index
    %0 = vector.load %arg1[%c0, %c0_0, %c0_1] : memref<1x160x64xbf16, #tpu.memory_space<vmem>>, vector<1x160x64xbf16>
    %1 = vector.shape_cast %0 : vector<1x160x64xbf16> to vector<160x64xbf16>
    %2 = arith.extf %1 : vector<160x64xbf16> to vector<160x64xf32>
    %c0_2 = arith.constant 0 : index
    %c0_3 = arith.constant 0 : index
    %3 = vector.load %arg2[%c0_2, %c0_3] : memref<160x1xf32, #tpu.memory_space<vmem>>, vector<160x1xf32>
    %cst = arith.constant dense<0.000000e+00> : vector<64xf32>
    %4 = vector.multi_reduction <add>, %2, %cst [0] : vector<160x64xf32> to vector<64xf32>
    %5 = vector.shape_cast %4 : vector<64xf32> to vector<1x64xf32>
    %6 = arith.mulf %2, %2 : vector<160x64xf32>
    %cst_4 = arith.constant dense<0.000000e+00> : vector<64xf32>
    %7 = vector.multi_reduction <add>, %6, %cst_4 [0] : vector<160x64xf32> to vector<64xf32>
    %8 = vector.shape_cast %7 : vector<64xf32> to vector<1x64xf32>
    %9 = tpu.concatenate %5, %8 in 0 : vector<1x64xf32>, vector<1x64xf32> -> vector<2x64xf32>
    %c0_5 = arith.constant 0 : index
    %c0_6 = arith.constant 0 : index
    %10 = vector.load %arg3[%c0_5, %c0_6] : memref<64x64xf32, #tpu.memory_space<vmem>>, vector<64x64xf32>
    %cst_7 = arith.constant dense<0.000000e+00> : vector<2x64xf32>
    %11 = tpu.matmul %9, %10, %cst_7 {dimension_numbers = #tpu.dot_dimension_numbers<[1], [0], [0], [1], [0, 0, 1, 1], [], []>, precision = #tpu.contract_precision<fp32>} : vector<2x64xf32>, vector<64x64xf32>, vector<2x64xf32> -> vector<2x64xf32>
    %12 = vector.extract_strided_slice %11 {offsets = [0, 0], sizes = [1, 64], strides = [1, 1]} : vector<2x64xf32> to vector<1x64xf32>
    %13 = vector.extract_strided_slice %11 {offsets = [1, 0], sizes = [1, 64], strides = [1, 1]} : vector<2x64xf32> to vector<1x64xf32>
    %14 = arith.mulf %12, %12 : vector<1x64xf32>
    %15 = arith.subf %13, %14 : vector<1x64xf32>
    %cst_8 = arith.constant 9.99999974E-6 : f32
    %16 = vector.broadcast %cst_8 : f32 to vector<1x64xf32>
    %17 = arith.addf %15, %16 : vector<1x64xf32>
    %18 = math.rsqrt %17 : vector<1x64xf32>
    %c0_9 = arith.constant 0 : index
    %c0_10 = arith.constant 0 : index
    %19 = vector.load %arg4[%c0_9, %c0_10] : memref<1x64xf32, #tpu.memory_space<vmem>>, vector<1x64xf32>
    %20 = arith.mulf %18, %19 : vector<1x64xf32>
    %c0_11 = arith.constant 0 : index
    %c0_12 = arith.constant 0 : index
    %21 = vector.load %arg5[%c0_11, %c0_12] : memref<1x64xf32, #tpu.memory_space<vmem>>, vector<1x64xf32>
    %22 = arith.mulf %12, %20 : vector<1x64xf32>
    %23 = arith.subf %21, %22 : vector<1x64xf32>
    %24 = vector.broadcast %20 : vector<1x64xf32> to vector<160x64xf32>
    %25 = arith.mulf %2, %24 : vector<160x64xf32>
    %26 = vector.broadcast %23 : vector<1x64xf32> to vector<160x64xf32>
    %27 = arith.addf %25, %26 : vector<160x64xf32>
    %28 = arith.negf %27 : vector<160x64xf32>
    %29 = math.exp %28 : vector<160x64xf32>
    %cst_13 = arith.constant 1.000000e+00 : f32
    %30 = vector.broadcast %cst_13 : f32 to vector<160x64xf32>
    %31 = arith.addf %30, %29 : vector<160x64xf32>
    %32 = arith.divf %30, %31 : vector<160x64xf32>
    %33 = arith.mulf %27, %32 : vector<160x64xf32>
    %34 = vector.broadcast %3 : vector<160x1xf32> to vector<160x64xf32>
    %35 = arith.mulf %33, %34 : vector<160x64xf32>
    %cst_14 = arith.constant 0.000000e+00 : f32
    %36 = vector.broadcast %cst_14 : f32 to vector<1x64xf32>
    %37 = vector.extract_strided_slice %35 {offsets = [0, 0], sizes = [159, 64], strides = [1, 1]} : vector<160x64xf32> to vector<159x64xf32>
    %38 = tpu.concatenate %36, %37 in 0 : vector<1x64xf32>, vector<159x64xf32> -> vector<160x64xf32>
    %39 = vector.extract_strided_slice %35 {offsets = [1, 0], sizes = [159, 64], strides = [1, 1]} : vector<160x64xf32> to vector<159x64xf32>
    %40 = tpu.concatenate %39, %36 in 0 : vector<159x64xf32>, vector<1x64xf32> -> vector<160x64xf32>
    %41 = tpu.concatenate %38, %35, %40 in 1 : vector<160x64xf32>, vector<160x64xf32>, vector<160x64xf32> -> vector<160x192xf32>
    %42 = arith.truncf %41 : vector<160x192xf32> to vector<160x192xbf16>
    %43 = vector.extract_strided_slice %42 {offsets = [0, 0], sizes = [128, 192], strides = [1, 1]} : vector<160x192xbf16> to vector<128x192xbf16>
    %c0_15 = arith.constant 0 : index
    %c0_16 = arith.constant 0 : index
    %c0_17 = arith.constant 0 : index
    %44 = vector.load %arg6[%c0_15, %c0_16, %c0_17] : memref<3x192x64xbf16, #tpu.memory_space<vmem>>, vector<1x192x64xbf16>
    %45 = vector.shape_cast %44 : vector<1x192x64xbf16> to vector<192x64xbf16>
    %cst_18 = arith.constant dense<0.000000e+00> : vector<128x64xf32>
    %46 = tpu.matmul %43, %45, %cst_18 {dimension_numbers = #tpu.dot_dimension_numbers<[1], [0], [0], [1], [0, 0, 1, 1], [], []>} : vector<128x192xbf16>, vector<192x64xbf16>, vector<128x64xf32> -> vector<128x64xf32>
    %47 = vector.extract_strided_slice %42 {offsets = [16, 0], sizes = [128, 192], strides = [1, 1]} : vector<160x192xbf16> to vector<128x192xbf16>
    %c1 = arith.constant 1 : index
    %c0_19 = arith.constant 0 : index
    %c0_20 = arith.constant 0 : index
    %48 = vector.load %arg6[%c1, %c0_19, %c0_20] : memref<3x192x64xbf16, #tpu.memory_space<vmem>>, vector<1x192x64xbf16>
    %49 = vector.shape_cast %48 : vector<1x192x64xbf16> to vector<192x64xbf16>
    %cst_21 = arith.constant dense<0.000000e+00> : vector<128x64xf32>
    %50 = tpu.matmul %47, %49, %cst_21 {dimension_numbers = #tpu.dot_dimension_numbers<[1], [0], [0], [1], [0, 0, 1, 1], [], []>} : vector<128x192xbf16>, vector<192x64xbf16>, vector<128x64xf32> -> vector<128x64xf32>
    %51 = arith.addf %46, %50 : vector<128x64xf32>
    %52 = vector.extract_strided_slice %42 {offsets = [32, 0], sizes = [128, 192], strides = [1, 1]} : vector<160x192xbf16> to vector<128x192xbf16>
    %c2 = arith.constant 2 : index
    %c0_22 = arith.constant 0 : index
    %c0_23 = arith.constant 0 : index
    %53 = vector.load %arg6[%c2, %c0_22, %c0_23] : memref<3x192x64xbf16, #tpu.memory_space<vmem>>, vector<1x192x64xbf16>
    %54 = vector.shape_cast %53 : vector<1x192x64xbf16> to vector<192x64xbf16>
    %cst_24 = arith.constant dense<0.000000e+00> : vector<128x64xf32>
    %55 = tpu.matmul %52, %54, %cst_24 {dimension_numbers = #tpu.dot_dimension_numbers<[1], [0], [0], [1], [0, 0, 1, 1], [], []>} : vector<128x192xbf16>, vector<192x64xbf16>, vector<128x64xf32> -> vector<128x64xf32>
    %56 = arith.addf %51, %55 : vector<128x64xf32>
    %c0_25 = arith.constant 0 : index
    %c0_26 = arith.constant 0 : index
    %c0_27 = arith.constant 0 : index
    %57 = vector.load %arg7[%c0_25, %c0_26, %c0_27] : memref<1x1x64xf32, #tpu.memory_space<vmem>>, vector<1x1x64xf32>
    %58 = vector.shape_cast %57 : vector<1x1x64xf32> to vector<1x64xf32>
    %59 = vector.broadcast %58 : vector<1x64xf32> to vector<128x64xf32>
    %60 = arith.addf %56, %59 : vector<128x64xf32>
    %61 = vector.extract_strided_slice %3 {offsets = [16, 0], sizes = [128, 1], strides = [1, 1]} : vector<160x1xf32> to vector<128x1xf32>
    %62 = vector.broadcast %61 : vector<128x1xf32> to vector<128x64xf32>
    %63 = arith.mulf %60, %62 : vector<128x64xf32>
    %c0_28 = arith.constant 0 : index
    %c16 = arith.constant 16 : index
    %c0_29 = arith.constant 0 : index
    %64 = vector.load %arg8[%c0_28, %c16, %c0_29] : memref<1x160x32xf32, #tpu.memory_space<vmem>>, vector<1x128x32xf32>
    %65 = vector.shape_cast %64 : vector<1x128x32xf32> to vector<128x32xf32>
    %66 = arith.truncf %65 : vector<128x32xf32> to vector<128x32xbf16>
    %c0_30 = arith.constant 0 : index
    %c0_31 = arith.constant 0 : index
    %67 = vector.load %arg9[%c0_30, %c0_31] : memref<32x64xbf16, #tpu.memory_space<vmem>>, vector<32x64xbf16>
    %cst_32 = arith.constant dense<0.000000e+00> : vector<128x64xf32>
    %68 = tpu.matmul %66, %67, %cst_32 {dimension_numbers = #tpu.dot_dimension_numbers<[1], [0], [0], [1], [0, 0, 1, 1], [], []>} : vector<128x32xbf16>, vector<32x64xbf16>, vector<128x64xf32> -> vector<128x64xf32>
    %69 = arith.addf %63, %68 : vector<128x64xf32>
    %c0_33 = arith.constant 0 : index
    %c0_34 = arith.constant 0 : index
    %70 = vector.load %arg10[%c0_33, %c0_34] : memref<1x64xf32, #tpu.memory_space<vmem>>, vector<1x64xf32>
    %71 = vector.broadcast %70 : vector<1x64xf32> to vector<128x64xf32>
    %72 = arith.addf %69, %71 : vector<128x64xf32>
    %cst_35 = arith.constant 0.000000e+00 : f32
    %73 = vector.broadcast %cst_35 : f32 to vector<16x64xf32>
    %c0_36 = arith.constant 0 : index
    %c0_37 = arith.constant 0 : index
    %c0_38 = arith.constant 0 : index
    %74 = vector.load %arg11[%c0_36, %c0_37, %c0_38] : memref<1x160x64xf32, #tpu.memory_space<vmem>>, vector<1x16x64xf32>
    %75 = vector.shape_cast %74 : vector<1x16x64xf32> to vector<16x64xf32>
    %76 = vector.shape_cast %73 : vector<16x64xf32> to vector<1x16x64xf32>
    tpu.vector_store %arg11[%c0_36, %c0_37, %c0_38], %76 {strides = array<i32>} : memref<1x160x64xf32, #tpu.memory_space<vmem>>, vector<1x16x64xf32>,
    %c0_39 = arith.constant 0 : index
    %c144 = arith.constant 144 : index
    %c0_40 = arith.constant 0 : index
    %77 = vector.load %arg11[%c0_39, %c144, %c0_40] : memref<1x160x64xf32, #tpu.memory_space<vmem>>, vector<1x16x64xf32>
    %78 = vector.shape_cast %77 : vector<1x16x64xf32> to vector<16x64xf32>
    %79 = vector.shape_cast %73 : vector<16x64xf32> to vector<1x16x64xf32>
    tpu.vector_store %arg11[%c0_39, %c144, %c0_40], %79 {strides = array<i32>} : memref<1x160x64xf32, #tpu.memory_space<vmem>>, vector<1x16x64xf32>,
    %c0_41 = arith.constant 0 : index
    %c16_42 = arith.constant 16 : index
    %c0_43 = arith.constant 0 : index
    %80 = vector.load %arg11[%c0_41, %c16_42, %c0_43] : memref<1x160x64xf32, #tpu.memory_space<vmem>>, vector<1x128x64xf32>
    %81 = vector.shape_cast %80 : vector<1x128x64xf32> to vector<128x64xf32>
    %82 = vector.shape_cast %72 : vector<128x64xf32> to vector<1x128x64xf32>
    tpu.vector_store %arg11[%c0_41, %c16_42, %c0_43], %82 {strides = array<i32>} : memref<1x160x64xf32, #tpu.memory_space<vmem>>, vector<1x128x64xf32>,
    return
  }
  func.func @transform_0(%arg0: i32) -> (i32, i32, i32) {
    %c0_i32 = arith.constant 0 : i32
    %c0_i32_0 = arith.constant 0 : i32
    %c0_i32_1 = arith.constant 0 : i32
    return %arg0, %c0_i32, %c0_i32_0 : i32, i32, i32
  }
  func.func @transform_1(%arg0: i32) -> (i32, i32) {
    %c0_i32 = arith.constant 0 : i32
    %c0_i32_0 = arith.constant 0 : i32
    %c0_i32_1 = arith.constant 0 : i32
    return %c0_i32, %c0_i32_0 : i32, i32
  }
  func.func @transform_2(%arg0: i32) -> (i32, i32) {
    %c0_i32 = arith.constant 0 : i32
    %c0_i32_0 = arith.constant 0 : i32
    %c0_i32_1 = arith.constant 0 : i32
    return %c0_i32, %c0_i32_0 : i32, i32
  }
  func.func @transform_3(%arg0: i32) -> (i32, i32) {
    %c0_i32 = arith.constant 0 : i32
    %c0_i32_0 = arith.constant 0 : i32
    %c0_i32_1 = arith.constant 0 : i32
    return %c0_i32, %c0_i32_0 : i32, i32
  }
  func.func @transform_4(%arg0: i32) -> (i32, i32) {
    %c0_i32 = arith.constant 0 : i32
    %c0_i32_0 = arith.constant 0 : i32
    %c0_i32_1 = arith.constant 0 : i32
    return %c0_i32, %c0_i32_0 : i32, i32
  }
  func.func @transform_5(%arg0: i32) -> (i32, i32, i32) {
    %c0_i32 = arith.constant 0 : i32
    %c0_i32_0 = arith.constant 0 : i32
    %c0_i32_1 = arith.constant 0 : i32
    %c0_i32_2 = arith.constant 0 : i32
    return %c0_i32, %c0_i32_0, %c0_i32_1 : i32, i32, i32
  }
  func.func @transform_6(%arg0: i32) -> (i32, i32, i32) {
    %c0_i32 = arith.constant 0 : i32
    %c0_i32_0 = arith.constant 0 : i32
    %c0_i32_1 = arith.constant 0 : i32
    return %arg0, %c0_i32, %c0_i32_0 : i32, i32, i32
  }
  func.func @transform_7(%arg0: i32) -> (i32, i32, i32) {
    %c0_i32 = arith.constant 0 : i32
    %c0_i32_0 = arith.constant 0 : i32
    %c0_i32_1 = arith.constant 0 : i32
    return %arg0, %c0_i32, %c0_i32_0 : i32, i32, i32
  }
  func.func @transform_8(%arg0: i32) -> (i32, i32) {
    %c0_i32 = arith.constant 0 : i32
    %c0_i32_0 = arith.constant 0 : i32
    %c0_i32_1 = arith.constant 0 : i32
    return %c0_i32, %c0_i32_0 : i32, i32
  }
  func.func @transform_9(%arg0: i32) -> (i32, i32) {
    %c0_i32 = arith.constant 0 : i32
    %c0_i32_0 = arith.constant 0 : i32
    %c0_i32_1 = arith.constant 0 : i32
    return %c0_i32, %c0_i32_0 : i32, i32
  }
  func.func @transform_10(%arg0: i32) -> (i32, i32, i32) {
    %c0_i32 = arith.constant 0 : i32
    %c0_i32_0 = arith.constant 0 : i32
    %c0_i32_1 = arith.constant 0 : i32
    return %arg0, %c0_i32, %c0_i32_0 : i32, i32, i32
  }
}

</mosaic_0001>

<bundles_post_ra>
// kernel: residual_block_forward.2
= control target key start
LH: loop header
LB: loop body
LE: loop exit
PB: predicated region body
PF: predicated region fallthrough
CT: control target
= control target key end

     0   :  { %s2951_s24 = smov 0   ;;  %s4013_s0 = inlined_call_operand.vmem [shape: f32[2,160,32], index: 0, kind: input, shape index: {}]   ;;  %s4014_s1 = inlined_call_operand.vmem [shape: f32[160,1], index: 1, kind: input, shape index: {}]   ;;  %s4015_s2 = inlined_call_operand.vmem [shape: f32[32,32], index: 2, kind: input, shape index: {}]   ;;  %s4016_s3 = inlined_call_operand.vmem [shape: f32[1,32], index: 3, kind: input, shape index: {}]   ;;  %s4017_s4 = inlined_call_operand.vmem [shape: f32[1,32], index: 4, kind: input, shape index: {}]   ;;  %s4018_s5 = inlined_call_operand.vmem [shape: bf16[3,96,64], index: 5, kind: input, shape index: {}]   ;;  %s4019_s6 = inlined_call_operand.vmem [shape: f32[2,1,64], index: 6, kind: input, shape index: {}]   ;;  %s4020_s7 = inlined_call_operand.vmem [shape: bf16[2,160,64], index: 7, kind: output, shape index: {}]  }
   0x1 LB: > { %s2236_s25 = sadd.s32 4294967295, %s2903_s24   ;;  %p2240_p0 = scmp.ge.s32.totalorder %s2903_s24, 1  ;;  %s2903_s24 = sphi %s2951_s24, %s17_s24  }
   0x2   : > { %p245_p1 = scmp.lt.s32.totalorder %s2903_s24, 3 }
   0x4   : > { %p246_p2 = pnand %p2240_p0, %p245_p1 }
   0x6   : > { %249 = sbr.rel (%p246_p2) target bundleno = 837 (0x345), region = 48 }
   0xd   : > { %v447_v0 = vld [vmem:[%s4015_s2] sm:$0xff]  ;;  %v448_v1 = vld [vmem:[%s4015_s2 + $0x8] sm:$0xff]  ;;  %v449_v2 = vld [vmem:[%s4015_s2 + $0x10] sm:$0xff]  ;;  %v2905_v3 = vmov 0.0|0.0   ;;  %vm2906_vm0 = vmmov 0   ;;  %v2907_v8 = vmov 0.0  }
   0xe   : > { %2587 = vmatprep.subr.bf16.mxu0 %v2905_v3  ;;  %v455_v4 = vand.u32 4294901760, %v447_v0  ;;  %v458_v5 = vand.u32 4294901760, %v448_v1  ;;  %v450_v6 = vld [vmem:[%s4015_s2 + $0x18] sm:$0xff]  ;;  %v461_v7 = vand.u32 4294901760, %v449_v2  ;;  %2445 = vmatprep.mubr.msk.f32.mxu0 %vm2906_vm0, %v2907_v8  ;;  %p280_p3 = scmp.lt.s32.totalorder %s2236_s25, 1  ;;  %v316_v10 = vld [vmem:[%s4014_s1 + $0x10] sm:$0xff] }
   0xf   : > { %v464_v9 = vand.u32 4294901760, %v450_v6  ;;  %v318_v11 = vld [vmem:[%s4014_s1 + $0x20] sm:$0xff]  ;;  %v2908_v16 = vmov 0   ;;  %v317_v22 = vld [vmem:[%s4014_s1 + $0x18] sm:$0xff]  ;;  %vm334_vm1 = vcmask 261120   ;;  %v319_v26 = vld [vmem:[%s4014_s1 + $0x28] sm:$0xff] }
  0x10   : > { %v2980_v12 = vpack.c.bf16 %v458_v5, %v455_v4  ;;  %v2982_v13 = vsub.f32 %v447_v0, %v455_v4  ;;  %v2984_v14 = vsub.f32 %v448_v1, %v458_v5  ;;  %v2986_v15 = vsub.f32 %v449_v2, %v461_v7  ;;  %s4038_s25 = smov (!%p280_p3, %s2236_s25), 1  ;;  %2693 = vset.pattern.permute.xlu0 %v2908_v16  ;;  %v320_v35 = vld [vmem:[%s4014_s1 + $0x30] sm:$0xff]  ;;  %v321_v38 = vld [vmem:[%s4014_s1 + $0x38] sm:$0xff]  ;;  %v322_v43 = vld [vmem:[%s4014_s1 + $0x40] sm:$0xff]  ;;  %s2909_s30 = smov 32  }
  0x11   : > { %v2990_v17 = vsub.f32 %v450_v6, %v464_v9  ;;  %1162 = vperm.xlu0 %2693, %v316_v10   ;;  %2694 = vset.pattern.permute.xlu1 %v2908_v16  ;;  %v2993_v18 = vpack.c.bf16 %v464_v9, %v461_v7  ;;  %s2677_s15 = smul.u32 160, %s4038_s25  ;;  %vm2087_vm2 = vcmask 519168   ;;  %v323_v44 = vld [vmem:[%s4014_s1 + $0x48] sm:$0xff]  ;;  %v324_v52 = vld [vmem:[%s4014_s1 + $0x50] sm:$0xff]  ;;  %v325_v56 = vld [vmem:[%s4014_s1 + $0x58] sm:$0xff]  ;;  %vm445_vm3 = vcmask 1040384  }
  0x12   : > { %2589 = vmatpush3.bf16.msra.mxu0 %v2980_v12  ;;  %v536_v19 = vand.u32 4294901760, %v2982_v13  ;;  %v543_v20 = vand.u32 4294901760, %v2984_v14  ;;  %v2600_v21 = vpack.c.bf16 %v2984_v14, %v2982_v13  ;;  %1172 = vperm.xlu1 %2694, %v318_v11   ;;  %v550_v23 = vand.u32 4294901760, %v2986_v15  ;;  %s2678_s18 = smul.u32 80, %s4038_s25  ;;  %v326_v9 = vld [vmem:[%s4014_s1 + $0x60] sm:$0xff]  ;;  %s2910_s10 = smov 64  }
  0x13   : > { %2590 = vmatprep.subr.bf16.mxu0 %v2905_v3  ;;  %v557_v24 = vand.u32 4294901760, %v2990_v17  ;;  %v2603_v25 = vpack.c.bf16 %v2990_v17, %v2986_v15  ;;  %s3015_s23 = scalar_lea.vmem %s4013_s0, %s2677_s15  ;;  %vm1350_vm4 = vcmask 1046528   ;;  %vm1533_vm5 = vcmask 523264  }
  0x14   : > { %v3017_v27 = vpack.c.bf16 %v543_v20, %v536_v19  ;;  %v3020_v28 = vld [vmem:[%s3015_s23] sm:$0xff]  ;;  %v3023_v29 = vld [vmem:[%s3015_s23 + $0x8] sm:$0xff]  ;;  %v3026_v30 = vld [vmem:[%s3015_s23 + $0x10] sm:$0xff]  ;;  %s3037_s28 = scalar_lea.vmem %s4020_s7, %s2678_s18  ;;  %v537_v61 = vsub.f32 %v2982_v13, %v536_v19  ;;  %v544_v62 = vsub.f32 %v2984_v14, %v543_v20  ;;  %vm1625_vm6 = vcmask 785408  }
  0x15   : > { %v3032_v31 = vpack.c.bf16 %v557_v24, %v550_v23  ;;  %1167 = vperm.xlu0 %2693, %v317_v22   ;;  %v335_v32 = vsel %vm334_vm1, %v3020_v28, 0.0  ;;  %v336_v33 = vsel %vm334_vm1, %v3023_v29, 0.0  ;;  %v338_v34 = vsel %vm334_vm1, %v3026_v30, 0.0  ;;  %2088 = vst.msk [vmem:[%s3037_s28] sm:$0xf] %vm2087_vm2, %v2908_v16  ;;  %v3059_v36 = vld [vmem:[%s3015_s23 + $0x18] sm:$0xff] }
  0x16   : > { %2592 = vmatpush3.bf16.msra.mxu0 %v2993_v18  ;;  %2089 = vst.msk [vmem:[%s3037_s28 + $0x4] sm:$0xf] %vm2087_vm2, %v2908_v16  ;;  %2090 = vst.msk [vmem:[%s3037_s28 + $0x48] sm:$0xf] %vm2087_vm2, %v2908_v16  ;;  %1177 = vperm.xlu1 %2694, %v319_v26   ;;  %v337_v37 = vadd.f32 %v336_v33, %v335_v32  ;;  %v340_v39 = vsel %vm334_vm1, %v3059_v36, 0.0  ;;  %v3067_v40 = vld [vmem:[%s3015_s23 + $0x20] sm:$0xff]  ;;  %v380_v54 = vmul.f32 %v3020_v28, %v3020_v28 }
  0x17   : > { %2091 = vst.msk [vmem:[%s3037_s28 + $0x4c] sm:$0xf] %vm2087_vm2, %v2908_v16  ;;  %2593 = vmatprep.subr.bf16.mxu0 %v2905_v3  ;;  %v342_v42 = vsel %vm334_vm1, %v3067_v40, 0.0  ;;  %v3078_v45 = vld [vmem:[%s3015_s23 + $0x28] sm:$0xff]  ;;  %v3081_v46 = vld [vmem:[%s3015_s23 + $0x30] sm:$0xff]  ;;  %v3084_v47 = vld [vmem:[%s3015_s23 + $0x38] sm:$0xff]  ;;  %v381_v55 = vmul.f32 %v3023_v29, %v3023_v29  ;;  %v382_v57 = vmul.f32 %v3026_v30, %v3026_v30  ;;  %v383_v60 = vmul.f32 %v3059_v36, %v3059_v36 }
  0x18   : > { %v339_v41 = vadd.f32 %v338_v34, %v337_v37  ;;  %v344_v49 = vsel %vm334_vm1, %v3078_v45, 0.0  ;;  %v346_v50 = vsel %vm334_vm1, %v3081_v46, 0.0  ;;  %v348_v51 = vsel %vm334_vm1, %v3084_v47, 0.0  ;;  %v3105_v58 = vld [vmem:[%s3015_s23 + $0x40] sm:$0xff]  ;;  %v3124_v10 = vld [vmem:[%s3015_s23 + $0x48] sm:$0xff]  ;;  %v3135_v26 = vld [vmem:[%s3015_s23 + $0x50] sm:$0xff] }
  0x19   : > { %1182 = vperm.xlu0 %2693, %v320_v35   ;;  %v384_v0 = vmul.f32 %v3067_v40, %v3067_v40  ;;  %v400_v1 = vsel %vm334_vm1, %v380_v54, 0.0  ;;  %v401_v2 = vsel %vm334_vm1, %v381_v55, 0.0  ;;  %v350_v4 = vsel %vm334_vm1, %v3105_v58, 0.0  ;;  %v327_v22 = vld [vmem:[%s4014_s1 + $0x68] sm:$0xff]  ;;  %v3138_v32 = vld [vmem:[%s3015_s23 + $0x58] sm:$0xff]  ;;  %v2795_v13 = vld [vmem:[%s4018_s5 + $0x30] sm:$0xff]  }
  0x1a   : > { %1187 = vperm.xlu1 %2694, %v321_v38   ;;  %v341_v48 = vadd.f32 %v340_v39, %v339_v41  ;;  %v385_v5 = vmul.f32 %v3078_v45, %v3078_v45  ;;  %v402_v6 = vadd.f32 %v401_v2, %v400_v1  ;;  %v403_v7 = vsel %vm334_vm1, %v382_v57, 0.0  ;;  %v3149_v38 = vld [vmem:[%s3015_s23 + $0x60] sm:$0xff]  ;;  %v3152_v39 = vld [vmem:[%s3015_s23 + $0x68] sm:$0xff]  ;;  %v329_v55 = vld [vmem:[%s4014_s1 + $0x78] sm:$0xff]  ;;  %2503 = vmatprep.subr.bf16.mxu1 %v2795_v13 }
  0x1b   : > { %v386_v16 = vmul.f32 %v3081_v46, %v3081_v46  ;;  %v387_v19 = vmul.f32 %v3084_v47, %v3084_v47  ;;  %v405_v20 = vsel %vm334_vm1, %v383_v60, 0.0  ;;  %v352_v33 = vsel %vm334_vm1, %v3124_v10, 0.0  ;;  %v2796_v14 = vld [vmem:[%s4018_s5 + $0x38] sm:$0xff]   ;;  %2504 = vmatpush3.bf16.msra.mxu1 %v2795_v13 }
  0x1c   : > { %v343_v53 = vadd.f32 %v342_v42, %v341_v48  ;;  %v404_v34 = vadd.f32 %v403_v7, %v402_v6  ;;  %v551_v35 = vsub.f32 %v2986_v15, %v550_v23  ;;  %v558_v37 = vsub.f32 %v2990_v17, %v557_v24  ;;  %2505 = vmatprep.subr.bf16.mxu1 %v2796_v14  ;;  %v2799_v15 = vld [vmem:[%s4018_s5 + $0x48] sm:$0xff]  }
  0x1d   : > { %1192 = vperm.xlu0 %2693, %v322_v43   ;;  %v354_v42 = vsel %vm334_vm1, %v3135_v26, 0.0  ;;  %v388_v43 = vmul.f32 %v3105_v58, %v3105_v58  ;;  %v356_v23 = vsel %vm334_vm1, %v3138_v32, 0.0  ;;  %v358_v24 = vsel %vm334_vm1, %v3149_v38, 0.0 }
  0x1e   : > { %1197 = vperm.xlu1 %2694, %v323_v44   ;;  %v345_v59 = vadd.f32 %v344_v49, %v343_v53  ;;  %v407_v44 = vsel %vm334_vm1, %v384_v0, 0.0  ;;  %v360_v48 = vsel %vm334_vm1, %v3152_v39, 0.0  ;;  %v406_v49 = vadd.f32 %v405_v20, %v404_v34  ;;  %v3198_v34 = vld [vmem:[%s3015_s23 + $0x78] sm:$0xff] }
  0x1f   : > { %v411_v53 = vsel %vm334_vm1, %v386_v16, 0.0  ;;  %v413_v54 = vsel %vm334_vm1, %v387_v19, 0.0  ;;  %v538_v57 = vand.u32 4294901760, %v537_v61  ;;  %v552_v60 = vand.u32 4294901760, %v551_v35  ;;  %v3184_v61 = vld [vmem:[%s3015_s23 + $0x70] sm:$0xff]  ;;  %2506 = vmatpush3.bf16.msra.mxu1 %v2796_v14 }
  0x20   : > { %v347_v63 = vadd.f32 %v346_v50, %v345_v59  ;;  %v328_v50 = vld [vmem:[%s4014_s1 + $0x70] sm:$0xff]  ;;  %v545_v59 = vand.u32 4294901760, %v544_v62  ;;  %v415_v1 = vsel %vm334_vm1, %v388_v43, 0.0  ;;  %v559_v2 = vand.u32 4294901760, %v558_v37 }
  0x21   : > { %1202 = vperm.xlu0 %2693, %v324_v52   ;;  %v409_v52 = vsel %vm334_vm1, %v385_v5, 0.0  ;;  %v389_v7 = vmul.f32 %v3124_v10, %v3124_v10  ;;  %v390_v19 = vmul.f32 %v3135_v26, %v3135_v26  ;;  %v362_v20 = vsel %vm334_vm1, %v3184_v61, 0.0 }
  0x22   : > { %1207 = vperm.xlu1 %2694, %v325_v56   ;;  %v349_v11 = vadd.f32 %v348_v51, %v347_v63  ;;  %v408_v56 = vadd.f32 %v407_v44, %v406_v49  ;;  %v330_v63 = vld [vmem:[%s4014_s1 + $0x80] sm:$0xff]  ;;  %v3181_v6 = vpack.c.bf16 %v545_v59, %v538_v57  ;;  %v391_v37 = vmul.f32 %v3138_v32, %v3138_v32  ;;  %v333_v57 = vld [vmem:[%s4014_s1 + $0x98] sm:$0xff] }
  0x23   : > { %v364_v43 = vsel %vm334_vm1, %v3198_v34, 0.0  ;;  %v419_v49 = vsel %vm334_vm1, %v390_v19, 0.0 }
  0x24   : > { %v351_v41 = vadd.f32 %v350_v4, %v349_v11  ;;  %v331_v4 = vld [vmem:[%s4014_s1 + $0x88] sm:$0xff]  ;;  %v410_v5 = vadd.f32 %v409_v52, %v408_v56  ;;  %v421_v56 = vsel %vm334_vm1, %v391_v37, 0.0 }
  0x25   : > { %1212 = vperm.xlu0 %2693, %v326_v9   ;;  %v3188_v9 = vpack.c.bf16 %v559_v2, %v552_v60  ;;  %v315_v52 = vld [vmem:[%s4014_s1 + $0x8] sm:$0xff] }
  0x26   : > { %1217 = vperm.xlu1 %2694, %v327_v22   ;;  %v353_v51 = vadd.f32 %v352_v33, %v351_v41  ;;  %v412_v11 = vadd.f32 %v411_v53, %v410_v5  ;;  %v332_v33 = vld [vmem:[%s4014_s1 + $0x90] sm:$0xff]  ;;  %v417_v41 = vsel %vm334_vm1, %v389_v7, 0.0  ;;  %v3220_v53 = vld [vmem:[%s3015_s23 + $0x88] sm:$0xff] }
  0x27   : > { %v368_v59 = vsel %vm334_vm1, %v3220_v53, 0.0 }
  0x28   : > { %v355_v0 = vadd.f32 %v354_v42, %v353_v51  ;;  %v414_v22 = vadd.f32 %v413_v54, %v412_v11  ;;  %v314_v42 = vld [vmem:[%s4014_s1] sm:$0xff]  ;;  %v395_v11 = vmul.f32 %v3198_v34, %v3198_v34 }
  0x29   : > { %1222 = vperm.xlu0 %2693, %v328_v50  }
  0x2a   : > { %1227 = vperm.xlu1 %2694, %v329_v55   ;;  %v357_v62 = vadd.f32 %v356_v23, %v355_v0  ;;  %v416_v44 = vadd.f32 %v415_v1, %v414_v22  ;;  %v3209_v23 = vld [vmem:[%s3015_s23 + $0x80] sm:$0xff]  ;;  %v393_v55 = vmul.f32 %v3152_v39, %v3152_v39  ;;  %v394_v1 = vmul.f32 %v3184_v61, %v3184_v61 }
  0x2b   : > { %v366_v50 = vsel %vm334_vm1, %v3209_v23, 0.0 }
  0x2c   : > { %v359_v16 = vadd.f32 %v358_v24, %v357_v62  ;;  %v418_v51 = vadd.f32 %v417_v41, %v416_v44  ;;  %v3239_v62 = vld [vmem:[%s3015_s23 + $0x98] sm:$0xff] }
  0x2d   : > { %1232 = vperm.xlu0 %2693, %v330_v63   ;;  %v3231_v63 = vld [vmem:[%s3015_s23 + $0x90] sm:$0xff]  ;;  %v372_v19 = vsel %vm334_vm1, %v3239_v62, 0.0 }
  0x2e   : > { %1237 = vperm.xlu1 %2694, %v331_v4   ;;  %v361_v35 = vadd.f32 %v360_v48, %v359_v16  ;;  %v392_v48 = vmul.f32 %v3149_v38, %v3149_v38  ;;  %v420_v60 = vadd.f32 %v419_v49, %v418_v51  ;;  %v370_v4 = vsel %vm334_vm1, %v3231_v63, 0.0 }
  0x2f   : > { %v425_v16 = vsel %vm334_vm1, %v393_v55, 0.0  ;;  %v399_v51 = vmul.f32 %v3239_v62, %v3239_v62 }
  0x30   : > { %v363_v24 = vadd.f32 %v362_v20, %v361_v35  ;;  %v423_v2 = vsel %vm334_vm1, %v392_v48, 0.0  ;;  %v422_v5 = vadd.f32 %v421_v56, %v420_v60  ;;  %v427_v35 = vsel %vm334_vm1, %v394_v1, 0.0 }
  0x31   : > { %1242 = vperm.xlu0 %2693, %v332_v33   ;;  %v396_v33 = vmul.f32 %v3209_v23, %v3209_v23  ;;  %v398_v48 = vmul.f32 %v3231_v63, %v3231_v63 }
  0x32   : > { %1152 = vperm.xlu1 %2694, %v314_v42   ;;  %v365_v54 = vadd.f32 %v364_v43, %v363_v24  ;;  %v424_v20 = vadd.f32 %v423_v2, %v422_v5  ;;  %v397_v42 = vmul.f32 %v3220_v53, %v3220_v53  ;;  %v429_v43 = vsel %vm334_vm1, %v395_v11, 0.0 }
  0x33   : > { %v431_v49 = vsel %vm334_vm1, %v396_v33, 0.0  ;;  %v435_v56 = vsel %vm334_vm1, %v398_v48, 0.0 }
  0x34   : > { %v367_v0 = vadd.f32 %v366_v50, %v365_v54  ;;  %v426_v37 = vadd.f32 %v425_v16, %v424_v20 }
  0x35   : > { %1157 = vperm.xlu0 %2693, %v315_v52   ;;  %v433_v52 = vsel %vm334_vm1, %v397_v42, 0.0 }
  0x36   : > { %1247 = vperm.xlu1 %2694, %v333_v57   ;;  %v369_v7 = vadd.f32 %v368_v59, %v367_v0  ;;  %v428_v44 = vadd.f32 %v427_v35, %v426_v37  ;;  %v437_v59 = vsel %vm334_vm1, %v399_v51, 0.0 }
  0x38   : > { %v371_v22 = vadd.f32 %v370_v4, %v369_v7  ;;  %v430_v50 = vadd.f32 %v429_v43, %v428_v44 }
  0x3a   : > { %v373_v41 = vadd.f32 %v372_v19, %v371_v22  ;;  %v432_v55 = vadd.f32 %v431_v49, %v430_v50 }
  0x3c   : > { %v374_v24 = vrot.slane %v373_v41, 4  ;;  %v434_v57 = vadd.f32 %v433_v52, %v432_v55  ;;  %v954_v52 = vld [vmem:[%s4017_s4] sm:$0x1] }
  0x3e   : > { %v375_v54 = vadd.f32 %v374_v24, %v373_v41  ;;  %v436_v0 = vadd.f32 %v435_v56, %v434_v57  ;;  %v2243_v24 = vld [vmem:[%s4016_s3] ss:$0 sm:$0xff] }
  0x40   : > { %v376_v60 = vrot.slane %v375_v54, 2  ;;  %v438_v1 = vadd.f32 %v437_v59, %v436_v0 }
  0x42   : > { %v377_v2 = vadd.f32 %v376_v60, %v375_v54  ;;  %v439_v4 = vrot.slane %v438_v1, 4 }
  0x44   : > { %v440_v5 = vadd.f32 %v439_v4, %v438_v1  ;;  %v378_v7 = vrot.slane %v377_v2, 1 }
  0x46   : > { %v441_v11 = vrot.slane %v440_v5, 2  ;;  %v379_v19 = vadd.f32 %v378_v7, %v377_v2 }
  0x48   : > { %v442_v16 = vadd.f32 %v441_v11, %v440_v5 }
  0x4a   : > { %v443_v20 = vrot.slane %v442_v16, 1 }
  0x4c   : > { %v444_v22 = vadd.f32 %v443_v20, %v442_v16 }
  0x4e   : > { %v446_v33 = vsel %vm445_vm3, %v379_v19, %v444_v22 }
  0x4f   : > { %v452_v35 = vsel %vm334_vm1, %v446_v33, 0 }
  0x50   : > { %v523_v37 = vand.u32 4294901760, %v452_v35 }
  0x52   : > { %v524_v41 = vsub.f32 %v452_v35, %v523_v37 }
  0x54   : > { %v525_v42 = vand.u32 4294901760, %v524_v41 }
  0x56   : > { %v526_v43 = vsub.f32 %v524_v41, %v525_v42 }
  0x58   : > { %v527_v44 = vand.u32 4294901760, %v526_v43 }
  0x5a   : > { %2446 = vmatmul.mubr.f32.vlgmr.msra.gmra.mrb[0].mxu0 %v527_v44 }
  0x5b   : > { %2595 = vmatpush3.bf16.msra.mxu0 %v3181_v6  ;;  %2456 = vmatprep.mubr.msk.f32.mxu0 %vm2906_vm0, %v2907_v8  ;;  %v960_v6 = vlaneseq }
  0x5c   : > { %2596 = vmatprep.subr.bf16.mxu0 %v2905_v3 }
  0x5f   : > { %2598 = vmatpush3.bf16.msra.mxu0 %v3188_v9  ;;  %v961_v9 = vshrl.u32 %v960_v6, 7 }
  0x60   : > { %2599 = vmatprep.subr.bf16.mxu0 %v2905_v3 }
  0x61   : > { %v962_v49 = vsub.s32 1, %v961_v9  ;;  %v987_v56 = vsub.s32 0, %v961_v9 }
  0x62   : > { %2457 = vmatmul.mubr.f32.vlgmr.msra.gmra.mrb[0].mxu0 %v523_v37 }
  0x63   : > { %2601 = vmatpush3.bf16.msra.mxu0 %v2600_v21  ;;  %2467 = vmatprep.mubr.msk.f32.mxu0 %vm2906_vm0, %v2907_v8 }
  0x64   : > { %2602 = vmatprep.subr.bf16.mxu0 %v2905_v3 }
  0x67   : > { %2604 = vmatpush3.bf16.msra.mxu0 %v2603_v25 }
  0x68   : > { %2605 = vmatprep.subr.bf16.mxu0 %v2905_v3 }
  0x6a   : > { %2468 = vmatmul.mubr.f32.vlgmr.msra.gmra.mrb[0].mxu0 %v524_v41 }
  0x6b   : > { %2607 = vmatpush3.bf16.msra.mxu0 %v2980_v12  ;;  %2478 = vmatprep.mubr.msk.f32.mxu0 %vm2906_vm0, %v2907_v8 }
  0x6c   : > { %2608 = vmatprep.subr.bf16.mxu0 %v2905_v3 }
  0x6f   : > { %2610 = vmatpush3.bf16.msra.mxu0 %v2993_v18 }
  0x70   : > { %2611 = vmatprep.subr.bf16.mxu0 %v2905_v3 }
  0x72   : > { %2479 = vmatmul.mubr.f32.vlgmr.msra.gmra.mrb[0].mxu0 %v525_v42 }
  0x73   : > { %2613 = vmatpush3.bf16.msra.mxu0 %v3017_v27  ;;  %2489 = vmatprep.mubr.msk.f32.mxu0 %vm2906_vm0, %v2907_v8 }
  0x74   : > { %2614 = vmatprep.subr.bf16.mxu0 %v2905_v3 }
  0x77   : > { %2616 = vmatpush3.bf16.msra.mxu0 %v3032_v31 }
  0x78   : > { %2617 = vmatprep.subr.bf16.mxu0 %v2905_v3 }
  0x7a   : > { %2490 = vmatmul.mubr.f32.vlgmr.msra.gmra.mrb[0].mxu0 %v523_v37 }
  0x7b   : > { %2619 = vmatpush3.bf16.msra.mxu0 %v2980_v12  ;;  %2500 = vmatprep.mubr.msk.f32.mxu0 %vm2906_vm0, %v2907_v8  ;;  %v3304_v12 = vld [vmem:[%s4018_s5 + $0x60] sm:$0xff]  }
  0x7c   : > { %2620 = vmatprep.subr.bf16.mxu0 %v2905_v3  ;;  %v2800_v3 = vld [vmem:[%s4018_s5 + $0x68] sm:$0xff]   ;;  %v2797_v8 = vld [vmem:[%s4018_s5 + $0x40] sm:$0xff]  }
  0x7d   : > { %2507 = vmatprep.subr.bf16.mxu1 %v2797_v8 }
  0x7e   : > { %2508 = vmatpush3.bf16.msra.mxu1 %v2797_v8 }
  0x7f   : > { %2622 = vmatpush3.bf16.msra.mxu0 %v2993_v18  ;;  %2509 = vmatprep.subr.bf16.mxu1 %v2799_v15 }
  0x80   : > { %2559 = vmatprep.subr.bf16.mxu0 %v3304_v12 }
  0x82   : > { %2501 = vmatmul.mubr.f32.vlgmr.msra.gmra.mrb[0].mxu0 %v523_v37  ;;  %2510 = vmatpush3.bf16.msra.mxu1 %v2799_v15 }
  0x83   : > { %2560 = vmatpush3.bf16.msra.mxu0 %v3304_v12 }
  0x84   : > { %2561 = vmatprep.subr.bf16.mxu0 %v2800_v3 }
  0x87   : > { %2562 = vmatpush3.bf16.msra.mxu0 %v2800_v3 }
  0x90   : > { %v3401_v15 = vpop.permute.xlu0 %1162 }
  0x94   : > { %v3409_v9 = vpop.permute.xlu0 %1167 }
 0x155   : > { %v935_v17 = vpop.f32.mrb[0].mxu0 }
 0x156   : > { %v939_v18 = vmul.f32 %v935_v17, %v935_v17  ;;  %v2502_v21 = vpop.f32.mrb[1].mxu0 }
 0x158   : > { %v941_v25 = vrot.slane %v939_v18, 7 }
 0x15a   : > { %v943_v27 = vsub.f32 %v935_v17, %v941_v25  ;;  %v3407_v25 = vpop.permute.xlu1 %1172 }
 0x15c   : > { %v944_v31 = vadd.f32 1e-05, %v943_v27 }
 0x15e   : > { %2813 = vrsqrt.f32 %v944_v31 }
 0x168   : > { %v2814_v48 = vpop.eup %2813 }
 0x169   : > { %v953_v50 = vmul.f32 %v2814_v48, %v2243_v24 }
 0x16b   : > { %v956_v51 = vrot.slane %v953_v50, 1  ;;  %v3323_v54 = vrot.slane %v953_v50, %v962_v49 }
 0x16d   : > { %v958_v55 = vmul.f32 %v956_v51, %v935_v17  ;;  %v966_v59 = vmul.f32 %v3323_v54, %v3026_v30  ;;  %v968_v0 = vmul.f32 %v3323_v54, %v3067_v40  ;;  %v967_v1 = vmul.f32 %v3323_v54, %v3059_v36 }
 0x16e   : > { %v969_v2 = vmul.f32 %v3323_v54, %v3078_v45  ;;  %v970_v4 = vmul.f32 %v3323_v54, %v3081_v46  ;;  %v971_v5 = vmul.f32 %v3323_v54, %v3084_v47  ;;  %v972_v30 = vmul.f32 %v3323_v54, %v3105_v58 }
 0x16f   : > { %v959_v57 = vsub.f32 %v954_v52, %v958_v55  ;;  %v973_v58 = vmul.f32 %v3323_v54, %v3124_v10  ;;  %v974_v11 = vmul.f32 %v3323_v54, %v3135_v26  ;;  %v975_v10 = vmul.f32 %v3323_v54, %v3138_v32 }
 0x170   : > { %v976_v41 = vmul.f32 %v3323_v54, %v3149_v38  ;;  %v977_v44 = vmul.f32 %v3323_v54, %v3152_v39  ;;  %v978_v14 = vmul.f32 %v3323_v54, %v3184_v61 }
 0x171   : > { %v3327_v60 = vrot.slane %v959_v57, %v987_v56  ;;  %v3411_v56 = vpop.permute.xlu1 %1177 }
 0x173   : > { %v3342_v7 = vadd.f32 %v3327_v60, %v966_v59  ;;  %v3345_v40 = vadd.f32 %v3327_v60, %v968_v0  ;;  %v3348_v36 = vadd.f32 %v3327_v60, %v967_v1  ;;  %v3351_v45 = vadd.f32 %v3327_v60, %v969_v2 }
 0x174   : > { %v3354_v46 = vadd.f32 %v3327_v60, %v970_v4  ;;  %v3357_v47 = vadd.f32 %v3327_v60, %v971_v5  ;;  %v3367_v22 = vadd.f32 %v3327_v60, %v972_v30  ;;  %v3371_v35 = vadd.f32 %v3327_v60, %v973_v58  ;;  %v3415_v4 = vpop.permute.xlu0 %1182 }
 0x175   : > { %v2246_v16 = vmul.f32 -1.442695, %v3342_v7  ;;  %v2248_v19 = vmul.f32 -1.442695, %v3345_v40  ;;  %v2247_v20 = vmul.f32 -1.442695, %v3348_v36  ;;  %v3377_v37 = vadd.f32 %v3327_v60, %v974_v11 }
 0x176   : > { %v2249_v33 = vmul.f32 -1.442695, %v3351_v45  ;;  %v2250_v26 = vmul.f32 -1.442695, %v3354_v46  ;;  %v2251_v42 = vmul.f32 -1.442695, %v3357_v47  ;;  %v3383_v43 = vadd.f32 %v3327_v60, %v975_v10 }
 0x177   : > { %2815 = vpow2.f32 %v2246_v16  ;;  %v2252_v32 = vmul.f32 -1.442695, %v3367_v22  ;;  %v3389_v13 = vadd.f32 %v3327_v60, %v976_v41  ;;  %v2253_v38 = vmul.f32 -1.442695, %v3371_v35  ;;  %v3425_v41 = vpop.permute.xlu1 %1187 }
 0x178   : > { %2817 = vpow2.f32 %v2248_v19  ;;  %v3395_v3 = vadd.f32 %v3327_v60, %v977_v44  ;;  %v2254_v8 = vmul.f32 -1.442695, %v3377_v37  ;;  %v3399_v39 = vadd.f32 %v3327_v60, %v978_v14 }
 0x179   : > { %2819 = vpow2.f32 %v2247_v20  ;;  %v2255_v17 = vmul.f32 -1.442695, %v3383_v43  ;;  %v2256_v61 = vmul.f32 -1.442695, %v3389_v13  ;;  %v979_v1 = vmul.f32 %v3323_v54, %v3198_v34 }
 0x17a   : > { %2821 = vpow2.f32 %v2249_v33  ;;  %v2257_v18 = vmul.f32 -1.442695, %v3395_v3  ;;  %v2258_v21 = vmul.f32 -1.442695, %v3399_v39  ;;  %v980_v30 = vmul.f32 %v3323_v54, %v3209_v23 }
 0x17b   : > { %2823 = vpow2.f32 %v2250_v26  ;;  %v3420_v16 = vadd.f32 %v3327_v60, %v979_v1 }
 0x17c   : > { %2825 = vpow2.f32 %v2251_v42  ;;  %v3423_v33 = vadd.f32 %v3327_v60, %v980_v30 }
 0x17d   : > { %2827 = vpow2.f32 %v2252_v32  ;;  %v2259_v32 = vmul.f32 -1.442695, %v3420_v16 }
 0x17e   : > { %2829 = vpow2.f32 %v2253_v38  ;;  %v3428_v38 = vpop.permute.xlu0 %1192 }
 0x17f   : > { %2831 = vpow2.f32 %v2254_v8 }
 0x180   : > { %2833 = vpow2.f32 %v2255_v17  ;;  %v2260_v17 = vmul.f32 -1.442695, %v3423_v33 }
 0x181   : > { %v2816_v27 = vpop.eup %2815  ;;  %2835 = vpow2.f32 %v2256_v61 }
 0x182   : > { %v2818_v31 = vpop.eup %2817  ;;  %v1072_v6 = vadd.f32 1.0, %v2816_v27  ;;  %2837 = vpow2.f32 %v2257_v18  ;;  %v982_v27 = vmul.f32 %v3323_v54, %v3231_v63 }
 0x183   : > { %v2820_v24 = vpop.eup %2819  ;;  %v1074_v48 = vadd.f32 1.0, %v2818_v31  ;;  %2839 = vpow2.f32 %v2258_v21  ;;  %v981_v21 = vmul.f32 %v3323_v54, %v3220_v53  ;;  %v983_v53 = vmul.f32 %v3323_v54, %v3239_v62 }
 0x184   : > { %v2822_v49 = vpop.eup %2821  ;;  %2841 = vrcp.f32 %v1072_v6  ;;  %v1073_v50 = vadd.f32 1.0, %v2820_v24  ;;  %v964_v24 = vmul.f32 %v3323_v54, %v3020_v28  ;;  %v3451_v28 = vadd.f32 %v3327_v60, %v982_v27 }
 0x185   : > { %v2824_v51 = vpop.eup %2823  ;;  %2843 = vrcp.f32 %v1074_v48  ;;  %v1075_v52 = vadd.f32 1.0, %v2822_v49  ;;  %v965_v48 = vmul.f32 %v3323_v54, %v3023_v29  ;;  %v3464_v54 = vadd.f32 %v3327_v60, %v983_v53  ;;  %v3532_v53 = vld [vmem:[%s4018_s5 + $0x78] sm:$0xff]  }
 0x186   : > { %v2826_v55 = vpop.eup %2825  ;;  %2845 = vrcp.f32 %v1073_v50  ;;  %v1076_v57 = vadd.f32 1.0, %v2824_v51  ;;  %v3443_v50 = vadd.f32 %v3327_v60, %v981_v21  ;;  %v3448_v51 = vpop.permute.xlu1 %1197  ;;  %v3454_v29 = vadd.f32 %v3327_v60, %v964_v24 }
 0x187   : > { %v2828_v59 = vpop.eup %2827  ;;  %2847 = vrcp.f32 %v1075_v52  ;;  %v1077_v0 = vadd.f32 1.0, %v2826_v55  ;;  %v3461_v62 = vadd.f32 %v3327_v60, %v965_v48  ;;  %v2801_v60 = vld [vmem:[%s4018_s5 + $0x50] sm:$0xff]  }
 0x188   : > { %v2830_v2 = vpop.eup %2829  ;;  %2849 = vrcp.f32 %v1076_v57  ;;  %v1078_v5 = vadd.f32 1.0, %v2828_v59  ;;  %2511 = vmatprep.subr.bf16.mxu1 %v2801_v60 }
 0x189   : > { %v2832_v58 = vpop.eup %2831  ;;  %2851 = vrcp.f32 %v1077_v0  ;;  %v1079_v11 = vadd.f32 1.0, %v2830_v2  ;;  %v3470_v0 = vpop.permute.xlu0 %1202  ;;  %2512 = vmatpush3.bf16.msra.mxu1 %v2801_v60 }
 0x18a   : > { %v2834_v19 = vpop.eup %2833  ;;  %2853 = vrcp.f32 %v1078_v5  ;;  %v1080_v20 = vadd.f32 1.0, %v2832_v58  ;;  %v3482_v5 = vld [vmem:[%s4018_s5 + $0x70] sm:$0xff]   ;;  %v2261_v58 = vmul.f32 -1.442695, %v3443_v50 }
 0x18b   : > { %v2836_v34 = vpop.eup %2835  ;;  %2855 = vrcp.f32 %v1079_v11  ;;  %v1081_v10 = vadd.f32 1.0, %v2834_v19  ;;  %v3489_v11 = vmul.f32 -1.442695, %v3451_v28  ;;  %2563 = vmatprep.subr.bf16.mxu0 %v3482_v5 }
 0x18c   : > { %v2838_v26 = vpop.eup %2837  ;;  %2857 = vrcp.f32 %v1080_v20  ;;  %v1082_v23 = vadd.f32 1.0, %v2836_v34  ;;  %2564 = vmatpush3.bf16.msra.mxu0 %v3482_v5 }
 0x18d   : > { %v2840_v42 = vpop.eup %2839  ;;  %2859 = vrcp.f32 %v1081_v10  ;;  %v1083_v44 = vadd.f32 1.0, %v2838_v26  ;;  %v3499_v10 = vmul.f32 -1.442695, %v3461_v62  ;;  %v3502_v26 = vmul.f32 -1.442695, %v3464_v54  ;;  %2565 = vmatprep.subr.bf16.mxu0 %v3532_v53 }
 0x18e   : > { %v2842_v14 = vpop.eup %2841  ;;  %2861 = vrcp.f32 %v1082_v23  ;;  %v1084_v8 = vadd.f32 1.0, %v2840_v42 }
 0x18f   : > { %v2844_v61 = vpop.eup %2843  ;;  %v1132_v18 = vmul.f32 %v2842_v14, %v3342_v7  ;;  %2863 = vrcp.f32 %v1083_v44 }
 0x190   : > { %v2846_v31 = vpop.eup %2845  ;;  %v1134_v6 = vmul.f32 %v2844_v61, %v3345_v40  ;;  %2865 = vrcp.f32 %v1084_v8  ;;  %v3511_v8 = vpop.permute.xlu1 %1207  ;;  %2566 = vmatpush3.bf16.msra.mxu0 %v3532_v53 }
 0x191   : > { %v2848_v49 = vpop.eup %2847  ;;  %v1133_v7 = vmul.f32 %v2846_v31, %v3348_v36  ;;  %2867 = vpow2.f32 %v2259_v32  ;;  %v3457_v52 = vmul.f32 %v3401_v15, %v1132_v18  ;;  %4025 = vst [vmem:[#allocation2_spill] sm:$0xff] %v3511_v8 }
 0x192   : > { %v2850_v63 = vpop.eup %2849  ;;  %v1135_v40 = vmul.f32 %v2848_v49, %v3351_v45  ;;  %2869 = vpow2.f32 %v2260_v17  ;;  %v3467_v57 = vmul.f32 %v3407_v25, %v1134_v6  ;;  %v3524_v49 = vpop.permute.xlu0 %1212 }
 0x193   : > { %v2852_v36 = vpop.eup %2851  ;;  %v1136_v55 = vmul.f32 %v2850_v63, %v3354_v46  ;;  %v3473_v2 = vmul.f32 %v3409_v9, %v1133_v7  ;;  %v4021_v42 = vrot.slane %v3457_v52, 1  ;;  %v2803_v7 = vld [vmem:[%s4018_s5 + $0x58] sm:$0xff]  }
 0x194   : > { %v2854_v45 = vpop.eup %2853  ;;  %v1137_v59 = vmul.f32 %v2852_v36, %v3357_v47  ;;  %v3485_v47 = vmul.f32 %v3411_v56, %v1135_v40  ;;  %v1297_v44 = vrot.slane %v3467_v57, 7  ;;  %v1358_v61 = vrot.slane %v3467_v57, 1  ;;  %2513 = vmatprep.subr.bf16.mxu1 %v2803_v7 }
 0x195   : > { %v2856_v1 = vpop.eup %2855  ;;  %v1138_v46 = vmul.f32 %v2854_v45, %v3367_v22  ;;  %v3492_v22 = vmul.f32 -1.442695, %v3454_v29  ;;  %v3496_v34 = vmul.f32 %v3415_v4, %v1136_v55  ;;  %v1295_v18 = vrot.slane %v3473_v2, 7  ;;  %2514 = vmatpush3.bf16.msra.mxu1 %v2803_v7 }
 0x196   : > { %v2858_v30 = vpop.eup %2857  ;;  %v3508_v32 = vmul.f32 %v3425_v41, %v1137_v59  ;;  %v1139_v14 = vmul.f32 %v2856_v1, %v3371_v35  ;;  %v1356_v21 = vrot.slane %v3473_v2, 1  ;;  %v1299_v6 = vrot.slane %v3485_v47, 7 }
 0x197   : > { %v2860_v19 = vpop.eup %2859  ;;  %v3518_v27 = vmul.f32 %v3428_v38, %v1138_v46  ;;  %v1360_v35 = vrot.slane %v3485_v47, 1  ;;  %v1140_v24 = vmul.f32 %v2858_v30, %v3377_v37  ;;  %v1301_v40 = vrot.slane %v3496_v34, 7 }
 0x198   : > { %v2862_v23 = vpop.eup %2861  ;;  %v1141_v48 = vmul.f32 %v2860_v19, %v3383_v43  ;;  %v1362_v36 = vrot.slane %v3496_v34, 1  ;;  %v1303_v45 = vrot.slane %v3508_v32, 7  ;;  %v1364_v59 = vrot.slane %v3508_v32, 1 }
 0x199   : > { %v2864_v17 = vpop.eup %2863  ;;  %v1142_v37 = vmul.f32 %v2862_v23, %v3389_v13  ;;  %v3541_v1 = vmul.f32 %v3448_v51, %v1139_v14  ;;  %v1305_v60 = vrot.slane %v3518_v27, 7  ;;  %v1366_v30 = vrot.slane %v3518_v27, 1  ;;  %v3554_v14 = vpop.permute.xlu1 %1217 }
 0x19a   : > { %v2866_v31 = vpop.eup %2865  ;;  %v1143_v43 = vmul.f32 %v2864_v17, %v3395_v3  ;;  %v3549_v3 = vmul.f32 %v3470_v0, %v1140_v24  ;;  %v3552_v23 = vmul.f32 %v3511_v8, %v1141_v48  ;;  %v2700_v17 = vpack.i.bf16 %v3485_v47, %v3467_v57 }
 0x19b   : > { %v2868_v63 = vpop.eup %2867  ;;  %v1144_v13 = vmul.f32 %v2866_v31, %v3399_v39  ;;  %v3561_v39 = vld [vmem:[%s4018_s5] sm:$0xff]   ;;  %v3569_v24 = vmul.f32 %v3524_v49, %v1142_v37  ;;  %v2695_v7 = vpack.i.bf16 %v3473_v2, %v3457_v52  ;;  %v1363_v37 = vsel %vm1350_vm4, %v1360_v35, %v1362_v36 }
 0x19c   : > { %v2870_v55 = vpop.eup %2869  ;;  %v1085_v46 = vadd.f32 1.0, %v2868_v63  ;;  %v3566_v31 = vld [vmem:[%s4018_s5 + $0x80] sm:$0xff]   ;;  %v3572_v48 = vmul.f32 %v3554_v14, %v1143_v43  ;;  %v3576_v63 = vpop.permute.xlu0 %1222  ;;  %2701 = vrot.lane.b32.xlu1 %v2700_v17, %s2909_s30  ;;  %v1357_v43 = vsel %vm1350_vm4, %v4021_v42, %v1356_v21  ;;  %2531 = vmatprep.subr.bf16.mxu1 %v3561_v39  ;;  %v1368_v17 = vrot.slane %v3541_v1, 1 }
 0x19d   : > { %v1086_v19 = vadd.f32 1.0, %v2870_v55  ;;  %4026 = vst [vmem:[#allocation3_spill] sm:$0xff] %v3576_v63  ;;  %v1361_v55 = vsel %vm1350_vm4, %v1358_v61, %v1360_v35  ;;  %2696 = vrot.lane.b32.xlu0 %v2695_v7, %s2909_s30  ;;  %2567 = vmatprep.subr.bf16.mxu0 %v3566_v31  ;;  %v1307_v35 = vrot.slane %v3541_v1, 7  ;;  %v1311_v7 = vrot.slane %v3552_v23, 7 }
 0x19e   : > { %2871 = vrcp.f32 %v1085_v46  ;;  %v3588_v46 = vmul.f32 %v3576_v63, %v1144_v13  ;;  %2568 = vmatpush3.bf16.msra.mxu0 %v3566_v31  ;;  %v1309_v13 = vrot.slane %v3549_v3, 7  ;;  %v3649_v20 = vsel %vm445_vm3, %v1303_v45, %v1305_v60 }
 0x19f   : > { %2873 = vrcp.f32 %v1086_v19  ;;  %v1359_v19 = vsel %vm1350_vm4, %v1356_v21, %v1358_v61  ;;  %v3605_v61 = vld [vmem:[%s4018_s5 + $0x88] sm:$0xff]   ;;  %v2710_v21 = vpack.i.bf16 %v3508_v32, %v3496_v34  ;;  %v3652_v57 = vsel %vm445_vm3, %v1305_v60, %v1307_v35 }
 0x1a0   : > { %2875 = vpow2.f32 %v2261_v58  ;;  %v2715_v58 = vpack.i.bf16 %v1363_v37, %v1361_v55  ;;  %v2705_v42 = vpack.i.bf16 %v1359_v19, %v1357_v43  ;;  %v1315_v37 = vrot.slane %v3572_v48, 7  ;;  %2569 = vmatprep.subr.bf16.mxu0 %v3605_v61 }
 0x1a1   : > { %2877 = vpow2.f32 %v3489_v11  ;;  %v4022_v11 = vrot.slane %v3549_v3, 1  ;;  %v1317_v43 = vrot.slane %v3588_v46, 7  ;;  %v2720_v19 = vpack.i.bf16 %v3541_v1, %v3518_v27 }
 0x1a2   : > { %2879 = vpow2.f32 %v3492_v22  ;;  %v1313_v22 = vrot.slane %v3569_v24, 7  ;;  %2716 = vrot.lane.b32.xlu1 %v2715_v58, %s2910_s10  ;;  %2706 = vrot.lane.b32.xlu0 %v2705_v42, %s2910_s10  ;;  %v3628_v58 = vsel %vm445_vm3, %v1295_v18, %v1297_v44  ;;  %v3635_v42 = vsel %vm445_vm3, %v1297_v44, %v1299_v6 }
 0x1a3   : > { %2881 = vpow2.f32 %v3499_v10  ;;  %v1376_v10 = vrot.slane %v3572_v48, 1  ;;  %v1371_v1 = vsel %vm1350_vm4, %v1368_v17, %v4022_v11  ;;  %v1365_v55 = vsel %vm1350_vm4, %v1362_v36, %v1364_v59  ;;  %2570 = vmatpush3.bf16.msra.mxu0 %v3605_v61 }
 0x1a4   : > { %2883 = vpow2.f32 %v3502_v26  ;;  %v1369_v26 = vsel %vm1350_vm4, %v1366_v30, %v1368_v17  ;;  %v1367_v17 = vsel %vm1350_vm4, %v1364_v59, %v1366_v30  ;;  %v3666_v36 = vsel %vm445_vm3, %v1299_v6, %v1301_v40 }
 0x1a5   : > { %v3673_v60 = vsel %vm445_vm3, %v1301_v40, %v1303_v45  ;;  %v4027_v27 = vrot.slane %v3457_v52, 7  ;;  %v3685_v6 = vsel %vm445_vm3, %v1311_v7, %v1313_v22  ;;  %v3688_v34 = vsel %vm445_vm3, %v1313_v22, %v1315_v37  ;;  %v3693_v40 = vpop.permute.xlu1 %1227 }
 0x1a6   : > { %2721 = vrot.lane.b32.xlu1 %v2720_v19, %s2909_s30  ;;  %2711 = vrot.lane.b32.xlu0 %v2710_v21, %s2909_s30  ;;  %v3691_v32 = vsel %vm445_vm3, %v1307_v35, %v1309_v13  ;;  %v2735_v45 = vpack.i.bf16 %v1371_v1, %v1369_v26  ;;  %v3697_v19 = vsel %vm445_vm3, %v1309_v13, %v1311_v7 }
 0x1a7   : > { %v3680_v59 = vsel %vm445_vm3, %v4027_v27, %v1295_v18  ;;  %v3704_v27 = vpop.permute.xlu0 %1232  ;;  %v2725_v11 = vpack.i.bf16 %v1367_v17, %v1365_v55  ;;  %v2740_v13 = vpack.i.bf16 %v3572_v48, %v3569_v24  ;;  %v2730_v1 = vpack.i.bf16 %v3552_v23, %v3549_v3 }
 0x1a8   : > { %v2872_v44 = vpop.eup %2871 }
 0x1a9   : > { %v2874_v30 = vpop.eup %2873  ;;  %v1145_v47 = vmul.f32 %v2872_v44, %v3420_v16  ;;  %v3700_v16 = vsel %vm445_vm3, %v1315_v37, %v1317_v43  ;;  %v1378_v44 = vrot.slane %v3588_v46, 1 }
 0x1aa   : > { %v2876_v2 = vpop.eup %2875  ;;  %v1146_v18 = vmul.f32 %v2874_v30, %v3423_v33  ;;  %2736 = vrot.lane.b32.xlu1 %v2735_v45, %s2910_s10  ;;  %2726 = vrot.lane.b32.xlu0 %v2725_v11, %s2910_s10  ;;  %v4030_v11 = vrot.slane %v3549_v3, 1  ;;  %v3739_v3 = vpop.permute.xlu1 %1237 }
 0x1ab   : > { %v2878_v21 = vpop.eup %2877  ;;  %v1265_v22 = vmul.f32 %v3693_v40, %v1145_v47  ;;  %v1087_v35 = vadd.f32 1.0, %v2876_v2  ;;  %v4028_v47 = vrot.slane %v3569_v24, 1 }
 0x1ac   : > { %v2880_v63 = vpop.eup %2879  ;;  %v3707_v8 = vmul.f32 %v3704_v27, %v1146_v18  ;;  %v1088_v33 = vadd.f32 1.0, %v2878_v21  ;;  %v1379_v18 = vsel %vm1350_vm4, %v1376_v10, %v1378_v44 }
 0x1ad   : > { %v2882_v7 = vpop.eup %2881  ;;  %v1319_v37 = vrot.slane %v1265_v22, 7  ;;  %2885 = vrcp.f32 %v1087_v35  ;;  %v1070_v26 = vadd.f32 1.0, %v2880_v63  ;;  %v1377_v2 = vsel %vm1350_vm4, %v4028_v47, %v1376_v10 }
 0x1ae   : > { %v2884_v55 = vpop.eup %2883  ;;  %v1321_v17 = vrot.slane %v3707_v8, 7  ;;  %2887 = vrcp.f32 %v1088_v33  ;;  %v1071_v30 = vadd.f32 1.0, %v2882_v7  ;;  %v4029_v63 = vrot.slane %v3552_v23, 1  ;;  %2741 = vrot.lane.b32.xlu1 %v2740_v13, %s2909_s30  ;;  %2731 = vrot.lane.b32.xlu0 %v2730_v1, %s2909_s30 }
 0x1af   : > { %2889 = vrcp.f32 %v1070_v26  ;;  %v1089_v48 = vadd.f32 1.0, %v2884_v55  ;;  %v4031_v21 = vmov %v4028_v47  ;;  %v3737_v10 = vsel %vm445_vm3, %v1317_v43, %v1319_v37  ;;  %v1243_v55 = vpop.permute.xlu0 %1242  ;;  %v1153_v47 = vpop.permute.xlu1 %1152 }
 0x1b0   : > { %v1373_v45 = vsel %vm1350_vm4, %v4030_v11, %v4029_v63  ;;  %2891 = vrcp.f32 %v1071_v30  ;;  %v4032_v35 = vmov %v4029_v63  ;;  %v3734_v7 = vsel %vm445_vm3, %v1319_v37, %v1321_v17 }
 0x1b1   : > { %v1375_v33 = vsel %vm1350_vm4, %v4032_v35, %v4031_v21  ;;  %2893 = vrcp.f32 %v1089_v48  ;;  %v2755_v13 = vpack.i.bf16 %v1379_v18, %v1377_v2  ;;  %v1380_v24 = vrot.slane %v1265_v22, 1 }
 0x1b2   : > { %v2745_v26 = vpack.i.bf16 %v1375_v33, %v1373_v45  ;;  %v1382_v23 = vrot.slane %v3707_v8, 1  ;;  %v2750_v43 = vpack.i.bf16 %v1265_v22, %v3588_v46 }
 0x1b3   : > { %2756 = vrot.lane.b32.xlu1 %v2755_v13, %s2910_s10  ;;  %v1381_v48 = vsel %vm1350_vm4, %v1378_v44, %v1380_v24 }
 0x1b4   : > { %2746 = vrot.lane.b32.xlu0 %v2745_v26, %s2910_s10  ;;  %v1383_v1 = vsel %vm1350_vm4, %v1380_v24, %v1382_v23  ;;  %v1158_v26 = vpop.permute.xlu0 %1157 }
 0x1b5   : > { %v2765_v22 = vpack.i.bf16 %v1383_v1, %v1381_v48 }
 0x1b7   : > { %v2886_v30 = vpop.eup %2885 }
 0x1b8   : > { %v2888_v37 = vpop.eup %2887  ;;  %v1147_v63 = vmul.f32 %v2886_v30, %v3443_v50  ;;  %2751 = vrot.lane.b32.xlu0 %v2750_v43, %s2909_s30 }
 0x1b9   : > { %v2890_v2 = vpop.eup %2889  ;;  %v1148_v18 = vmul.f32 %v2888_v37, %v3451_v28  ;;  %v1248_v37 = vpop.permute.xlu1 %1247 }
 0x1ba   : > { %v2892_v11 = vpop.eup %2891  ;;  %v1267_v45 = vmul.f32 %v3739_v3, %v1147_v63  ;;  %v1130_v21 = vmul.f32 %v2890_v2, %v3454_v29 }
 0x1bb   : > { %v2894_v35 = vpop.eup %2893  ;;  %v1268_v33 = vmul.f32 %v1243_v55, %v1148_v18  ;;  %v1131_v46 = vmul.f32 %v2892_v11, %v3461_v62 }
 0x1bc   : > { %v1323_v50 = vrot.slane %v1267_v45, 7  ;;  %v1384_v13 = vrot.slane %v1267_v45, 1  ;;  %v3754_v44 = vmul.f32 %v1153_v47, %v1130_v21  ;;  %v1149_v24 = vmul.f32 %v2894_v35, %v3464_v54  ;;  %2766 = vrot.lane.b32.xlu0 %v2765_v22, %s2910_s10 }
 0x1bd   : > { %v1325_v28 = vrot.slane %v1268_v33, 7  ;;  %v1386_v30 = vrot.slane %v1268_v33, 1  ;;  %v1251_v43 = vmul.f32 %v1158_v26, %v1131_v46  ;;  %v2760_v63 = vpack.i.bf16 %v1267_v45, %v3707_v8 }
 0x1be   : > { %v1290_v29 = vrot.slane %v3754_v44, 7  ;;  %v1351_v62 = vrot.slane %v3754_v44, 1  ;;  %v1269_v55 = vmul.f32 %v1248_v37, %v1149_v24  ;;  %v1385_v48 = vsel %vm1350_vm4, %v1382_v23, %v1384_v13 }
 0x1bf   : > { %v1291_v47 = vrot.slane %v1251_v43, 7  ;;  %v1352_v1 = vrot.slane %v1251_v43, 1  ;;  %2761 = vrot.lane.b32.xlu1 %v2760_v63, %s2909_s30  ;;  %v1387_v54 = vsel %vm1350_vm4, %v1384_v13, %v1386_v30  ;;  %v2775_v2 = vpack.i.bf16 %v1251_v43, %v3754_v44 }
 0x1c0   : > { %v1327_v18 = vrot.slane %v1269_v55, 7  ;;  %v2770_v11 = vpack.i.bf16 %v1387_v54, %v1385_v48  ;;  %v4033_v45 = vrot.slane %v3457_v52, 7  ;;  %v1388_v35 = vrot.slane %v1269_v55, 1 }
 0x1c1   : > { %2776 = vrot.lane.b32.xlu0 %v2775_v2, %s2909_s30  ;;  %v1353_v46 = vsel %vm1350_vm4, %v1351_v62, %v1352_v1  ;;  %v4034_v23 = vrot.slane %v3457_v52, 1  ;;  %v3776_v13 = vsel %vm445_vm3, %v1321_v17, %v1323_v50  ;;  %v2785_v26 = vpack.i.bf16 %v1269_v55, %v1268_v33 }
 0x1c2   : > { %v1294_v21 = vsel %vm445_vm3, %v1291_v47, %v4033_v45  ;;  %v3782_v24 = vsel %vm445_vm3, %v1290_v29, %v1291_v47  ;;  %v3785_v43 = vsel %vm445_vm3, %v1323_v50, %v1325_v28  ;;  %v3788_v52 = vsel %vm445_vm3, %v1325_v28, %v1327_v18 }
 0x1c3   : > { %v1355_v22 = vsel %vm1350_vm4, %v1352_v1, %v4034_v23  ;;  %2771 = vrot.lane.b32.xlu1 %v2770_v11, %s2910_s10  ;;  %v1389_v8 = vsel %vm1350_vm4, %v1386_v30, %v1388_v35  ;;  %v1391_v17 = vsel %vm1350_vm4, %v1388_v35, 0.0 }
 0x1c4   : > { %v2780_v37 = vpack.i.bf16 %v1355_v22, %v1353_v46  ;;  %v2790_v33 = vpack.i.bf16 %v1391_v17, %v1389_v8 }
 0x1c5   : > { %2786 = vrot.lane.b32.xlu0 %v2785_v26, %s2909_s30  ;;  %s287_s30 = scalar_lea.vmem %s4019_s6, %s4038_s25 }
 0x1c7   : > { %2781 = vrot.lane.b32.xlu1 %v2780_v37, %s2910_s10 }
 0x1cb   : > { %2791 = vrot.lane.b32.xlu1 %v2790_v33, %s2910_s10 }
 0x20e   : > { %v2702_v63 = vpop.permute.xlu1 %2701 }
 0x20f   : > { %v2697_v62 = vpop.permute.xlu0 %2696  ;;  %v2704_v55 = vunpack.i.h.bf16 %v2702_v63  ;;  %v2703_v50 = vunpack.i.l.bf16 %v2702_v63 }
 0x210   : > { %v2699_v48 = vunpack.i.h.bf16 %v2697_v62  ;;  %v2698_v47 = vunpack.i.l.bf16 %v2697_v62 }
 0x211   : > { %v1517_v30 = vsel %vm334_vm1, %v3628_v58, %v2703_v50  ;;  %v1518_v18 = vsel %vm334_vm1, %v3635_v42, %v2704_v55 }
 0x212   : > { %v1515_v23 = vsel %vm334_vm1, %v1294_v21, %v2698_v47  ;;  %v1516_v22 = vsel %vm334_vm1, %v3680_v59, %v2699_v48  ;;  %v2808_v21 = vld [vmem:[%s4018_s5 + $0x8] sm:$0xff]  }
 0x214   : > { %v2717_v28 = vpop.permute.xlu1 %2716  ;;  %v2707_v2 = vpop.permute.xlu0 %2706 }
 0x215   : > { %v2719_v1 = vunpack.i.h.bf16 %v2717_v28  ;;  %v2718_v54 = vunpack.i.l.bf16 %v2717_v28  ;;  %v2709_v11 = vunpack.i.h.bf16 %v2707_v2  ;;  %v2708_v45 = vunpack.i.l.bf16 %v2707_v2 }
 0x217   : > { %v1538_v35 = vsel %vm1533_vm5, %v1517_v30, %v2718_v54  ;;  %v1539_v46 = vsel %vm1533_vm5, %v1518_v18, %v2719_v1  ;;  %v1536_v8 = vsel %vm1533_vm5, %v1515_v23, %v2708_v45  ;;  %v1537_v58 = vsel %vm1533_vm5, %v1516_v22, %v2709_v11  ;;  %v2809_v30 = vld [vmem:[%s4018_s5 + $0x10] sm:$0xff]  }
 0x218   : > { %v3804_v26 = vpack.c.bf16 %v1539_v46, %v1538_v35  ;;  %v2722_v37 = vpop.permute.xlu1 %2721  ;;  %v2712_v17 = vpop.permute.xlu0 %2711  ;;  %v3808_v42 = vpack.c.bf16 %v1537_v58, %v1536_v8 }
 0x219   : > { %v2724_v33 = vunpack.i.h.bf16 %v2722_v37  ;;  %v2723_v63 = vunpack.i.l.bf16 %v2722_v37  ;;  %v2714_v59 = vunpack.i.h.bf16 %v2712_v17  ;;  %v2713_v62 = vunpack.i.l.bf16 %v2712_v17 }
 0x21a   : > { %2571 = vmatprep.mubr.msk.bf16.mxu0 %vm1625_vm6, %v3804_v26  ;;  %2515 = vmatprep.mubr.msk.bf16.mxu1 %vm1625_vm6, %v3808_v42 }
 0x21b   : > { %2516 = vmatmul.mubr.msk.bf16.vlgmr.msra.gmra.mrb[0].mxu1 %vm1625_vm6, %v3804_v26  ;;  %v1522_v28 = vsel %vm334_vm1, %v3652_v57, %v2724_v33  ;;  %v1521_v1 = vsel %vm334_vm1, %v3649_v20, %v2723_v63  ;;  %v1520_v18 = vsel %vm334_vm1, %v3673_v60, %v2714_v59 }
 0x21c   : > { %v2737_v55 = vpop.permute.xlu1 %2736  ;;  %2532 = vmatpush3.bf16.msra.mxu1 %v3561_v39  ;;  %v2727_v47 = vpop.permute.xlu0 %2726  ;;  %v1519_v39 = vsel %vm334_vm1, %v3666_v36, %v2713_v62  ;;  %v2810_v36 = vld [vmem:[%s4018_s5 + $0x18] sm:$0xff]  }
 0x21d   : > { %v2739_v50 = vunpack.i.h.bf16 %v2737_v55  ;;  %v2738_v48 = vunpack.i.l.bf16 %v2737_v55  ;;  %v2729_v54 = vunpack.i.h.bf16 %v2727_v47  ;;  %v2728_v2 = vunpack.i.l.bf16 %v2727_v47  ;;  %2533 = vmatprep.subr.bf16.mxu1 %v2808_v21 }
 0x21f   : > { %v1542_v11 = vsel %vm1533_vm5, %v1521_v1, %v2738_v48  ;;  %v1543_v57 = vsel %vm1533_vm5, %v1522_v28, %v2739_v50  ;;  %v1540_v20 = vsel %vm1533_vm5, %v1519_v39, %v2728_v2  ;;  %v1541_v35 = vsel %vm1533_vm5, %v1520_v18, %v2729_v54  ;;  %v2811_v48 = vld [vmem:[%s4018_s5 + $0x20] sm:$0xff]  }
 0x220   : > { %v3833_v45 = vpack.c.bf16 %v1543_v57, %v1542_v11  ;;  %v2742_v46 = vpop.permute.xlu1 %2741  ;;  %v3837_v23 = vpack.c.bf16 %v1541_v35, %v1540_v20  ;;  %v2732_v22 = vpop.permute.xlu0 %2731  ;;  %2534 = vmatpush3.bf16.msra.mxu1 %v2808_v21 }
 0x221   : > { %v2744_v37 = vunpack.i.h.bf16 %v2742_v46  ;;  %v2743_v60 = vunpack.i.l.bf16 %v2742_v46  ;;  %2535 = vmatprep.subr.bf16.mxu1 %v2809_v30  ;;  %v2734_v8 = vunpack.i.h.bf16 %v2732_v22  ;;  %v2733_v58 = vunpack.i.l.bf16 %v2732_v22 }
 0x222   : > { %2519 = vmatprep.mubr.msk.bf16.mxu1 %vm1625_vm6, %v3837_v23  ;;  %2572 = vmatmul.mubr.msk.bf16.vlgmr.msra.gmra.mrb[4].mxu0 %vm1625_vm6, %v3837_v23 }
 0x223   : > { %2520 = vmatmul.mubr.msk.bf16.gmra.mrb[4].mxu1 %vm1625_vm6, %v3833_v45  ;;  %2575 = vmatprep.mubr.msk.bf16.mxu0 %vm1625_vm6, %v3833_v45  ;;  %v1526_v59 = vsel %vm334_vm1, %v3688_v34, %v2744_v37  ;;  %v1525_v62 = vsel %vm334_vm1, %v3685_v6, %v2743_v60  ;;  %v1524_v47 = vsel %vm334_vm1, %v3697_v19, %v2734_v8  ;;  %v2812_v19 = vld [vmem:[%s4018_s5 + $0x28] sm:$0xff]  }
 0x224   : > { %2536 = vmatpush3.bf16.msra.mxu1 %v2809_v30  ;;  %v1523_v28 = vsel %vm334_vm1, %v3691_v32, %v2733_v58 }
 0x225   : > { %v2757_v17 = vpop.permute.xlu1 %2756  ;;  %2537 = vmatprep.subr.bf16.mxu1 %v2810_v36 }
 0x226   : > { %v2759_v33 = vunpack.i.h.bf16 %v2757_v17  ;;  %v2758_v63 = vunpack.i.l.bf16 %v2757_v17  ;;  %v2747_v21 = vpop.permute.xlu0 %2746 }
 0x227   : > { %v2749_v55 = vunpack.i.h.bf16 %v2747_v21  ;;  %v2748_v50 = vunpack.i.l.bf16 %v2747_v21 }
 0x228   : > { %v1546_v1 = vsel %vm1533_vm5, %v1525_v62, %v2758_v63  ;;  %v1547_v34 = vsel %vm1533_vm5, %v1526_v59, %v2759_v33  ;;  %2538 = vmatpush3.bf16.msra.mxu1 %v2810_v36  ;;  %v1349_v59 = vsel %vm445_vm3, 0.0, %v1290_v29 }
 0x229   : > { %v3863_v54 = vpack.c.bf16 %v1547_v34, %v1546_v1  ;;  %v1544_v6 = vsel %vm1533_vm5, %v1523_v28, %v2748_v50  ;;  %v1545_v2 = vsel %vm1533_vm5, %v1524_v47, %v2749_v55  ;;  %2539 = vmatprep.subr.bf16.mxu1 %v2811_v48 }
 0x22a   : > { %v3867_v30 = vpack.c.bf16 %v1545_v2, %v1544_v6  ;;  %v2752_v18 = vpop.permute.xlu0 %2751 }
 0x22b   : > { %v2754_v32 = vunpack.i.h.bf16 %v2752_v18  ;;  %v2753_v39 = vunpack.i.l.bf16 %v2752_v18 }
 0x22c   : > { %2523 = vmatprep.mubr.msk.bf16.mxu1 %vm1625_vm6, %v3867_v30  ;;  %2576 = vmatmul.mubr.msk.bf16.gmra.mrb[8].mxu0 %vm1625_vm6, %v3867_v30 }
 0x22d   : > { %2524 = vmatmul.mubr.msk.bf16.gmra.mrb[8].mxu1 %vm1625_vm6, %v3863_v54  ;;  %2579 = vmatprep.mubr.msk.bf16.mxu0 %vm1625_vm6, %v3863_v54  ;;  %v1528_v46 = vsel %vm334_vm1, %v3737_v10, %v2754_v32  ;;  %v1527_v22 = vsel %vm334_vm1, %v3700_v16, %v2753_v39 }
 0x22e   : > { %v2767_v11 = vpop.permute.xlu0 %2766  ;;  %2540 = vmatpush3.bf16.msra.mxu1 %v2811_v48 }
 0x22f   : > { %v2769_v57 = vunpack.i.h.bf16 %v2767_v11  ;;  %v2768_v20 = vunpack.i.l.bf16 %v2767_v11  ;;  %2541 = vmatprep.subr.bf16.mxu1 %v2812_v19 }
 0x231   : > { %v2762_v35 = vpop.permute.xlu1 %2761  ;;  %v1548_v37 = vsel %vm1533_vm5, %v1527_v22, %v2768_v20  ;;  %v1549_v60 = vsel %vm1533_vm5, %v1528_v46, %v2769_v57 }
 0x232   : > { %v2764_v36 = vunpack.i.h.bf16 %v2762_v35  ;;  %v2763_v8 = vunpack.i.l.bf16 %v2762_v35  ;;  %v1561_v58 = vpack.c.bf16 %v1549_v60, %v1548_v37  ;;  %2542 = vmatpush3.bf16.msra.mxu1 %v2812_v19  ;;  %v3944_v60 = vld [vmem:[%s287_s30] ss:$0 sm:$0xff] }
 0x233   : > { %v2777_v17 = vpop.permute.xlu0 %2776  ;;  %2623 = vmatprep.subr.bf16.mxu1 %v3304_v12 }
 0x234   : > { %v2778_v33 = vunpack.i.l.bf16 %v2777_v17  ;;  %v2779_v21 = vunpack.i.h.bf16 %v2777_v17  ;;  %2527 = vmatprep.mubr.msk.bf16.mxu1 %vm1625_vm6, %v1561_v58  ;;  %2580 = vmatmul.mubr.msk.bf16.gmra.mrb[12].mxu0 %vm1625_vm6, %v1561_v58  ;;  %v1530_v62 = vsel %vm334_vm1, %v3776_v13, %v2764_v36  ;;  %v1529_v55 = vsel %vm334_vm1, %v3734_v7, %v2763_v8 }
 0x235   : > { %v2772_v63 = vpop.permute.xlu1 %2771 }
 0x236   : > { %v2774_v10 = vunpack.i.h.bf16 %v2772_v63  ;;  %v2773_v16 = vunpack.i.l.bf16 %v2772_v63  ;;  %v1513_v47 = vsel %vm334_vm1, %v1349_v59, %v2778_v33  ;;  %v1514_v1 = vsel %vm334_vm1, %v3782_v24, %v2779_v21 }
 0x237   : > { %v2787_v50 = vpop.permute.xlu0 %2786 }
 0x238   : > { %v1550_v12 = vsel %vm1533_vm5, %v1529_v55, %v2773_v16  ;;  %v1551_v48 = vsel %vm1533_vm5, %v1530_v62, %v2774_v10  ;;  %v2789_v34 = vunpack.i.h.bf16 %v2787_v50  ;;  %v2788_v29 = vunpack.i.l.bf16 %v2787_v50 }
 0x239   : > { %v1562_v28 = vpack.c.bf16 %v1551_v48, %v1550_v12  ;;  %v2782_v44 = vpop.permute.xlu1 %2781 }
 0x23a   : > { %v2784_v6 = vunpack.i.h.bf16 %v2782_v44  ;;  %v2783_v2 = vunpack.i.l.bf16 %v2782_v44  ;;  %v1532_v19 = vsel %vm334_vm1, %v3788_v52, %v2789_v34  ;;  %v1531_v32 = vsel %vm334_vm1, %v3785_v43, %v2788_v29  ;;  %v2895_v52 = vld [vmem:[%s4018_s5 + $0x60] sm:$0xff]   ;;  %v2896_v43 = vld [vmem:[%s4018_s5 + $0x68] sm:$0xff]  }
 0x23b   : > { %2528 = vmatmul.mubr.msk.bf16.gmra.mrb[12].mxu1 %vm1625_vm6, %v1562_v28 }
 0x23c   : > { %v1534_v7 = vsel %vm1533_vm5, %v1513_v47, %v2783_v2  ;;  %v1535_v13 = vsel %vm1533_vm5, %v1514_v1, %v2784_v6 }
 0x23d   : > { %v1554_v18 = vpack.c.bf16 %v1535_v13, %v1534_v7  ;;  %v2792_v39 = vpop.permute.xlu1 %2791 }
 0x23e   : > { %v2794_v24 = vunpack.i.h.bf16 %v2792_v39  ;;  %v2793_v11 = vunpack.i.l.bf16 %v2792_v39 }
 0x23f   : > { %2543 = vmatprep.mubr.msk.bf16.mxu1 %vm1625_vm6, %v1554_v18 }
 0x240   : > { %v1553_v57 = vsel %vm1533_vm5, %v1532_v19, %v2794_v24  ;;  %v1552_v20 = vsel %vm1533_vm5, %v1531_v32, %v2793_v11 }
 0x241   : > { %v1563_v35 = vpack.c.bf16 %v1553_v57, %v1552_v20 }
 0x243   : > { %2544 = vmatmul.mubr.msk.bf16.vlgmr.msra.gmra.mrb[0].mxu1 %vm1625_vm6, %v3808_v42 }
 0x244   : > { %2629 = vmatpush3.bf16.msra.mxu1 %v2895_v52  ;;  %2547 = vmatprep.mubr.msk.bf16.mxu1 %vm1625_vm6, %v3804_v26 }
 0x245   : > { %2624 = vmatprep.subr.bf16.mxu1 %v2896_v43 }
 0x248   : > { %2630 = vmatpush3.bf16.msra.mxu1 %v2896_v43 }
 0x249   : > { %2625 = vmatprep.subr.bf16.mxu1 %v3482_v5 }
 0x24b   : > { %2548 = vmatmul.mubr.msk.bf16.gmra.mrb[4].mxu1 %vm1625_vm6, %v3837_v23 }
 0x24c   : > { %2551 = vmatprep.mubr.msk.bf16.mxu1 %vm1625_vm6, %v3833_v45  ;;  %2631 = vmatpush3.bf16.msra.mxu1 %v3482_v5 }
 0x24d   : > { %2626 = vmatprep.subr.bf16.mxu1 %v3532_v53 }
 0x250   : > { %2632 = vmatpush3.bf16.msra.mxu1 %v3532_v53 }
 0x251   : > { %2627 = vmatprep.subr.bf16.mxu1 %v3566_v31 }
 0x253   : > { %2552 = vmatmul.mubr.msk.bf16.gmra.mrb[8].mxu1 %vm1625_vm6, %v3867_v30 }
 0x254   : > { %2555 = vmatprep.mubr.msk.bf16.mxu1 %vm1625_vm6, %v3863_v54  ;;  %2633 = vmatpush3.bf16.msra.mxu1 %v3566_v31 }
 0x255   : > { %2628 = vmatprep.subr.bf16.mxu1 %v3605_v61 }
 0x258   : > { %2634 = vmatpush3.bf16.msra.mxu1 %v3605_v61 }
 0x25b   : > { %2556 = vmatmul.mubr.msk.bf16.gmra.mrb[12].mxu1 %vm1625_vm6, %v1561_v58 }
 0x25c   : > { %2583 = vmatprep.mubr.msk.bf16.mxu1 %vm1625_vm6, %v1562_v28 }
 0x267   : > { %2584 = vmatmul.mubr.msk.bf16.vlgmr.msra.gmra.mrb[12].mxu1 %vm1625_vm6, %v1563_v35 }
 0x2f5   : > { %v2573_v5 = vpop.f32.mrb[4].mxu0 }
 0x2f6   : > { %v1969_v53 = vpop.f32.mrb[5].mxu0 }
 0x2f7   : > { %v2574_v26 = vpop.f32.mrb[6].mxu0 }
 0x2f8   : > { %v1972_v42 = vpop.f32.mrb[7].mxu0 }
 0x2ff   : > { %v2577_v45 = vpop.f32.mrb[8].mxu0 }
 0x300   : > { %v1985_v23 = vpop.f32.mrb[9].mxu0 }
 0x301   : > { %v2578_v54 = vpop.f32.mrb[10].mxu0 }
 0x302   : > { %v1988_v30 = vpop.f32.mrb[11].mxu0 }
 0x307   : > { %v2581_v31 = vpop.f32.mrb[12].mxu0 }
 0x308   : > { %v2001_v46 = vpop.f32.mrb[13].mxu0 }
 0x309   : > { %v2582_v22 = vpop.f32.mrb[14].mxu0 }
 0x30a   : > { %v2004_v37 = vpop.f32.mrb[15].mxu0 }
 0x316   : > { %v2545_v61 = vpop.f32.mrb[0].mxu1 }
 0x317   : > { %v2635_v36 = vadd.f32 %v2573_v5, %v2545_v61  ;;  %v1820_v8 = vpop.f32.mrb[1].mxu1 }
 0x318   : > { %v2636_v58 = vadd.f32 %v1969_v53, %v1820_v8  ;;  %v2546_v17 = vpop.f32.mrb[2].mxu1 }
 0x319   : > { %v2057_v33 = vadd.f32 %v2635_v36, %v3944_v60  ;;  %v2637_v63 = vadd.f32 %v2574_v26, %v2546_v17  ;;  %v1823_v21 = vpop.f32.mrb[3].mxu1  ;;  %v4035_v36 = vld [vmem:[#allocation2_spill] sm:$0xff] }
 0x31a   : > { %v2055_v10 = vadd.f32 %v2636_v58, %v3944_v60  ;;  %v2638_v16 = vadd.f32 %v1972_v42, %v1823_v21 }
 0x31b   : > { %v2073_v59 = vmul.f32 %v2057_v33, %v3407_v25  ;;  %v2058_v62 = vadd.f32 %v2637_v63, %v3944_v60 }
 0x31c   : > { %v2071_v55 = vmul.f32 %v2055_v10, %v3401_v15  ;;  %v2056_v50 = vadd.f32 %v2638_v16, %v3944_v60  ;;  %v4036_v16 = vld [vmem:[#allocation3_spill] sm:$0xff] }
 0x31d   : > { %v2351_v12 = vpack.c.bf16 %v2073_v59, %v2073_v59  ;;  %v2074_v48 = vmul.f32 %v2058_v62, %v3411_v56 }
 0x31e   : > { %v2349_v47 = vpack.c.bf16 %v2071_v55, %v2071_v55  ;;  %v2072_v28 = vmul.f32 %v2056_v50, %v3409_v9  ;;  %v2549_v1 = vpop.f32.mrb[4].mxu1 }
 0x31f   : > { %2158 = vst.msk [vmem:[%s3037_s28 + $0x10] sm:$0xf] %vm2087_vm2, %v2351_v12  ;;  %v2352_v44 = vpack.c.bf16 %v2074_v48, %v2074_v48  ;;  %v2639_v34 = vadd.f32 %v2577_v45, %v2549_v1  ;;  %v1836_v25 = vpop.f32.mrb[5].mxu1 }
 0x320   : > { %2156 = vst.msk [vmem:[%s3037_s28 + $0x8] sm:$0xf] %vm2087_vm2, %v2349_v47  ;;  %v2350_v29 = vpack.c.bf16 %v2072_v28, %v2072_v28  ;;  %v2640_v6 = vadd.f32 %v1985_v23, %v1836_v25  ;;  %v2550_v15 = vpop.f32.mrb[6].mxu1 }
 0x321   : > { %2159 = vst.msk [vmem:[%s3037_s28 + $0x14] sm:$0xf] %vm2087_vm2, %v2352_v44  ;;  %v2061_v56 = vadd.f32 %v2639_v34, %v3944_v60  ;;  %v2641_v2 = vadd.f32 %v2578_v54, %v2550_v15  ;;  %v1839_v7 = vpop.f32.mrb[7].mxu1 }
 0x322   : > { %2157 = vst.msk [vmem:[%s3037_s28 + $0xc] sm:$0xf] %vm2087_vm2, %v2350_v29  ;;  %v2059_v9 = vadd.f32 %v2640_v6, %v3944_v60  ;;  %v2642_v13 = vadd.f32 %v1988_v30, %v1839_v7 }
 0x323   : > { %v2077_v18 = vmul.f32 %v2061_v56, %v3428_v38  ;;  %v2062_v19 = vadd.f32 %v2641_v2, %v3944_v60 }
 0x324   : > { %v2075_v32 = vmul.f32 %v2059_v9, %v3415_v4  ;;  %v2060_v39 = vadd.f32 %v2642_v13, %v3944_v60 }
 0x325   : > { %v2355_v24 = vpack.c.bf16 %v2077_v18, %v2077_v18  ;;  %v2078_v11 = vmul.f32 %v2062_v19, %v3448_v51 }
 0x326   : > { %v2353_v57 = vpack.c.bf16 %v2075_v32, %v2075_v32  ;;  %v2076_v20 = vmul.f32 %v2060_v39, %v3425_v41  ;;  %v2553_v35 = vpop.f32.mrb[8].mxu1 }
 0x327   : > { %2162 = vst.msk [vmem:[%s3037_s28 + $0x20] sm:$0xf] %vm2087_vm2, %v2355_v24  ;;  %v2356_v52 = vpack.c.bf16 %v2078_v11, %v2078_v11  ;;  %v2643_v43 = vadd.f32 %v2581_v31, %v2553_v35  ;;  %v1852_v38 = vpop.f32.mrb[9].mxu1 }
 0x328   : > { %2160 = vst.msk [vmem:[%s3037_s28 + $0x18] sm:$0xf] %vm2087_vm2, %v2353_v57  ;;  %v2354_v5 = vpack.c.bf16 %v2076_v20, %v2076_v20  ;;  %v2644_v53 = vadd.f32 %v2001_v46, %v1852_v38  ;;  %v2554_v4 = vpop.f32.mrb[10].mxu1 }
 0x329   : > { %2163 = vst.msk [vmem:[%s3037_s28 + $0x24] sm:$0xf] %vm2087_vm2, %v2356_v52  ;;  %v2065_v51 = vadd.f32 %v2643_v43, %v3944_v60  ;;  %v2645_v26 = vadd.f32 %v2582_v22, %v2554_v4  ;;  %v1855_v42 = vpop.f32.mrb[11].mxu1 }
 0x32a   : > { %2161 = vst.msk [vmem:[%s3037_s28 + $0x1c] sm:$0xf] %vm2087_vm2, %v2354_v5  ;;  %v2063_v41 = vadd.f32 %v2644_v53, %v3944_v60  ;;  %v2646_v45 = vadd.f32 %v2004_v37, %v1855_v42 }
 0x32b   : > { %v2081_v23 = vmul.f32 %v2065_v51, %v3524_v49  ;;  %v2066_v54 = vadd.f32 %v2645_v26, %v3944_v60 }
 0x32c   : > { %v2079_v30 = vmul.f32 %v2063_v41, %v3470_v0  ;;  %v2064_v31 = vadd.f32 %v2646_v45, %v3944_v60 }
 0x32d   : > { %v2359_v46 = vpack.c.bf16 %v2081_v23, %v2081_v23  ;;  %v2082_v61 = vmul.f32 %v2066_v54, %v3554_v14 }
 0x32e   : > { %v2357_v22 = vpack.c.bf16 %v2079_v30, %v2079_v30  ;;  %v2080_v8 = vmul.f32 %v2064_v31, %v4035_v36 }
 0x32f   : > { %2166 = vst.msk [vmem:[%s3037_s28 + $0x30] sm:$0xf] %vm2087_vm2, %v2359_v46  ;;  %v2360_v58 = vpack.c.bf16 %v2082_v61, %v2082_v61 }
 0x330   : > { %2164 = vst.msk [vmem:[%s3037_s28 + $0x28] sm:$0xf] %vm2087_vm2, %v2357_v22  ;;  %v2358_v37 = vpack.c.bf16 %v2080_v8, %v2080_v8 }
 0x331   : > { %2167 = vst.msk [vmem:[%s3037_s28 + $0x34] sm:$0xf] %vm2087_vm2, %v2360_v58 }
 0x332   : > { %2165 = vst.msk [vmem:[%s3037_s28 + $0x2c] sm:$0xf] %vm2087_vm2, %v2358_v37 }
 0x33a   : > { %v2585_v0 = vpop.f32.mrb[12].mxu1 }
 0x33b   : > { %v2069_v49 = vadd.f32 %v2585_v0, %v3944_v60  ;;  %v2017_v17 = vpop.f32.mrb[13].mxu1 }
 0x33c   : > { %v2067_v14 = vadd.f32 %v3944_v60, %v2017_v17  ;;  %v2586_v33 = vpop.f32.mrb[14].mxu1 }
 0x33d   : > { %v2085_v63 = vmul.f32 %v2069_v49, %v3704_v27  ;;  %v2070_v21 = vadd.f32 %v2586_v33, %v3944_v60  ;;  %v2020_v10 = vpop.f32.mrb[15].mxu1 }
 0x33e   : > { %v2083_v59 = vmul.f32 %v2067_v14, %v4036_v16  ;;  %v2068_v62 = vadd.f32 %v3944_v60, %v2020_v10 }
 0x33f   : > { %v2363_v55 = vpack.c.bf16 %v2085_v63, %v2085_v63  ;;  %v2086_v50 = vmul.f32 %v2070_v21, %v3739_v3 }
 0x340   : > { %v2361_v12 = vpack.c.bf16 %v2083_v59, %v2083_v59  ;;  %v2084_v48 = vmul.f32 %v2068_v62, %v3693_v40 }
 0x341   : > { %2170 = vst.msk [vmem:[%s3037_s28 + $0x40] sm:$0xf] %vm2087_vm2, %v2363_v55  ;;  %v2364_v47 = vpack.c.bf16 %v2086_v50, %v2086_v50 }
 0x342   : > { %2168 = vst.msk [vmem:[%s3037_s28 + $0x38] sm:$0xf] %vm2087_vm2, %v2361_v12  ;;  %v2362_v28 = vpack.c.bf16 %v2084_v48, %v2084_v48 }
 0x343   : > { %2171 = vst.msk [vmem:[%s3037_s28 + $0x44] sm:$0xf] %vm2087_vm2, %v2364_v47 }
 0x344   : > { %2169 = vst.msk [vmem:[%s3037_s28 + $0x3c] sm:$0xf] %vm2087_vm2, %v2362_v28 }
 0x345 PF: > { %s17_s24 = sadd.s32 1, %s2903_s24  }
 0x346   : > { %p14_p4 = scmp.ge.s32.totalorder %s17_s24, 4  }
 0x348   :  { %16 = sbr.rel (!%p14_p4) target bundleno = 1 (0x1), region = 83 }

// kernel: residual_block_forward.3
= control target key start
LH: loop header
LB: loop body
LE: loop exit
PB: predicated region body
PF: predicated region fallthrough
CT: control target
= control target key end

     0   :  { %s3386_s13 = smov 0   ;;  %s4775_s0 = inlined_call_operand.vmem [shape: bf16[2,160,64], index: 0, kind: input, shape index: {}]   ;;  %s4776_s1 = inlined_call_operand.vmem [shape: f32[160,1], index: 1, kind: input, shape index: {}]   ;;  %s4777_s2 = inlined_call_operand.vmem [shape: f32[64,64], index: 2, kind: input, shape index: {}]   ;;  %s4778_s3 = inlined_call_operand.vmem [shape: f32[1,64], index: 3, kind: input, shape index: {}]   ;;  %s4779_s4 = inlined_call_operand.vmem [shape: f32[1,64], index: 4, kind: input, shape index: {}]   ;;  %s4780_s5 = inlined_call_operand.vmem [shape: bf16[3,192,64], index: 5, kind: input, shape index: {}]   ;;  %s4781_s6 = inlined_call_operand.vmem [shape: f32[2,1,64], index: 6, kind: input, shape index: {}]   ;;  %s4782_s7 = inlined_call_operand.vmem [shape: f32[2,160,32], index: 7, kind: input, shape index: {}]   ;;  %s4783_s8 = inlined_call_operand.vmem [shape: bf16[32,64], index: 8, kind: input, shape index: {}]   ;;  %s4784_s9 = inlined_call_operand.vmem [shape: f32[1,64], index: 9, kind: input, shape index: {}]   ;;  %s4785_s10 = inlined_call_operand.vmem [shape: f32[2,160,64], index: 10, kind: output, shape index: {}]  }
   0x1 LB: > { %s2651_s14 = sadd.s32 4294967295, %s3324_s13   ;;  %p2655_p0 = scmp.ge.s32.totalorder %s3324_s13, 1  ;;  %s3324_s13 = sphi %s3386_s13, %s20_s13  }
   0x2   : > { %p330_p1 = scmp.lt.s32.totalorder %s3324_s13, 3 }
   0x4   : > { %p331_p2 = pnand %p2655_p0, %p330_p1 }
   0x6   : > { %334 = sbr.rel (%p331_p2) target bundleno = 976 (0x3d0), region = 60 }
   0xd   : > { %v568_v0 = vld [vmem:[%s4777_s2] sm:$0xff]  ;;  %v569_v1 = vld [vmem:[%s4777_s2 + $0x8] sm:$0xff]  ;;  %v570_v2 = vld [vmem:[%s4777_s2 + $0x10] sm:$0xff]  ;;  %p3403_p3 = scmp.lt.s32.totalorder %s2651_s14, 1  ;;  %v4786_v3 = vmov 0.0|0.0   ;;  %vm455_vm0 = vcmask 523264  }
   0xe   : > { %3049 = vmatprep.subr.bf16.mxu0 %v4786_v3  ;;  %v580_v4 = vand.u32 4294901760, %v568_v0  ;;  %v583_v5 = vand.u32 4294901760, %v569_v1  ;;  %v571_v6 = vld [vmem:[%s4777_s2 + $0x18] sm:$0xff]  ;;  %v586_v7 = vand.u32 4294901760, %v570_v2  ;;  %v572_v8 = vld [vmem:[%s4777_s2 + $0x20] sm:$0xff]  ;;  %v573_v9 = vld [vmem:[%s4777_s2 + $0x28] sm:$0xff] }
   0xf   : > { %v589_v10 = vand.u32 4294901760, %v571_v6  ;;  %v592_v11 = vand.u32 4294901760, %v572_v8  ;;  %v595_v12 = vand.u32 4294901760, %v573_v9  ;;  %v574_v13 = vld [vmem:[%s4777_s2 + $0x30] sm:$0xff]  ;;  %v575_v14 = vld [vmem:[%s4777_s2 + $0x38] sm:$0xff]  ;;  %s4828_s14 = smov (!%p3403_p3, %s2651_s14), 1 }
  0x10   : > { %v3427_v15 = vpack.c.bf16 %v583_v5, %v580_v4  ;;  %v3429_v16 = vsub.f32 %v568_v0, %v580_v4  ;;  %v3431_v17 = vsub.f32 %v569_v1, %v583_v5  ;;  %v3433_v18 = vsub.f32 %v570_v2, %v586_v7  ;;  %s3132_s12 = smul.u32 160, %s4828_s14  ;;  %s3330_s30 = smov 64  }
  0x11   : > { %v3435_v19 = vpack.c.bf16 %v589_v10, %v586_v7  ;;  %v3437_v20 = vsub.f32 %v571_v6, %v589_v10  ;;  %v3439_v21 = vsub.f32 %v572_v8, %v592_v11  ;;  %v3443_v22 = vsub.f32 %v573_v9, %v595_v12  ;;  %s3131_s15 = smul.u32 80, %s4828_s14  ;;  %s383_s20 = scalar_lea.vmem %s4781_s6, %s4828_s14 }
  0x12   : > { %3051 = vmatpush3.bf16.msra.mxu0 %v3427_v15  ;;  %v598_v23 = vand.u32 4294901760, %v574_v13  ;;  %v601_v24 = vand.u32 4294901760, %v575_v14  ;;  %s3452_s18 = scalar_lea.vmem %s4785_s10, %s3132_s12  ;;  %vm3327_vm1 = vmmov 0   ;;  %v4788_v27 = vmov 0.0   ;;  %s4571_s17 = scalar_lea.vmem %s4782_s7, %s3132_s12 }
  0x13   : > { %3052 = vmatprep.subr.bf16.mxu0 %v4786_v3  ;;  %2931 = vmatprep.mubr.msk.f32.mxu0 %vm3327_vm1, %v4788_v27  ;;  %2555 = vst.msk [vmem:[%s3452_s18] sm:$0xff] %vm455_vm0, %v4788_v27  ;;  %2556 = vst.msk [vmem:[%s3452_s18 + $0x8] sm:$0xff] %vm455_vm0, %v4788_v27  ;;  %s3475_s21 = scalar_lea.vmem %s4775_s0, %s3131_s15  ;;  %v3479_v29 = vpack.c.bf16 %v595_v12, %v592_v11  ;;  %v4791_v33 = vand.u32 4294901760, %v3429_v16  ;;  %v4790_v37 = vand.u32 4294901760, %v3431_v17  ;;  %vm566_vm2 = vcmask 1040384  }
  0x14   : > { %v3454_v25 = vsub.f32 %v574_v13, %v598_v23  ;;  %v3456_v26 = vsub.f32 %v575_v14, %v601_v24  ;;  %2557 = vst.msk [vmem:[%s3452_s18 + $0x90] sm:$0xff] %vm455_vm0, %v4788_v27  ;;  %2558 = vst.msk [vmem:[%s3452_s18 + $0x98] sm:$0xff] %vm455_vm0, %v4788_v27  ;;  %v2803_v28 = vld [vmem:[%s3475_s21] sm:$0xff]   ;;  %v2842_v30 = vld [vmem:[%s3475_s21 + $0x8] sm:$0xff]   ;;  %v3492_v40 = vpack.c.bf16 %v601_v24, %v598_v23  ;;  %vm1527_vm3 = vcmask 1046528  }
  0x15   : > { %v2843_v31 = vld [vmem:[%s3475_s21 + $0x10] sm:$0xff]   ;;  %v2844_v32 = vld [vmem:[%s3475_s21 + $0x18] sm:$0xff]   ;;  %v2845_v34 = vld [vmem:[%s3475_s21 + $0x20] sm:$0xff]   ;;  %v3494_v41 = vunpack.c.l.bf16 %v2803_v28  ;;  %v3496_v42 = vunpack.c.h.bf16 %v2803_v28  ;;  %v3500_v45 = vunpack.c.l.bf16 %v2842_v30  ;;  %v3502_v46 = vunpack.c.h.bf16 %v2842_v30 }
  0x16   : > { %3054 = vmatpush3.bf16.msra.mxu0 %v3435_v19  ;;  %v2846_v35 = vld [vmem:[%s3475_s21 + $0x28] sm:$0xff]   ;;  %v2847_v36 = vld [vmem:[%s3475_s21 + $0x30] sm:$0xff]   ;;  %v2848_v43 = vld [vmem:[%s3475_s21 + $0x38] sm:$0xff]   ;;  %v3504_v47 = vunpack.c.l.bf16 %v2843_v31  ;;  %v3506_v48 = vunpack.c.h.bf16 %v2843_v31  ;;  %v3509_v49 = vunpack.c.l.bf16 %v2844_v32  ;;  %v3511_v50 = vunpack.c.h.bf16 %v2844_v32 }
  0x17   : > { %3055 = vmatprep.subr.bf16.mxu0 %v4786_v3  ;;  %4800 = vst [vmem:[#allocation2_spill] sm:$0xff] %v3494_v41  ;;  %4801 = vst [vmem:[#allocation3_spill] sm:$0xff] %v3496_v42  ;;  %v3513_v51 = vunpack.c.l.bf16 %v2845_v34  ;;  %v3515_v52 = vunpack.c.h.bf16 %v2845_v34  ;;  %v3518_v53 = vunpack.c.l.bf16 %v2846_v35  ;;  %v456_v54 = vsel %vm455_vm0, %v3494_v41, 0.0  ;;  %v2849_v10 = vld [vmem:[%s3475_s21 + $0x40] sm:$0xff]   ;;  %v3560_v11 = vld [vmem:[%s3475_s21 + $0x48] sm:$0xff]  }
  0x18   : > { %v457_v55 = vsel %vm455_vm0, %v3496_v42, 0.0  ;;  %v459_v56 = vsel %vm455_vm0, %v3500_v45, 0.0  ;;  %v3526_v57 = vunpack.c.h.bf16 %v2846_v35  ;;  %v3528_v58 = vunpack.c.l.bf16 %v2847_v36 }
  0x19   : > { %v3530_v59 = vunpack.c.h.bf16 %v2847_v36  ;;  %v458_v60 = vadd.f32 %v457_v55, %v456_v54  ;;  %v3532_v61 = vunpack.c.l.bf16 %v2848_v43  ;;  %v461_v62 = vsel %vm455_vm0, %v3502_v46, 0.0 }
  0x1a   : > { %3057 = vmatpush3.bf16.msra.mxu0 %v3479_v29  ;;  %v463_v63 = vsel %vm455_vm0, %v3504_v47, 0.0  ;;  %v465_v0 = vsel %vm455_vm0, %v3506_v48, 0.0  ;;  %v467_v2 = vsel %vm455_vm0, %v3509_v49, 0.0  ;;  %v469_v4 = vsel %vm455_vm0, %v3511_v50, 0.0 }
  0x1b   : > { %3058 = vmatprep.subr.bf16.mxu0 %v4786_v3  ;;  %4802 = vst [vmem:[#allocation4_spill] sm:$0xff] %v3530_v59  ;;  %4803 = vst [vmem:[#allocation5_spill] sm:$0xff] %v3532_v61  ;;  %v460_v1 = vadd.f32 %v459_v56, %v458_v60  ;;  %v471_v5 = vsel %vm455_vm0, %v3513_v51, 0.0  ;;  %v473_v6 = vsel %vm455_vm0, %v3515_v52, 0.0  ;;  %v475_v7 = vsel %vm455_vm0, %v3518_v53, 0.0 }
  0x1c   : > { %v477_v8 = vsel %vm455_vm0, %v3526_v57, 0.0  ;;  %v3556_v9 = vsel %vm455_vm0, %v3528_v58, 0.0  ;;  %v3564_v13 = vsel %vm455_vm0, %v3530_v59, 0.0  ;;  %v3568_v14 = vsel %vm455_vm0, %v3532_v61, 0.0 }
  0x1d   : > { %v462_v12 = vadd.f32 %v461_v62, %v460_v1  ;;  %v501_v24 = vmul.f32 %v3494_v41, %v3494_v41  ;;  %v502_v28 = vmul.f32 %v3496_v42, %v3496_v42  ;;  %v503_v30 = vmul.f32 %v3500_v45, %v3500_v45 }
  0x1e   : > { %3060 = vmatpush3.bf16.msra.mxu0 %v3492_v40  ;;  %v666_v31 = vsub.f32 %v3429_v16, %v4791_v33  ;;  %v3579_v32 = vunpack.c.h.bf16 %v2848_v43  ;;  %v504_v35 = vmul.f32 %v3502_v46, %v3502_v46  ;;  %v673_v36 = vsub.f32 %v3431_v17, %v4790_v37 }
  0x1f   : > { %3061 = vmatprep.subr.bf16.mxu0 %v4786_v3  ;;  %v464_v23 = vadd.f32 %v463_v63, %v462_v12  ;;  %v3586_v54 = vunpack.c.l.bf16 %v2849_v10  ;;  %v3588_v55 = vunpack.c.h.bf16 %v2849_v10  ;;  %v3591_v56 = vunpack.c.l.bf16 %v3560_v11 }
  0x20   : > { %v505_v60 = vmul.f32 %v3504_v47, %v3504_v47  ;;  %v506_v62 = vmul.f32 %v3506_v48, %v3506_v48  ;;  %v521_v63 = vsel %vm455_vm0, %v501_v24, 0.0  ;;  %v507_v1 = vmul.f32 %v3509_v49, %v3509_v49 }
  0x21   : > { %v466_v34 = vadd.f32 %v465_v0, %v464_v23  ;;  %v522_v0 = vsel %vm455_vm0, %v502_v28, 0.0  ;;  %v508_v10 = vmul.f32 %v3511_v50, %v3511_v50  ;;  %v524_v23 = vsel %vm455_vm0, %v503_v30, 0.0 }
  0x22   : > { %v523_v12 = vadd.f32 %v522_v0, %v521_v63  ;;  %v526_v24 = vsel %vm455_vm0, %v504_v35, 0.0  ;;  %v3611_v28 = vsel %vm455_vm0, %v3579_v32, 0.0  ;;  %v511_v27 = vmul.f32 %v3518_v53, %v3518_v53 }
  0x23   : > { %v468_v43 = vadd.f32 %v467_v2, %v466_v34  ;;  %v509_v2 = vmul.f32 %v3513_v51, %v3513_v51  ;;  %v510_v34 = vmul.f32 %v3515_v52, %v3515_v52  ;;  %v3617_v63 = vmul.f32 %v3526_v57, %v3526_v57 }
  0x24   : > { %v3625_v35 = vmul.f32 %v3530_v59, %v3530_v59  ;;  %v528_v0 = vsel %vm455_vm0, %v505_v60, 0.0  ;;  %v3630_v37 = vmul.f32 %v3532_v61, %v3532_v61  ;;  %v530_v44 = vsel %vm455_vm0, %v506_v62, 0.0 }
  0x25   : > { %v470_v3 = vadd.f32 %v469_v4, %v468_v43  ;;  %v525_v4 = vadd.f32 %v524_v23, %v523_v12  ;;  %v3621_v43 = vmul.f32 %v3528_v58, %v3528_v58  ;;  %v532_v12 = vsel %vm455_vm0, %v507_v1, 0.0 }
  0x26   : > { %v536_v23 = vsel %vm455_vm0, %v509_v2, 0.0  ;;  %v538_v39 = vsel %vm455_vm0, %v510_v34, 0.0  ;;  %v667_v41 = vand.u32 4294901760, %v666_v31  ;;  %v674_v42 = vand.u32 4294901760, %v673_v36 }
  0x27   : > { %v472_v30 = vadd.f32 %v471_v5, %v470_v3  ;;  %v527_v33 = vadd.f32 %v526_v24, %v525_v4  ;;  %v534_v5 = vsel %vm455_vm0, %v508_v10, 0.0  ;;  %v4804_v60 = vand.u32 4294901760, %v3433_v18 }
  0x28   : > { %v4805_v24 = vand.u32 4294901760, %v3437_v20  ;;  %v700_v10 = vand.u32 4294901760, %v3443_v22  ;;  %v3647_v34 = vpack.c.bf16 %v674_v42, %v667_v41  ;;  %v707_v31 = vand.u32 4294901760, %v3454_v25 }
  0x29   : > { %v474_v3 = vadd.f32 %v473_v6, %v472_v30  ;;  %v529_v38 = vadd.f32 %v528_v0, %v527_v33  ;;  %v680_v61 = vsub.f32 %v3433_v18, %v4804_v60  ;;  %v4806_v6 = vand.u32 4294901760, %v3439_v21 }
  0x2a   : > { %v687_v62 = vsub.f32 %v3437_v20, %v4805_v24  ;;  %v714_v60 = vand.u32 4294901760, %v3456_v26  ;;  %v3074_v24 = vpack.c.bf16 %v3431_v17, %v3429_v16  ;;  %vm2394_vm4 = vcmask 261120  }
  0x2b   : > { %v476_v59 = vadd.f32 %v475_v7, %v474_v3  ;;  %v694_v1 = vsub.f32 %v3439_v21, %v4806_v6  ;;  %v531_v2 = vadd.f32 %v530_v44, %v529_v38  ;;  %v681_v33 = vand.u32 4294901760, %v680_v61 }
  0x2c   : > { %v688_v4 = vand.u32 4294901760, %v687_v62  ;;  %v701_v7 = vsub.f32 %v3443_v22, %v700_v10  ;;  %v708_v3 = vsub.f32 %v3454_v25, %v707_v31  ;;  %v3077_v44 = vpack.c.bf16 %v3437_v20, %v3433_v18 }
  0x2d   : > { %v478_v36 = vadd.f32 %v477_v8, %v476_v59  ;;  %v695_v30 = vand.u32 4294901760, %v694_v1  ;;  %v533_v0 = vadd.f32 %v532_v12, %v531_v2  ;;  %v715_v8 = vsub.f32 %v3456_v26, %v714_v60 }
  0x2e   : > { %v3656_v41 = vpack.c.bf16 %v688_v4, %v681_v33  ;;  %v702_v42 = vand.u32 4294901760, %v701_v7  ;;  %v709_v61 = vand.u32 4294901760, %v708_v3  ;;  %v3080_v12 = vpack.c.bf16 %v3443_v22, %v3439_v21  ;;  %v437_v3 = vld [vmem:[%s4776_s1 + $0x10] sm:$0xff]  ;;  %v3205_v22 = vld [vmem:[%s4780_s5 + $0xd8] sm:$0xff]  }
  0x2f   : > { %v480_v38 = vadd.f32 %v3556_v9, %v478_v36  ;;  %v535_v59 = vadd.f32 %v534_v5, %v533_v0  ;;  %v3083_v9 = vpack.c.bf16 %v3456_v26, %v3454_v25  ;;  %v4807_v1 = vand.u32 4294901760, %v3429_v16  ;;  %v3199_v16 = vld [vmem:[%s4780_s5 + $0xc0] sm:$0xff]  }
  0x30   : > { %v3664_v6 = vpack.c.bf16 %v702_v42, %v695_v30  ;;  %v4808_v2 = vand.u32 4294901760, %v3431_v17  ;;  %v716_v36 = vand.u32 4294901760, %v715_v8  ;;  %v4809_v4 = vand.u32 4294901760, %v3433_v18  ;;  %v3200_v17 = vld [vmem:[%s4780_s5 + $0x68] sm:$0xff]   ;;  %v3206_v25 = vld [vmem:[%s4780_s5 + $0x80] sm:$0xff]  }
  0x31   : > { %v482_v62 = vadd.f32 %v3564_v13, %v480_v38  ;;  %v537_v5 = vadd.f32 %v536_v23, %v535_v59  ;;  %v4810_v7 = vand.u32 4294901760, %v3437_v20  ;;  %v4811_v13 = vand.u32 4294901760, %v3439_v21  ;;  %v439_v38 = vld [vmem:[%s4776_s1 + $0x20] sm:$0xff]  ;;  %v3201_v18 = vld [vmem:[%s4780_s5 + $0xc8] sm:$0xff]   ;;  %v3203_v20 = vld [vmem:[%s4780_s5 + $0xd0] sm:$0xff]  }
  0x32   : > { %v3672_v33 = vpack.c.bf16 %v4808_v2, %v4807_v1  ;;  %v540_v42 = vsel %vm455_vm0, %v511_v27, 0.0  ;;  %v3692_v59 = vpack.c.bf16 %v714_v60, %v707_v31  ;;  %v3695_v8 = vunpack.c.h.bf16 %v3560_v11  ;;  %v3204_v21 = vld [vmem:[%s4780_s5 + $0x78] sm:$0xff]   ;;  %v3207_v26 = vld [vmem:[%s4780_s5 + $0xe0] sm:$0xff]  }
  0x33   : > { %v3678_v0 = vpack.c.bf16 %v4810_v7, %v4809_v4  ;;  %v3682_v30 = vpack.c.bf16 %v700_v10, %v4811_v13  ;;  %v484_v23 = vadd.f32 %v3568_v14, %v482_v62  ;;  %v487_v10 = vsel %vm455_vm0, %v3586_v54, 0.0  ;;  %v441_v13 = vld [vmem:[%s4776_s1 + $0x30] sm:$0xff] }
  0x34   : > { %v539_v1 = vadd.f32 %v538_v39, %v537_v5  ;;  %v3699_v2 = vpack.c.bf16 %v716_v36, %v709_v61  ;;  %v4796_v4 = vmov 0   ;;  %v542_v27 = vsel %vm455_vm0, %v3617_v63, 0.0  ;;  %v438_v61 = vld [vmem:[%s4776_s1 + $0x18] sm:$0xff] }
  0x35   : > { %3146 = vset.pattern.permute.xlu0 %v4796_v4  ;;  %3147 = vset.pattern.permute.xlu1 %v4796_v4  ;;  %v486_v14 = vadd.f32 %v3611_v28, %v484_v23  ;;  %v489_v11 = vsel %vm455_vm0, %v3588_v55, 0.0  ;;  %v491_v39 = vsel %vm455_vm0, %v3591_v56, 0.0  ;;  %v493_v31 = vsel %vm455_vm0, %v3695_v8, 0.0  ;;  %v440_v28 = vld [vmem:[%s4776_s1 + $0x28] sm:$0xff] }
  0x36   : > { %1339 = vperm.xlu0 %3146, %v437_v3   ;;  %1349 = vperm.xlu1 %3147, %v439_v38   ;;  %v541_v60 = vadd.f32 %v540_v42, %v539_v1  ;;  %v544_v62 = vsel %vm455_vm0, %v3621_v43, 0.0  ;;  %v546_v5 = vsel %vm455_vm0, %v3625_v35, 0.0  ;;  %v548_v36 = vsel %vm455_vm0, %v3630_v37, 0.0  ;;  %v442_v3 = vld [vmem:[%s4776_s1 + $0x38] sm:$0xff] }
  0x37   : > { %1833 = vmatprep.subr.bf16.mxu1 %v4796_v4  ;;  %v488_v63 = vadd.f32 %v487_v10, %v486_v14  ;;  %v516_v23 = vmul.f32 %v3579_v32, %v3579_v32  ;;  %v517_v37 = vmul.f32 %v3586_v54, %v3586_v54  ;;  %v518_v1 = vmul.f32 %v3588_v55, %v3588_v55 }
  0x38   : > { %v543_v7 = vadd.f32 %v542_v27, %v541_v60 }
  0x39   : > { %v490_v38 = vadd.f32 %v489_v11, %v488_v63  ;;  %v550_v14 = vsel %vm455_vm0, %v516_v23, 0.0  ;;  %v443_v11 = vld [vmem:[%s4776_s1 + $0x40] sm:$0xff]  ;;  %v520_v63 = vmul.f32 %v3695_v8, %v3695_v8 }
  0x3a   : > { %1344 = vperm.xlu0 %3146, %v438_v61   ;;  %1354 = vperm.xlu1 %3147, %v440_v28   ;;  %v545_v43 = vadd.f32 %v544_v62, %v543_v7  ;;  %v552_v61 = vsel %vm455_vm0, %v517_v37, 0.0  ;;  %v554_v62 = vsel %vm455_vm0, %v518_v1, 0.0  ;;  %v445_v7 = vld [vmem:[%s4776_s1 + $0x50] sm:$0xff]  ;;  %v447_v37 = vld [vmem:[%s4776_s1 + $0x60] sm:$0xff] }
  0x3b   : > { %v492_v35 = vadd.f32 %v491_v39, %v490_v38  ;;  %v444_v39 = vld [vmem:[%s4776_s1 + $0x48] sm:$0xff]  ;;  %v558_v23 = vsel %vm455_vm0, %v520_v63, 0.0 }
  0x3c   : > { %v547_v42 = vadd.f32 %v546_v5, %v545_v43 }
  0x3d   : > { %v494_v10 = vadd.f32 %v493_v31, %v492_v35  ;;  %v519_v31 = vmul.f32 %v3591_v56, %v3591_v56 }
  0x3e   : > { %1359 = vperm.xlu0 %3146, %v441_v13   ;;  %1364 = vperm.xlu1 %3147, %v442_v3   ;;  %v549_v27 = vadd.f32 %v548_v36, %v547_v42  ;;  %v446_v13 = vld [vmem:[%s4776_s1 + $0x58] sm:$0xff]  ;;  %v448_v42 = vld [vmem:[%s4776_s1 + $0x68] sm:$0xff] }
  0x3f   : > { %v495_v60 = vrot.slane %v494_v10, 4  ;;  %v556_v3 = vsel %vm455_vm0, %v519_v31, 0.0 }
  0x40   : > { %v551_v28 = vadd.f32 %v550_v14, %v549_v27  ;;  %v449_v27 = vld [vmem:[%s4776_s1 + $0x70] sm:$0xff] }
  0x41   : > { %v496_v5 = vadd.f32 %v495_v60, %v494_v10 }
  0x42   : > { %1369 = vperm.xlu0 %3146, %v443_v11   ;;  %1374 = vperm.xlu1 %3147, %v444_v39   ;;  %v553_v36 = vadd.f32 %v552_v61, %v551_v28  ;;  %v450_v11 = vld [vmem:[%s4776_s1 + $0x78] sm:$0xff]  ;;  %v436_v61 = vld [vmem:[%s4776_s1 + $0x8] sm:$0xff]  ;;  %v451_v28 = vld [vmem:[%s4776_s1 + $0x80] sm:$0xff] }
  0x43   : > { %v497_v43 = vrot.slane %v496_v5, 2 }
  0x44   : > { %v555_v38 = vadd.f32 %v554_v62, %v553_v36  ;;  %v452_v36 = vld [vmem:[%s4776_s1 + $0x88] sm:$0xff] }
  0x45   : > { %v498_v1 = vadd.f32 %v497_v43, %v496_v5 }
  0x46   : > { %1379 = vperm.xlu0 %3146, %v445_v7   ;;  %1384 = vperm.xlu1 %3147, %v446_v13   ;;  %v557_v35 = vadd.f32 %v556_v3, %v555_v38  ;;  %v435_v7 = vld [vmem:[%s4776_s1] sm:$0xff] }
  0x47   : > { %v499_v60 = vrot.slane %v498_v1, 1 }
  0x48   : > { %v559_v10 = vadd.f32 %v558_v23, %v557_v35 }
  0x49   : > { %v500_v62 = vadd.f32 %v499_v60, %v498_v1  ;;  %v4813_v1 = vmov 0.0|0.0   ;;  %v2659_v60 = vld [vmem:[%s4778_s3] ss:$0 sm:$0xff] }
  0x4a   : > { %1389 = vperm.xlu0 %3146, %v447_v37   ;;  %1394 = vperm.xlu1 %3147, %v448_v42   ;;  %v560_v14 = vrot.slane %v559_v10, 4 }
  0x4c   : > { %v561_v39 = vadd.f32 %v560_v14, %v559_v10  ;;  %v4812_v10 = vmov 0.0   ;;  %v3215_v14 = vld [vmem:[%s4780_s5 + $0x100] sm:$0xff]  }
  0x4e   : > { %1399 = vperm.xlu0 %3146, %v449_v27   ;;  %1404 = vperm.xlu1 %3147, %v450_v11   ;;  %v562_v31 = vrot.slane %v561_v39, 2  ;;  %v3216_v11 = vld [vmem:[%s4780_s5 + $0xa8] sm:$0xff]  }
  0x50   : > { %v563_v63 = vadd.f32 %v562_v31, %v561_v39  ;;  %v3217_v39 = vld [vmem:[%s4780_s5 + $0x108] sm:$0xff]  }
  0x52   : > { %1334 = vperm.xlu0 %3146, %v436_v61   ;;  %1409 = vperm.xlu1 %3147, %v451_v28   ;;  %v564_v5 = vrot.slane %v563_v63, 1 }
  0x54   : > { %v565_v13 = vadd.f32 %v564_v5, %v563_v63  ;;  %v3218_v63 = vld [vmem:[%s4780_s5 + $0xb0] sm:$0xff]  }
  0x56   : > { %1414 = vperm.xlu0 %3146, %v452_v36   ;;  %1329 = vperm.xlu1 %3147, %v435_v7   ;;  %v567_v3 = vsel %vm566_vm2, %v500_v62, %v565_v13  ;;  %v3219_v62 = vld [vmem:[%s4780_s5 + $0x110] sm:$0xff]   ;;  %v1131_v36 = vld [vmem:[%s4779_s4] sm:$0x1] }
  0x57   : > { %v577_v38 = vsel %vm455_vm0, %v567_v3, 0 }
  0x58   : > { %v652_v23 = vand.u32 4294901760, %v577_v38 }
  0x5a   : > { %v653_v43 = vsub.f32 %v577_v38, %v652_v23 }
  0x5c   : > { %v654_v35 = vand.u32 4294901760, %v653_v43 }
  0x5e   : > { %v655_v37 = vsub.f32 %v653_v43, %v654_v35 }
  0x60   : > { %v656_v42 = vand.u32 4294901760, %v655_v37 }
  0x62   : > { %2932 = vmatmul.mubr.f32.vlgmr.msra.gmra.mrb[0].mxu0 %v656_v42 }
  0x63   : > { %3063 = vmatpush3.bf16.msra.mxu0 %v3647_v34  ;;  %2950 = vmatprep.mubr.msk.f32.mxu0 %vm3327_vm1, %v4812_v10  ;;  %v3209_v34 = vld [vmem:[%s4780_s5 + $0xe8] sm:$0xff]  }
  0x64   : > { %3064 = vmatprep.subr.bf16.mxu0 %v4813_v1 }
  0x67   : > { %3066 = vmatpush3.bf16.msra.mxu0 %v3656_v41 }
  0x68   : > { %3067 = vmatprep.subr.bf16.mxu0 %v4813_v1 }
  0x6b   : > { %3069 = vmatpush3.bf16.msra.mxu0 %v3664_v6  ;;  %v3211_v6 = vld [vmem:[%s4780_s5 + $0xf0] sm:$0xff]  }
  0x6c   : > { %3070 = vmatprep.subr.bf16.mxu0 %v4813_v1 }
  0x6f   : > { %3072 = vmatpush3.bf16.msra.mxu0 %v3699_v2  ;;  %v3214_v2 = vld [vmem:[%s4780_s5 + $0xa0] sm:$0xff]  }
  0x70   : > { %3073 = vmatprep.subr.bf16.mxu0 %v4813_v1 }
  0x72   : > { %2951 = vmatmul.mubr.f32.vlgmr.msra.gmra.mrb[0].mxu0 %v652_v23 }
  0x73   : > { %3075 = vmatpush3.bf16.msra.mxu0 %v3074_v24  ;;  %2969 = vmatprep.mubr.msk.f32.mxu0 %vm3327_vm1, %v4812_v10 }
  0x74   : > { %3076 = vmatprep.subr.bf16.mxu0 %v4813_v1 }
  0x77   : > { %3078 = vmatpush3.bf16.msra.mxu0 %v3077_v44 }
  0x78   : > { %3079 = vmatprep.subr.bf16.mxu0 %v4813_v1 }
  0x7b   : > { %3081 = vmatpush3.bf16.msra.mxu0 %v3080_v12  ;;  %v3210_v12 = vld [vmem:[%s4780_s5 + $0x90] sm:$0xff]  }
  0x7c   : > { %3082 = vmatprep.subr.bf16.mxu0 %v4813_v1 }
  0x7f   : > { %3084 = vmatpush3.bf16.msra.mxu0 %v3083_v9 }
  0x80   : > { %3085 = vmatprep.subr.bf16.mxu0 %v4813_v1 }
  0x82   : > { %2970 = vmatmul.mubr.f32.vlgmr.msra.gmra.mrb[0].mxu0 %v653_v43 }
  0x83   : > { %3087 = vmatpush3.bf16.msra.mxu0 %v3427_v15  ;;  %2988 = vmatprep.mubr.msk.f32.mxu0 %vm3327_vm1, %v4812_v10 }
  0x84   : > { %3088 = vmatprep.subr.bf16.mxu0 %v4813_v1 }
  0x87   : > { %3090 = vmatpush3.bf16.msra.mxu0 %v3435_v19 }
  0x88   : > { %3091 = vmatprep.subr.bf16.mxu0 %v4813_v1 }
  0x8b   : > { %3093 = vmatpush3.bf16.msra.mxu0 %v3479_v29 }
  0x8c   : > { %3094 = vmatprep.subr.bf16.mxu0 %v4813_v1 }
  0x8f   : > { %3096 = vmatpush3.bf16.msra.mxu0 %v3492_v40 }
  0x90   : > { %3097 = vmatprep.subr.bf16.mxu0 %v4813_v1 }
  0x92   : > { %2989 = vmatmul.mubr.f32.vlgmr.msra.gmra.mrb[0].mxu0 %v654_v35 }
  0x93   : > { %3099 = vmatpush3.bf16.msra.mxu0 %v3672_v33  ;;  %3007 = vmatprep.mubr.msk.f32.mxu0 %vm3327_vm1, %v4812_v10 }
  0x94   : > { %3100 = vmatprep.subr.bf16.mxu0 %v4813_v1 }
  0x97   : > { %3102 = vmatpush3.bf16.msra.mxu0 %v3678_v0  ;;  %v3212_v0 = vld [vmem:[%s4780_s5 + $0x98] sm:$0xff]  }
  0x98   : > { %3103 = vmatprep.subr.bf16.mxu0 %v4813_v1 }
  0x9b   : > { %3105 = vmatpush3.bf16.msra.mxu0 %v3682_v30  ;;  %v3213_v30 = vld [vmem:[%s4780_s5 + $0xf8] sm:$0xff]  }
  0x9c   : > { %3106 = vmatprep.subr.bf16.mxu0 %v4813_v1 }
  0x9f   : > { %3108 = vmatpush3.bf16.msra.mxu0 %v3692_v59  ;;  %v1137_v59 = vlaneseq }
  0xa0   : > { %3109 = vmatprep.subr.bf16.mxu0 %v4813_v1 }
  0xa1   : > { %v1138_v27 = vshrl.u32 %v1137_v59, 7 }
  0xa2   : > { %3008 = vmatmul.mubr.f32.vlgmr.msra.gmra.mrb[0].mxu0 %v652_v23 }
  0xa3   : > { %3111 = vmatpush3.bf16.msra.mxu0 %v3427_v15  ;;  %3026 = vmatprep.mubr.msk.f32.mxu0 %vm3327_vm1, %v4812_v10  ;;  %v3198_v15 = vld [vmem:[%s4780_s5 + $0x60] sm:$0xff]   ;;  %v1139_v61 = vsub.s32 1, %v1138_v27  ;;  %v1164_v3 = vsub.s32 0, %v1138_v27 }
  0xa4   : > { %3112 = vmatprep.subr.bf16.mxu0 %v4813_v1  ;;  %1834 = vmatpush1.bf16.msra.mxu1 %v3198_v15 }
  0xa5   : > { %1835 = vmatprep.subr.bf16.mxu1 %v4796_v4 }
  0xa7   : > { %3114 = vmatpush3.bf16.msra.mxu0 %v3435_v19  ;;  %v3202_v19 = vld [vmem:[%s4780_s5 + $0x70] sm:$0xff]  }
  0xa8   : > { %3115 = vmatprep.subr.bf16.mxu0 %v4813_v1  ;;  %1836 = vmatpush1.bf16.msra.mxu1 %v3200_v17 }
  0xa9   : > { %1837 = vmatprep.subr.bf16.mxu1 %v4796_v4 }
  0xab   : > { %3117 = vmatpush3.bf16.msra.mxu0 %v3479_v29 }
  0xac   : > { %3118 = vmatprep.subr.bf16.mxu0 %v4813_v1  ;;  %1838 = vmatpush1.bf16.msra.mxu1 %v3202_v19 }
  0xad   : > { %1839 = vmatprep.subr.bf16.mxu1 %v4796_v4 }
  0xaf   : > { %3120 = vmatpush3.bf16.msra.mxu0 %v3492_v40  ;;  %v3208_v40 = vld [vmem:[%s4780_s5 + $0x88] sm:$0xff]  }
  0xb0   : > { %2202 = vmatprep.subr.bf16.mxu0 %v4796_v4  ;;  %1840 = vmatpush1.bf16.msra.mxu1 %v3204_v21 }
  0xb1   : > { %1841 = vmatprep.subr.bf16.mxu1 %v4796_v4 }
  0xb2   : > { %3027 = vmatmul.mubr.f32.vlgmr.msra.gmra.mrb[0].mxu0 %v652_v23 }
  0xb3   : > { %2203 = vmatpush1.bf16.msra.mxu0 %v3199_v16 }
  0xb4   : > { %2204 = vmatprep.subr.bf16.mxu0 %v4796_v4  ;;  %1842 = vmatpush1.bf16.msra.mxu1 %v3206_v25 }
  0xb5   : > { %1843 = vmatprep.subr.bf16.mxu1 %v4796_v4 }
  0xb7   : > { %2205 = vmatpush1.bf16.msra.mxu0 %v3201_v18 }
  0xb8   : > { %2206 = vmatprep.subr.bf16.mxu0 %v4796_v4  ;;  %1844 = vmatpush1.bf16.msra.mxu1 %v3208_v40 }
  0xb9   : > { %1845 = vmatprep.subr.bf16.mxu1 %v4796_v4 }
  0xbb   : > { %2207 = vmatpush1.bf16.msra.mxu0 %v3203_v20 }
  0xbc   : > { %2208 = vmatprep.subr.bf16.mxu0 %v4796_v4  ;;  %1846 = vmatpush1.bf16.msra.mxu1 %v3210_v12  ;;  %v4815_v12 = vld [vmem:[#allocation5_spill] sm:$0xff] }
  0xbd   : > { %1847 = vmatprep.subr.bf16.mxu1 %v4796_v4 }
  0xbf   : > { %2209 = vmatpush1.bf16.msra.mxu0 %v3205_v22 }
  0xc0   : > { %2210 = vmatprep.subr.bf16.mxu0 %v4796_v4  ;;  %1848 = vmatpush1.bf16.msra.mxu1 %v3212_v0 }
  0xc1   : > { %1849 = vmatprep.subr.bf16.mxu1 %v4796_v4 }
  0xc3   : > { %2211 = vmatpush1.bf16.msra.mxu0 %v3207_v26 }
  0xc4   : > { %2212 = vmatprep.subr.bf16.mxu0 %v4796_v4  ;;  %1850 = vmatpush1.bf16.msra.mxu1 %v3214_v2 }
  0xc5   : > { %1851 = vmatprep.subr.bf16.mxu1 %v4796_v4 }
  0xc7   : > { %2213 = vmatpush1.bf16.msra.mxu0 %v3209_v34 }
  0xc8   : > { %2214 = vmatprep.subr.bf16.mxu0 %v4796_v4  ;;  %1852 = vmatpush1.bf16.msra.mxu1 %v3216_v11 }
  0xc9   : > { %1853 = vmatprep.subr.bf16.mxu1 %v4796_v4 }
  0xcb   : > { %2215 = vmatpush1.bf16.msra.mxu0 %v3211_v6 }
  0xcc   : > { %2216 = vmatprep.subr.bf16.mxu0 %v4796_v4  ;;  %1854 = vmatpush1.bf16.msra.mxu1 %v3218_v63 }
  0xcd   : > { %1855 = vmatprep.subr.bf16.mxu1 %v4796_v4 }
  0xcf   : > { %2217 = vmatpush1.bf16.msra.mxu0 %v3213_v30 }
  0xd0   : > { %2218 = vmatprep.subr.bf16.mxu0 %v4796_v4 }
  0xd3   : > { %2219 = vmatpush1.bf16.msra.mxu0 %v3215_v14  ;;  %v4021_v14 = vpop.permute.xlu1 %1349 }
  0xd4   : > { %2220 = vmatprep.subr.bf16.mxu0 %v4796_v4 }
  0xd7   : > { %2221 = vmatpush1.bf16.msra.mxu0 %v3217_v39 }
  0xd8   : > { %2222 = vmatprep.subr.bf16.mxu0 %v4796_v4 }
  0xdb   : > { %2223 = vmatpush1.bf16.msra.mxu0 %v3219_v62 }
  0xdc   : > { %2224 = vmatprep.subr.bf16.mxu0 %v4796_v4 }
 0x185   : > { %v1112_v29 = vpop.f32.mrb[0].mxu0 }
 0x186   : > { %v1116_v24 = vmul.f32 %v1112_v29, %v1112_v29  ;;  %v3028_v41 = vpop.f32.mrb[1].mxu0 }
 0x188   : > { %v1118_v44 = vrot.slane %v1116_v24, 7  ;;  %v4814_v24 = vld [vmem:[#allocation4_spill] sm:$0xff] }
 0x18a   : > { %v1120_v9 = vsub.f32 %v1112_v29, %v1118_v44 }
 0x18c   : > { %v1121_v33 = vadd.f32 1e-05, %v1120_v9 }
 0x18e   : > { %3236 = vrsqrt.f32 %v1121_v33 }
 0x198   : > { %v3237_v31 = vpop.eup %3236 }
 0x199   : > { %v1130_v28 = vmul.f32 %v3237_v31, %v2659_v60 }
 0x19b   : > { %v1133_v5 = vrot.slane %v1130_v28, 1  ;;  %v3934_v7 = vrot.slane %v1130_v28, %v1139_v61 }
 0x19d   : > { %v1135_v13 = vmul.f32 %v1133_v5, %v1112_v29  ;;  %v1143_v23 = vmul.f32 %v3500_v45, %v3934_v7  ;;  %v1145_v35 = vmul.f32 %v3504_v47, %v3934_v7  ;;  %v1144_v37 = vmul.f32 %v3502_v46, %v3934_v7  ;;  %v3994_v29 = vpop.permute.xlu0 %1339  ;;  %v4034_v5 = vpop.permute.xlu1 %1354 }
 0x19e   : > { %v1146_v42 = vmul.f32 %v3506_v48, %v3934_v7  ;;  %v1147_v10 = vmul.f32 %v3509_v49, %v3934_v7  ;;  %v1148_v1 = vmul.f32 %v3511_v50, %v3934_v7  ;;  %v1149_v45 = vmul.f32 %v3513_v51, %v3934_v7 }
 0x19f   : > { %v1136_v38 = vsub.f32 %v1131_v36, %v1135_v13  ;;  %v1150_v51 = vmul.f32 %v3515_v52, %v3934_v7  ;;  %v1151_v16 = vmul.f32 %v3518_v53, %v3934_v7  ;;  %v1152_v52 = vmul.f32 %v3526_v57, %v3934_v7 }
 0x1a0   : > { %v1153_v26 = vmul.f32 %v3528_v58, %v3934_v7  ;;  %v1154_v57 = vmul.f32 %v4814_v24, %v3934_v7  ;;  %v1155_v58 = vmul.f32 %v4815_v12, %v3934_v7  ;;  %v1159_v33 = vmul.f32 %v3591_v56, %v3934_v7 }
 0x1a1   : > { %v3940_v43 = vrot.slane %v1136_v38, %v1164_v3  ;;  %v1160_v59 = vmul.f32 %v3695_v8, %v3934_v7  ;;  %v4030_v39 = vpop.permute.xlu0 %1344 }
 0x1a3   : > { %v3955_v15 = vadd.f32 %v3940_v43, %v1143_v23  ;;  %v3958_v47 = vadd.f32 %v3940_v43, %v1145_v35  ;;  %v3961_v46 = vadd.f32 %v3940_v43, %v1144_v37  ;;  %v3964_v48 = vadd.f32 %v3940_v43, %v1146_v42 }
 0x1a4   : > { %v3967_v49 = vadd.f32 %v3940_v43, %v1147_v10  ;;  %v3970_v50 = vadd.f32 %v3940_v43, %v1148_v1  ;;  %v3980_v20 = vadd.f32 %v3940_v43, %v1149_v45  ;;  %v3984_v22 = vadd.f32 %v3940_v43, %v1150_v51 }
 0x1a5   : > { %v2662_v17 = vmul.f32 -1.442695, %v3955_v15  ;;  %v2664_v18 = vmul.f32 -1.442695, %v3958_v47  ;;  %v2663_v19 = vmul.f32 -1.442695, %v3961_v46  ;;  %v3990_v25 = vadd.f32 %v3940_v43, %v1151_v16  ;;  %v4036_v3 = vpop.permute.xlu0 %1359 }
 0x1a6   : > { %v2665_v21 = vmul.f32 -1.442695, %v3964_v48  ;;  %v2666_v53 = vmul.f32 -1.442695, %v3967_v49  ;;  %v2667_v40 = vmul.f32 -1.442695, %v3970_v50  ;;  %v3998_v34 = vadd.f32 %v3940_v43, %v1152_v52 }
 0x1a7   : > { %3238 = vpow2.f32 %v2662_v17  ;;  %v2668_v41 = vmul.f32 -1.442695, %v3980_v20  ;;  %v4004_v44 = vadd.f32 %v3940_v43, %v1153_v26  ;;  %v2669_v6 = vmul.f32 -1.442695, %v3984_v22  ;;  %v4816_v16 = vld [vmem:[#allocation3_spill] sm:$0xff] }
 0x1a8   : > { %3240 = vpow2.f32 %v2664_v18  ;;  %v4010_v9 = vadd.f32 %v3940_v43, %v1154_v57  ;;  %v2670_v0 = vmul.f32 -1.442695, %v3990_v25  ;;  %v4016_v30 = vadd.f32 %v3940_v43, %v1155_v58 }
 0x1a9   : > { %3242 = vpow2.f32 %v2663_v19  ;;  %v2671_v2 = vmul.f32 -1.442695, %v3998_v34  ;;  %v2672_v27 = vmul.f32 -1.442695, %v4004_v44  ;;  %v4025_v11 = vadd.f32 %v3940_v43, %v1159_v33  ;;  %v4042_v19 = vpop.permute.xlu1 %1364  ;;  %v4047_v26 = vpop.permute.xlu0 %1369  ;;  %v4817_v33 = vld [vmem:[#allocation2_spill] sm:$0xff] }
 0x1aa   : > { %3244 = vpow2.f32 %v2665_v21  ;;  %v4028_v56 = vadd.f32 %v3940_v43, %v1160_v59  ;;  %v2673_v60 = vmul.f32 -1.442695, %v4010_v9  ;;  %v2674_v8 = vmul.f32 -1.442695, %v4016_v30 }
 0x1ab   : > { %3246 = vpow2.f32 %v2666_v53  ;;  %v1156_v1 = vmul.f32 %v3579_v32, %v3934_v7  ;;  %v1142_v17 = vmul.f32 %v4816_v16, %v3934_v7 }
 0x1ac   : > { %3248 = vpow2.f32 %v2667_v40 }
 0x1ad   : > { %3250 = vpow2.f32 %v2668_v41  ;;  %v4045_v52 = vadd.f32 %v3940_v43, %v1156_v1  ;;  %v4050_v32 = vadd.f32 %v3940_v43, %v1142_v17  ;;  %v1157_v41 = vmul.f32 %v3586_v54, %v3934_v7 }
 0x1ae   : > { %3252 = vpow2.f32 %v2669_v6  ;;  %v1158_v6 = vmul.f32 %v3588_v55, %v3934_v7 }
 0x1af   : > { %3254 = vpow2.f32 %v2670_v0  ;;  %v1141_v0 = vmul.f32 %v4817_v33, %v3934_v7  ;;  %v4067_v7 = vpop.permute.xlu1 %1374 }
 0x1b0   : > { %3256 = vpow2.f32 %v2671_v2 }
 0x1b1   : > { %v3239_v31 = vpop.eup %3238  ;;  %3258 = vpow2.f32 %v2672_v27  ;;  %v2675_v27 = vmul.f32 -1.442695, %v4045_v52 }
 0x1b2   : > { %v3241_v61 = vpop.eup %3240  ;;  %v1249_v28 = vadd.f32 1.0, %v3239_v31  ;;  %3260 = vpow2.f32 %v2673_v60  ;;  %v4060_v60 = vadd.f32 %v3940_v43, %v1157_v41  ;;  %v2661_v31 = vmul.f32 -1.442695, %v4050_v32 }
 0x1b3   : > { %v3243_v63 = vpop.eup %3242  ;;  %v1251_v62 = vadd.f32 1.0, %v3241_v61  ;;  %3262 = vpow2.f32 %v2674_v8  ;;  %v4064_v61 = vadd.f32 %v3940_v43, %v1158_v6  ;;  %v4109_v41 = vpop.permute.xlu1 %1384 }
 0x1b4   : > { %v3245_v36 = vpop.eup %3244  ;;  %3264 = vrcp.f32 %v1249_v28  ;;  %v1250_v13 = vadd.f32 1.0, %v3243_v63  ;;  %v4070_v63 = vadd.f32 %v3940_v43, %v1141_v0 }
 0x1b5   : > { %v3247_v38 = vpop.eup %3246  ;;  %3266 = vrcp.f32 %v1251_v62  ;;  %v1252_v23 = vadd.f32 1.0, %v3245_v36 }
 0x1b6   : > { %v3249_v35 = vpop.eup %3248  ;;  %3268 = vrcp.f32 %v1250_v13  ;;  %v1253_v37 = vadd.f32 1.0, %v3247_v38  ;;  %v4073_v13 = vpop.permute.xlu0 %1379 }
 0x1b7   : > { %v3251_v42 = vpop.eup %3250  ;;  %3270 = vrcp.f32 %v1252_v23  ;;  %v1254_v10 = vadd.f32 1.0, %v3249_v35 }
 0x1b8   : > { %v3253_v45 = vpop.eup %3252  ;;  %3272 = vrcp.f32 %v1253_v37  ;;  %v1255_v51 = vadd.f32 1.0, %v3251_v42 }
 0x1b9   : > { %v3255_v18 = vpop.eup %3254  ;;  %3274 = vrcp.f32 %v1254_v10  ;;  %v1256_v21 = vadd.f32 1.0, %v3253_v45 }
 0x1ba   : > { %v3257_v53 = vpop.eup %3256  ;;  %3276 = vrcp.f32 %v1255_v51  ;;  %v1257_v40 = vadd.f32 1.0, %v3255_v18  ;;  %v4095_v51 = vmul.f32 -1.442695, %v4070_v63  ;;  %v4117_v0 = vpop.permute.xlu0 %1389 }
 0x1bb   : > { %v3259_v24 = vpop.eup %3258  ;;  %3278 = vrcp.f32 %v1256_v21  ;;  %v1258_v57 = vadd.f32 1.0, %v3257_v53 }
 0x1bc   : > { %v3261_v12 = vpop.eup %3260  ;;  %3280 = vrcp.f32 %v1257_v40  ;;  %v1259_v58 = vadd.f32 1.0, %v3259_v24 }
 0x1bd   : > { %v3263_v59 = vpop.eup %3262  ;;  %3282 = vrcp.f32 %v1258_v57  ;;  %v1260_v2 = vadd.f32 1.0, %v3261_v12 }
 0x1be   : > { %v3265_v8 = vpop.eup %3264  ;;  %3284 = vrcp.f32 %v1259_v58  ;;  %v1261_v54 = vadd.f32 1.0, %v3263_v59  ;;  %v3220_v59 = vld [vmem:[%s4780_s5 + $0xb8] sm:$0xff]  }
 0x1bf   : > { %v3267_v55 = vpop.eup %3266  ;;  %v1309_v28 = vmul.f32 %v3265_v8, %v3955_v15  ;;  %3286 = vrcp.f32 %v1260_v2  ;;  %v4080_v15 = vmul.f32 -1.442695, %v4060_v60  ;;  %1856 = vmatpush1.bf16.msra.mxu1 %v3220_v59 }
 0x1c0   : > { %v3269_v62 = vpop.eup %3268  ;;  %v1311_v36 = vmul.f32 %v3267_v55, %v3958_v47  ;;  %3288 = vrcp.f32 %v1261_v54  ;;  %v4087_v47 = vmul.f32 -1.442695, %v4064_v61  ;;  %2005 = vmatprep.subr.bf16.mxu1 %v4796_v4 }
 0x1c1   : > { %v3271_v38 = vpop.eup %3270  ;;  %v4076_v23 = vmul.f32 %v3994_v29, %v1309_v28  ;;  %v1310_v35 = vmul.f32 %v3269_v62, %v3961_v46  ;;  %3290 = vpow2.f32 %v2675_v27 }
 0x1c2   : > { %v3273_v37 = vpop.eup %3272  ;;  %v4083_v43 = vmul.f32 %v4021_v14, %v1311_v36  ;;  %v1312_v42 = vmul.f32 %v3271_v38, %v3964_v48  ;;  %3292 = vpow2.f32 %v2661_v31 }
 0x1c3   : > { %v3275_v10 = vpop.eup %3274  ;;  %v1470_v1 = vrot.slane %v4076_v23, 7  ;;  %v4091_v45 = vmul.f32 %v4030_v39, %v1310_v35  ;;  %v1313_v46 = vmul.f32 %v3273_v37, %v3967_v49  ;;  %v1531_v17 = vrot.slane %v4076_v23, 1 }
 0x1c4   : > { %v3277_v16 = vpop.eup %3276  ;;  %v1474_v48 = vrot.slane %v4083_v43, 7  ;;  %v4100_v18 = vmul.f32 %v4034_v5, %v1312_v42  ;;  %v1314_v21 = vmul.f32 %v3275_v10, %v3970_v50  ;;  %v1535_v40 = vrot.slane %v4083_v43, 1 }
 0x1c5   : > { %v3279_v53 = vpop.eup %3278  ;;  %v1472_v24 = vrot.slane %v4091_v45, 7  ;;  %v4106_v49 = vmul.f32 %v4036_v3, %v1313_v46  ;;  %v1315_v57 = vmul.f32 %v3277_v16, %v3980_v20  ;;  %v1533_v58 = vrot.slane %v4091_v45, 1  ;;  %v3221_v20 = vld [vmem:[%s4780_s5 + $0x118] sm:$0xff]  }
 0x1c6   : > { %v3281_v12 = vpop.eup %3280  ;;  %v1476_v6 = vrot.slane %v4100_v18, 7  ;;  %v4114_v50 = vmul.f32 %v4042_v19, %v1314_v21  ;;  %v1316_v33 = vmul.f32 %v3279_v53, %v3984_v22  ;;  %v1537_v27 = vrot.slane %v4100_v18, 1  ;;  %2225 = vmatpush1.bf16.msra.mxu0 %v3221_v20 }
 0x1c7   : > { %v3283_v2 = vpop.eup %3282  ;;  %v1478_v8 = vrot.slane %v4106_v49, 7  ;;  %v4128_v54 = vmul.f32 %v4047_v26, %v1315_v57  ;;  %v1317_v22 = vmul.f32 %v3281_v12, %v3990_v25  ;;  %v1539_v55 = vrot.slane %v4106_v49, 1 }
 0x1c8   : > { %v3285_v31 = vpop.eup %3284  ;;  %v4134_v62 = vmul.f32 %v4067_v7, %v1316_v33  ;;  %v1318_v36 = vmul.f32 %v3283_v2, %v3998_v34  ;;  %v1541_v35 = vrot.slane %v4114_v50, 1  ;;  %v3148_v28 = vpack.i.bf16 %v4091_v45, %v4076_v23 }
 0x1c9   : > { %v3287_v38 = vpop.eup %3286  ;;  %v4140_v42 = vmul.f32 %v4073_v13, %v1317_v22  ;;  %v1319_v25 = vmul.f32 %v3285_v31, %v4004_v44  ;;  %v1543_v46 = vrot.slane %v4128_v54, 1  ;;  %v4155_v44 = vpop.permute.xlu1 %1394  ;;  %v4243_v45 = vsel %vm566_vm2, %v1476_v6, %v1478_v8 }
 0x1ca   : > { %v3289_v10 = vpop.eup %3288  ;;  %v4147_v34 = vmul.f32 %v4109_v41, %v1318_v36  ;;  %v1320_v21 = vmul.f32 %v3287_v38, %v4010_v9  ;;  %v1545_v57 = vrot.slane %v4134_v62, 1  ;;  %v4163_v9 = vpop.permute.xlu0 %1399  ;;  %3149 = vrot.lane.b32.xlu0 %v3148_v28, %s3330_s30 }
 0x1cb   : > { %v3291_v53 = vpop.eup %3290  ;;  %v1486_v12 = vrot.slane %v4140_v42, 7  ;;  %v4153_v33 = vmul.f32 %v4117_v0, %v1319_v25  ;;  %v1321_v59 = vmul.f32 %v3289_v10, %v4016_v30  ;;  %v1547_v2 = vrot.slane %v4140_v42, 1 }
 0x1cc   : > { %v3293_v20 = vpop.eup %3292  ;;  %v1488_v22 = vrot.slane %v4147_v34, 7  ;;  %v4161_v31 = vmul.f32 %v4155_v44, %v1320_v21  ;;  %v1262_v36 = vadd.f32 1.0, %v3291_v53  ;;  %v1549_v38 = vrot.slane %v4147_v34, 1 }
 0x1cd   : > { %v1490_v25 = vrot.slane %v4153_v33, 7  ;;  %v4168_v4 = vmul.f32 %v4163_v9, %v1321_v59  ;;  %v1248_v16 = vadd.f32 1.0, %v3293_v20  ;;  %v1551_v30 = vrot.slane %v4153_v33, 1 }
 0x1ce   : > { %v1492_v10 = vrot.slane %v4161_v31, 7  ;;  %3294 = vrcp.f32 %v1262_v36  ;;  %v3153_v21 = vpack.i.bf16 %v4100_v18, %v4083_v43  ;;  %v1553_v37 = vrot.slane %v4161_v31, 1 }
 0x1cf   : > { %v1494_v53 = vrot.slane %v4168_v4, 7  ;;  %3296 = vrcp.f32 %v1248_v16  ;;  %v1534_v59 = vsel %vm1527_vm3, %v1531_v17, %v1533_v58  ;;  %v1536_v20 = vsel %vm1527_vm3, %v1533_v58, %v1535_v40 }
 0x1d0   : > { %3298 = vpow2.f32 %v4080_v15  ;;  %3154 = vrot.lane.b32.xlu1 %v3153_v21, %s3330_s30  ;;  %v1538_v16 = vsel %vm1527_vm3, %v1535_v40, %v1537_v27  ;;  %v4191_v15 = vpack.c.bf16 %v1536_v20, %v1534_v59  ;;  %v1540_v36 = vsel %vm1527_vm3, %v1537_v27, %v1539_v55 }
 0x1d1   : > { %3300 = vpow2.f32 %v4087_v47  ;;  %v3163_v21 = vpack.i.bf16 %v4134_v62, %v4128_v54  ;;  %v4199_v58 = vpack.c.bf16 %v1540_v36, %v1538_v16  ;;  %v3158_v40 = vpack.i.bf16 %v4114_v50, %v4106_v49 }
 0x1d2   : > { %3302 = vpow2.f32 %v4095_v51  ;;  %v3173_v47 = vpack.i.bf16 %v4161_v31, %v4153_v33  ;;  %2716 = vmatprep.mubr.msk.bf16.mxu1 %vm455_vm0, %v4191_v15  ;;  %v3168_v28 = vpack.i.bf16 %v4147_v34, %v4140_v42  ;;  %v4214_v51 = vsel %vm566_vm2, %v1472_v24, %v1474_v48 }
 0x1d3   : > { %v4221_v27 = vsel %vm566_vm2, %v1474_v48, %v1476_v6  ;;  %v4228_v42 = vsel %vm566_vm2, %v1470_v1, %v1472_v24  ;;  %v1555_v34 = vrot.slane %v4168_v4, 1  ;;  %2780 = vmatprep.mubr.msk.bf16.mxu0 %vm455_vm0, %v4199_v58  ;;  %v1542_v43 = vsel %vm1527_vm3, %v1539_v55, %v1541_v35  ;;  %3159 = vrot.lane.b32.xlu0 %v3158_v40, %s3330_s30 }
 0x1d4   : > { %3164 = vrot.lane.b32.xlu1 %v3163_v21, %s3330_s30  ;;  %v1544_v48 = vsel %vm1527_vm3, %v1541_v35, %v1543_v46  ;;  %v4818_v33 = vrot.slane %v4114_v50, 7  ;;  %v1546_v55 = vsel %vm1527_vm3, %v1543_v46, %v1545_v57  ;;  %v1548_v35 = vsel %vm1527_vm3, %v1545_v57, %v1547_v2 }
 0x1d5   : > { %v4246_v24 = vpack.c.bf16 %v1544_v48, %v1542_v43  ;;  %v4257_v59 = vpack.c.bf16 %v1548_v35, %v1546_v55  ;;  %v4819_v18 = vrot.slane %v4128_v54, 7  ;;  %v4821_v16 = vrot.slane %v4134_v62, 7  ;;  %v1335_v35 = vpop.permute.xlu0 %1334 }
 0x1d6   : > { %v4253_v31 = vsel %vm566_vm2, %v1478_v8, %v4818_v33  ;;  %v4820_v6 = vmov %v4818_v33  ;;  %v1550_v46 = vsel %vm1527_vm3, %v1547_v2, %v1549_v38  ;;  %v1552_v57 = vsel %vm1527_vm3, %v1549_v38, %v1551_v30 }
 0x1d7   : > { %v4264_v20 = vsel %vm566_vm2, %v4820_v6, %v4819_v18  ;;  %v4822_v49 = vmov %v4819_v18  ;;  %v4823_v36 = vmov %v4821_v16  ;;  %v4281_v50 = vsel %vm566_vm2, %v1486_v12, %v1488_v22  ;;  %3169 = vrot.lane.b32.xlu0 %v3168_v28, %s3330_s30 }
 0x1d8   : > { %v4271_v8 = vsel %vm566_vm2, %v4822_v49, %v4821_v16  ;;  %v4278_v21 = vsel %vm566_vm2, %v4823_v36, %v1486_v12  ;;  %v1554_v40 = vsel %vm1527_vm3, %v1551_v30, %v1553_v37  ;;  %v3295_v43 = vpop.eup %3294  ;;  %3174 = vrot.lane.b32.xlu1 %v3173_v47, %s3330_s30  ;;  %v4285_v54 = vpack.c.bf16 %v1552_v57, %v1550_v46 }
 0x1d9   : > { %v1556_v48 = vsel %vm1527_vm3, %v1553_v37, %v1555_v34  ;;  %v4289_v2 = vsel %vm566_vm2, %v1488_v22, %v1490_v25  ;;  %v3297_v38 = vpop.eup %3296  ;;  %v1322_v62 = vmul.f32 %v3295_v43, %v4045_v52  ;;  %v4296_v12 = vsel %vm566_vm2, %v1490_v25, %v1492_v10  ;;  %v4303_v37 = vpop.permute.xlu1 %1404  ;;  %v453_v52 = vld [vmem:[%s4776_s1 + $0x90] sm:$0xff] }
 0x1da   : > { %v4293_v33 = vpack.c.bf16 %v1556_v48, %v1554_v40  ;;  %v4301_v30 = vsel %vm566_vm2, %v1492_v10, %v1494_v53  ;;  %v3299_v47 = vpop.eup %3298  ;;  %v1308_v22 = vmul.f32 %v3297_v38, %v4050_v32 }
 0x1db   : > { %v3301_v28 = vpop.eup %3300  ;;  %v1442_v55 = vmul.f32 %v4303_v37, %v1322_v62  ;;  %v1263_v25 = vadd.f32 1.0, %v3299_v47  ;;  %1419 = vperm.xlu0 %3146, %v453_v52  }
 0x1dc   : > { %v3303_v18 = vpop.eup %3302  ;;  %v1428_v6 = vmul.f32 %v1335_v35, %v1308_v22  ;;  %v1264_v16 = vadd.f32 1.0, %v3301_v28  ;;  %v4333_v28 = vpop.permute.xlu0 %1414 }
 0x1dd   : > { %v1496_v49 = vrot.slane %v1442_v55, 7  ;;  %v1557_v10 = vrot.slane %v1442_v55, 1  ;;  %3304 = vrcp.f32 %v1263_v25  ;;  %v1247_v46 = vadd.f32 1.0, %v3303_v18  ;;  %v4326_v62 = vpop.permute.xlu1 %1409 }
 0x1de   : > { %v1468_v57 = vrot.slane %v1428_v6, 7  ;;  %v1529_v36 = vrot.slane %v1428_v6, 1  ;;  %3306 = vrcp.f32 %v1264_v16  ;;  %v3178_v32 = vpack.i.bf16 %v1442_v55, %v4168_v4 }
 0x1df   : > { %3308 = vrcp.f32 %v1247_v46  ;;  %v1558_v40 = vsel %vm1527_vm3, %v1555_v34, %v1557_v10  ;;  %v4315_v43 = vsel %vm566_vm2, %v1494_v53, %v1496_v49 }
 0x1e0   : > { %3179 = vrot.lane.b32.xlu1 %v3178_v32, %s3330_s30  ;;  %v1471_v48 = vsel %vm566_vm2, %v1468_v57, %v1470_v1  ;;  %v4324_v38 = vsel %vm1527_vm3, %v1529_v36, %v1531_v17 }
 0x1e1   : > { %v1330_v17 = vpop.permute.xlu1 %1329 }
 0x1e7   : > { %v3305_v47 = vpop.eup %3304 }
 0x1e8   : > { %v3307_v34 = vpop.eup %3306  ;;  %v1323_v4 = vmul.f32 %v3305_v47, %v4060_v60 }
 0x1e9   : > { %v3309_v22 = vpop.eup %3308  ;;  %v1324_v53 = vmul.f32 %v3307_v34, %v4064_v61 }
 0x1ea   : > { %v4331_v52 = vmul.f32 %v4326_v62, %v1323_v4  ;;  %v1307_v1 = vmul.f32 %v3309_v22, %v4070_v63 }
 0x1eb   : > { %v4337_v23 = vmul.f32 %v4333_v28, %v1324_v53 }
 0x1ec   : > { %v1498_v55 = vrot.slane %v4331_v52, 7  ;;  %v1559_v35 = vrot.slane %v4331_v52, 1  ;;  %v4341_v25 = vmul.f32 %v1330_v17, %v1307_v1 }
 0x1ed   : > { %v1561_v60 = vrot.slane %v4337_v23, 1  ;;  %v3183_v61 = vpack.i.bf16 %v4337_v23, %v4331_v52  ;;  %v3230_v52 = vld [vmem:[%s4780_s5 + $0x40] sm:$0xff]  }
 0x1ee   : > { %v4798_v18 = vrot.slane %v4341_v25, 7  ;;  %v1528_v16 = vrot.slane %v4341_v25, 1  ;;  %v3188_v63 = vpack.i.bf16 %v1428_v6, %v4341_v25  ;;  %v1560_v46 = vsel %vm1527_vm3, %v1557_v10, %v1559_v35  ;;  %v454_v6 = vld [vmem:[%s4776_s1 + $0x98] sm:$0xff] }
 0x1ef   : > { %3184 = vrot.lane.b32.xlu0 %v3183_v61, %s3330_s30  ;;  %v4351_v32 = vpack.c.bf16 %v1560_v46, %v1558_v40  ;;  %v4356_v47 = vsel %vm1527_vm3, %v1559_v35, %v1561_v60  ;;  %v4361_v34 = vsel %vm566_vm2, %v1496_v49, %v1498_v55  ;;  %v2678_v49 = vmul.f32 -1.442695, %v4025_v11 }
 0x1f0   : > { %3189 = vrot.lane.b32.xlu1 %v3188_v63, %s3330_s30  ;;  %v4370_v10 = vsel %vm566_vm2, %v4798_v18, %v1468_v57  ;;  %v4373_v40 = vsel %vm1527_vm3, %v1528_v16, %v1529_v36 }
 0x1f1   : > { %3310 = vpow2.f32 %v2678_v49  ;;  %v3222_v49 = vld [vmem:[%s4780_s5] sm:$0xff]  }
 0x1f3   : > { %1424 = vperm.xlu0 %3146, %v454_v6  }
 0x23c   : > { %v3150_v17 = vpop.permute.xlu0 %3149 }
 0x23d   : > { %v3152_v35 = vunpack.i.h.bf16 %v3150_v17  ;;  %v3151_v61 = vunpack.i.l.bf16 %v3150_v17 }
 0x23f   : > { %v1650_v46 = vsel %vm455_vm0, %v1471_v48, %v3151_v61  ;;  %v1651_v6 = vsel %vm455_vm0, %v4228_v42, %v3152_v35  ;;  %v3223_v61 = vld [vmem:[%s4780_s5 + $0x8] sm:$0xff]  }
 0x242   : > { %v3155_v22 = vpop.permute.xlu1 %3154 }
 0x243   : > { %v3157_v53 = vunpack.i.h.bf16 %v3155_v22  ;;  %v3156_v1 = vunpack.i.l.bf16 %v3155_v22  ;;  %v3311_v22 = vpop.eup %3310 }
 0x245   : > { %v1652_v57 = vsel %vm455_vm0, %v4214_v51, %v3156_v1  ;;  %v1653_v36 = vsel %vm455_vm0, %v4221_v27, %v3157_v53  ;;  %v3160_v18 = vpop.permute.xlu0 %3159  ;;  %v4390_v51 = vpack.c.bf16 %v1651_v6, %v1650_v46  ;;  %v4824_v46 = vmov 0  }
 0x246   : > { %v4382_v16 = vpack.c.bf16 %v1653_v36, %v1652_v57  ;;  %v3165_v63 = vpop.permute.xlu1 %3164  ;;  %v3162_v1 = vunpack.i.h.bf16 %v3160_v18  ;;  %v3161_v27 = vunpack.i.l.bf16 %v3160_v18 }
 0x247   : > { %v3167_v17 = vunpack.i.h.bf16 %v3165_v63  ;;  %v3166_v4 = vunpack.i.l.bf16 %v3165_v63  ;;  %1866 = vmatmul.mubr.bf16.vlgmr.msra.gmra.mrb[0].mxu1 %v4390_v51 }
 0x248   : > { %2235 = vmatmul.mubr.bf16.vlgmr.msra.gmra.mrb[4].mxu0 %v4382_v16  ;;  %2717 = vmatprep.mubr.msk.bf16.mxu1 %vm455_vm0, %v4199_v58  ;;  %v1654_v18 = vsel %vm455_vm0, %v4243_v45, %v3161_v27  ;;  %v1655_v35 = vsel %vm455_vm0, %v4253_v31, %v3162_v1 }
 0x249   : > { %2781 = vmatprep.mubr.msk.bf16.mxu0 %vm455_vm0, %v4246_v24  ;;  %v1656_v42 = vsel %vm455_vm0, %v4264_v20, %v3166_v4  ;;  %v1657_v48 = vsel %vm455_vm0, %v4271_v8, %v3167_v17  ;;  %2006 = vmatpush1.bf16.msra.mxu1 %v3222_v49  ;;  %v1265_v20 = vadd.f32 1.0, %v3311_v22  ;;  %v3170_v36 = vpop.permute.xlu0 %3169  ;;  %v4411_v63 = vpack.c.bf16 %v1655_v35, %v1654_v18  ;;  %v3224_v22 = vld [vmem:[%s4780_s5 + $0x10] sm:$0xff]   ;;  %v3226_v35 = vld [vmem:[%s4780_s5 + $0x20] sm:$0xff]  }
 0x24a   : > { %v3175_v53 = vpop.permute.xlu1 %3174  ;;  %v4409_v57 = vpack.c.bf16 %v1657_v48, %v1656_v42  ;;  %2007 = vmatprep.subr.bf16.mxu1 %v4824_v46  ;;  %v3172_v6 = vunpack.i.h.bf16 %v3170_v36  ;;  %v3171_v49 = vunpack.i.l.bf16 %v3170_v36 }
 0x24b   : > { %v3177_v4 = vunpack.i.h.bf16 %v3175_v53  ;;  %v3176_v8 = vunpack.i.l.bf16 %v3175_v53  ;;  %3312 = vrcp.f32 %v1265_v20 }
 0x24c   : > { %v1658_v17 = vsel %vm455_vm0, %v4278_v21, %v3171_v49  ;;  %v1659_v1 = vsel %vm455_vm0, %v4281_v50, %v3172_v6  ;;  %v3225_v21 = vld [vmem:[%s4780_s5 + $0x18] sm:$0xff]   ;;  %v3228_v6 = vld [vmem:[%s4780_s5 + $0x30] sm:$0xff]   ;;  %v1500_v49 = vrot.slane %v4337_v23, 7 }
 0x24d   : > { %v1660_v45 = vsel %vm455_vm0, %v4289_v2, %v3176_v8  ;;  %v1661_v31 = vsel %vm455_vm0, %v4296_v12, %v3177_v4  ;;  %2008 = vmatpush1.bf16.msra.mxu1 %v3223_v61  ;;  %v4428_v2 = vpack.c.bf16 %v1659_v1, %v1658_v17  ;;  %v2679_v12 = vmul.f32 -1.442695, %v4028_v56 }
 0x24e   : > { %v4425_v27 = vpack.c.bf16 %v1661_v31, %v1660_v45  ;;  %2009 = vmatprep.subr.bf16.mxu1 %v4824_v46 }
 0x24f   : > { %1874 = vmatmul.mubr.bf16.gmra.mrb[4].mxu1 %v4382_v16  ;;  %3314 = vpow2.f32 %v2679_v12 }
 0x250   : > { %2243 = vmatmul.mubr.bf16.gmra.mrb[8].mxu0 %v4411_v63  ;;  %2718 = vmatprep.mubr.msk.bf16.mxu1 %vm455_vm0, %v4246_v24 }
 0x251   : > { %2782 = vmatprep.mubr.msk.bf16.mxu0 %vm455_vm0, %v4257_v59  ;;  %2010 = vmatpush1.bf16.msra.mxu1 %v3224_v22 }
 0x252   : > { %v3180_v42 = vpop.permute.xlu1 %3179  ;;  %2011 = vmatprep.subr.bf16.mxu1 %v4824_v46 }
 0x253   : > { %v3182_v50 = vunpack.i.h.bf16 %v3180_v42  ;;  %v3181_v48 = vunpack.i.l.bf16 %v3180_v42 }
 0x255   : > { %v1662_v53 = vsel %vm455_vm0, %v4301_v30, %v3181_v48  ;;  %v1663_v18 = vsel %vm455_vm0, %v4315_v43, %v3182_v50  ;;  %2012 = vmatpush1.bf16.msra.mxu1 %v3225_v21  ;;  %v3313_v20 = vpop.eup %3312  ;;  %v3227_v30 = vld [vmem:[%s4780_s5 + $0x28] sm:$0xff]   ;;  %v3229_v21 = vld [vmem:[%s4780_s5 + $0x38] sm:$0xff]  }
 0x256   : > { %v4448_v61 = vpack.c.bf16 %v1663_v18, %v1662_v53  ;;  %2013 = vmatprep.subr.bf16.mxu1 %v4824_v46  ;;  %v1325_v43 = vmul.f32 %v3313_v20, %v4025_v11  ;;  %v4825_v53 = vrot.slane %v4341_v25, 7 }
 0x257   : > { %1882 = vmatmul.mubr.bf16.gmra.mrb[8].mxu1 %v4411_v63 }
 0x258   : > { %2251 = vmatmul.mubr.bf16.gmra.mrb[12].mxu0 %v4409_v57  ;;  %2719 = vmatprep.mubr.msk.bf16.mxu1 %vm455_vm0, %v4257_v59  ;;  %v1526_v18 = vsel %vm566_vm2, 0.0, %v4825_v53  ;;  %v2367_v53 = vld [vmem:[%s4571_s17 + $0x78] sm:$0xff] }
 0x259   : > { %2783 = vmatprep.mubr.msk.bf16.mxu0 %vm455_vm0, %v4285_v54  ;;  %2014 = vmatpush1.bf16.msra.mxu1 %v3226_v35  ;;  %v3315_v8 = vpop.eup %3314 }
 0x25a   : > { %2015 = vmatprep.subr.bf16.mxu1 %v4824_v46  ;;  %v1420_v4 = vpop.permute.xlu0 %1419  ;;  %v1266_v11 = vadd.f32 1.0, %v3315_v8 }
 0x25b   : > { %v4462_v36 = vmul.f32 %v1420_v4, %v1325_v43 }
 0x25c   : > { %3316 = vrcp.f32 %v1266_v11 }
 0x25d   : > { %2016 = vmatpush1.bf16.msra.mxu1 %v3227_v30  ;;  %v1563_v45 = vrot.slane %v4462_v36, 1 }
 0x25e   : > { %2017 = vmatprep.subr.bf16.mxu1 %v4824_v46 }
 0x25f   : > { %1890 = vmatmul.mubr.bf16.gmra.mrb[12].mxu1 %v4409_v57  ;;  %v1564_v22 = vsel %vm1527_vm3, %v1561_v60, %v1563_v45  ;;  %v1501_v60 = vsel %vm566_vm2, %v1498_v55, %v1500_v49  ;;  %v3231_v55 = vld [vmem:[%s4780_s5 + $0x48] sm:$0xff]  }
 0x260   : > { %2259 = vmatmul.mubr.bf16.gmra.mrb[16].mxu0 %v4428_v2  ;;  %2720 = vmatprep.mubr.msk.bf16.mxu1 %vm455_vm0, %v4285_v54  ;;  %v1685_v42 = vpack.c.bf16 %v1564_v22, %v4356_v47 }
 0x261   : > { %v3185_v31 = vpop.permute.xlu0 %3184  ;;  %2784 = vmatprep.mubr.msk.bf16.mxu0 %vm455_vm0, %v4293_v33  ;;  %2018 = vmatpush1.bf16.msra.mxu1 %v3228_v6  ;;  %v3233_v6 = vld [vmem:[%s4780_s5 + $0x58] sm:$0xff]  }
 0x262   : > { %v3190_v17 = vpop.permute.xlu1 %3189  ;;  %v3187_v1 = vunpack.i.h.bf16 %v3185_v31  ;;  %v3186_v12 = vunpack.i.l.bf16 %v3185_v31  ;;  %2019 = vmatprep.subr.bf16.mxu1 %v4824_v46  ;;  %v1502_v31 = vrot.slane %v4462_v36, 7 }
 0x263   : > { %v3192_v50 = vunpack.i.h.bf16 %v3190_v17  ;;  %v3191_v48 = vunpack.i.l.bf16 %v3190_v17 }
 0x264   : > { %v1664_v47 = vsel %vm455_vm0, %v4361_v34, %v3186_v12  ;;  %v1665_v35 = vsel %vm455_vm0, %v1501_v60, %v3187_v1  ;;  %v3232_v34 = vld [vmem:[%s4780_s5 + $0x50] sm:$0xff]  }
 0x265   : > { %v1648_v20 = vsel %vm455_vm0, %v1526_v18, %v3191_v48  ;;  %v1649_v30 = vsel %vm455_vm0, %v4370_v10, %v3192_v50  ;;  %v1684_v43 = vpack.c.bf16 %v1665_v35, %v1664_v47  ;;  %2020 = vmatpush1.bf16.msra.mxu1 %v3229_v21  ;;  %v4826_v48 = vpack.c.bf16 %v4324_v38, %v4373_v40  ;;  %v2359_v38 = vld [vmem:[%s4571_s17 + $0x38] sm:$0xff]  ;;  %v2366_v60 = vld [vmem:[%s4571_s17 + $0x70] sm:$0xff]  ;;  %v2368_v35 = vld [vmem:[%s4571_s17 + $0x80] sm:$0xff] }
 0x266   : > { %v1668_v4 = vpack.c.bf16 %v1649_v30, %v1648_v20  ;;  %2021 = vmatprep.subr.bf16.mxu1 %v4824_v46  ;;  %v3317_v25 = vpop.eup %3316  ;;  %v2376_v47 = vpack.c.bf16 %v2367_v53, %v2366_v60  ;;  %v2369_v20 = vld [vmem:[%s4571_s17 + $0x88] sm:$0xff] }
 0x267   : > { %1898 = vmatmul.mubr.bf16.gmra.mrb[16].mxu1 %v4428_v2  ;;  %v1326_v10 = vmul.f32 %v3317_v25, %v4028_v56  ;;  %v3234_v56 = vld [vmem:[%s4783_s8] sm:$0xff]   ;;  %v2377_v30 = vpack.c.bf16 %v2369_v20, %v2368_v35 }
 0x268   : > { %2267 = vmatmul.mubr.bf16.gmra.mrb[20].mxu0 %v4425_v27  ;;  %2721 = vmatprep.mubr.msk.bf16.mxu1 %vm455_vm0, %v4293_v33 }
 0x269   : > { %2785 = vmatprep.mubr.msk.bf16.mxu0 %vm455_vm0, %v4351_v32  ;;  %2022 = vmatpush1.bf16.msra.mxu1 %v3230_v52 }
 0x26a   : > { %2023 = vmatprep.subr.bf16.mxu1 %v4824_v46 }
 0x26d   : > { %2024 = vmatpush1.bf16.msra.mxu1 %v3231_v55  ;;  %v1503_v55 = vsel %vm566_vm2, %v1500_v49, %v1502_v31 }
 0x26e   : > { %2025 = vmatprep.subr.bf16.mxu1 %v4824_v46 }
 0x26f   : > { %1906 = vmatmul.mubr.bf16.gmra.mrb[20].mxu1 %v4425_v27 }
 0x270   : > { %2275 = vmatmul.mubr.bf16.gmra.mrb[24].mxu0 %v4448_v61  ;;  %2722 = vmatprep.mubr.msk.bf16.mxu1 %vm455_vm0, %v4351_v32 }
 0x271   : > { %2786 = vmatprep.mubr.msk.bf16.mxu0 %vm455_vm0, %v1685_v42  ;;  %2026 = vmatpush1.bf16.msra.mxu1 %v3232_v34 }
 0x272   : > { %v1425_v8 = vpop.permute.xlu0 %1424  ;;  %2027 = vmatprep.subr.bf16.mxu1 %v4824_v46 }
 0x273   : > { %v1446_v11 = vmul.f32 %v1425_v8, %v1326_v10 }
 0x275   : > { %v1504_v22 = vrot.slane %v1446_v11, 7  ;;  %v1565_v17 = vrot.slane %v1446_v11, 1  ;;  %v3193_v1 = vpack.i.bf16 %v1446_v11, %v4462_v36  ;;  %2028 = vmatpush1.bf16.msra.mxu1 %v3233_v6 }
 0x276   : > { %3029 = vmatprep.subr.bf16.mxu1 %v3234_v56 }
 0x277   : > { %v1587_v12 = vsel %vm1527_vm3, %v1565_v17, 0.0  ;;  %3194 = vrot.lane.b32.xlu1 %v3193_v1, %s3330_s30  ;;  %v1566_v21 = vsel %vm1527_vm3, %v1563_v45, %v1565_v17  ;;  %v4537_v46 = vsel %vm566_vm2, %v1502_v31, %v1504_v22  ;;  %1914 = vmatmul.mubr.bf16.gmra.mrb[24].mxu1 %v4448_v61  ;;  %v3235_v45 = vld [vmem:[%s4783_s8 + $0x8] sm:$0xff]  }
 0x278   : > { %2283 = vmatmul.mubr.bf16.gmra.mrb[28].mxu0 %v1684_v43  ;;  %v1687_v50 = vpack.c.bf16 %v1587_v12, %v1566_v21  ;;  %2723 = vmatprep.mubr.msk.bf16.mxu1 %vm455_vm0, %v1685_v42  ;;  %v2365_v42 = vld [vmem:[%s4571_s17 + $0x68] sm:$0xff] }
 0x27a   : > { %2787 = vmatprep.mubr.msk.bf16.mxu0 %vm455_vm0, %v1687_v50 }
 0x27f   : > { %1922 = vmatmul.mubr.bf16.gmra.mrb[28].mxu1 %v1684_v43 }
 0x280   : > { %2736 = vmatprep.mubr.msk.bf16.mxu1 %vm455_vm0, %v4826_v48 }
 0x287   : > { %2038 = vmatmul.mubr.bf16.vlgmr.msra.gmra.mrb[32].mxu1 %v1668_v4 }
 0x288   : > { %2737 = vmatprep.mubr.msk.bf16.mxu1 %vm455_vm0, %v4191_v15  ;;  %3030 = vmatpush3.bf16.msra.mxu1 %v3234_v56  ;;  %v2354_v15 = vld [vmem:[%s4571_s17 + $0x10] sm:$0xff] }
 0x289   : > { %3031 = vmatprep.subr.bf16.mxu1 %v3235_v45 }
 0x28c   : > { %3032 = vmatpush3.bf16.msra.mxu1 %v3235_v45 }
 0x28f   : > { %2046 = vmatmul.mubr.bf16.gmra.mrb[36].mxu1 %v4390_v51  ;;  %v2361_v51 = vld [vmem:[%s4571_s17 + $0x48] sm:$0xff] }
 0x290   : > { %2738 = vmatprep.mubr.msk.bf16.mxu1 %vm455_vm0, %v4199_v58  ;;  %v2355_v58 = vld [vmem:[%s4571_s17 + $0x18] sm:$0xff] }
 0x297   : > { %2054 = vmatmul.mubr.bf16.gmra.mrb[40].mxu1 %v4382_v16  ;;  %v2360_v16 = vld [vmem:[%s4571_s17 + $0x40] sm:$0xff] }
 0x298   : > { %2739 = vmatprep.mubr.msk.bf16.mxu1 %vm455_vm0, %v4246_v24  ;;  %v2370_v24 = vpack.c.bf16 %v2355_v58, %v2354_v15 }
 0x29f   : > { %2062 = vmatmul.mubr.bf16.gmra.mrb[44].mxu1 %v4411_v63  ;;  %v2363_v63 = vld [vmem:[%s4571_s17 + $0x58] sm:$0xff] }
 0x2a0   : > { %2740 = vmatprep.mubr.msk.bf16.mxu1 %vm455_vm0, %v4257_v59  ;;  %v2356_v59 = vld [vmem:[%s4571_s17 + $0x20] sm:$0xff] }
 0x2a7   : > { %2070 = vmatmul.mubr.bf16.gmra.mrb[48].mxu1 %v4409_v57  ;;  %v2362_v57 = vld [vmem:[%s4571_s17 + $0x50] sm:$0xff] }
 0x2a8   : > { %2741 = vmatprep.mubr.msk.bf16.mxu1 %vm455_vm0, %v4285_v54  ;;  %v2357_v54 = vld [vmem:[%s4571_s17 + $0x28] sm:$0xff] }
 0x2af   : > { %2078 = vmatmul.mubr.bf16.gmra.mrb[52].mxu1 %v4428_v2  ;;  %v2374_v2 = vpack.c.bf16 %v2363_v63, %v2362_v57 }
 0x2b0   : > { %2742 = vmatprep.mubr.msk.bf16.mxu1 %vm455_vm0, %v4293_v33  ;;  %v2358_v33 = vld [vmem:[%s4571_s17 + $0x30] sm:$0xff] }
 0x2b1   : > { %v2372_v40 = vpack.c.bf16 %v2359_v38, %v2358_v33 }
 0x2b7   : > { %2086 = vmatmul.mubr.bf16.gmra.mrb[56].mxu1 %v4425_v27  ;;  %v2373_v27 = vpack.c.bf16 %v2361_v51, %v2360_v16 }
 0x2b8   : > { %2743 = vmatprep.mubr.msk.bf16.mxu1 %vm455_vm0, %v4351_v32  ;;  %v2371_v32 = vpack.c.bf16 %v2357_v54, %v2356_v59 }
 0x2bf   : > { %2094 = vmatmul.mubr.bf16.gmra.mrb[60].mxu1 %v4448_v61  ;;  %v2364_v61 = vld [vmem:[%s4571_s17 + $0x60] sm:$0xff] }
 0x2c0   : > { %3033 = vmatprep.mubr.msk.bf16.mxu1 %vm2394_vm4, %v2370_v24  ;;  %v2375_v18 = vpack.c.bf16 %v2365_v42, %v2364_v61 }
 0x2c7   : > { %3034 = vmatmul.mubr.msk.bf16.vlgmr.msra.gmra.mrb[64].mxu1 %vm2394_vm4, %v2371_v32 }
 0x2c8   : > { %3037 = vmatprep.mubr.msk.bf16.mxu1 %vm2394_vm4, %v2372_v40 }
 0x2cf   : > { %3038 = vmatmul.mubr.msk.bf16.gmra.mrb[68].mxu1 %vm2394_vm4, %v2373_v27 }
 0x2d0   : > { %3041 = vmatprep.mubr.msk.bf16.mxu1 %vm2394_vm4, %v2374_v2 }
 0x2d7   : > { %3042 = vmatmul.mubr.msk.bf16.gmra.mrb[72].mxu1 %vm2394_vm4, %v2375_v18 }
 0x2d8   : > { %3045 = vmatprep.mubr.msk.bf16.mxu1 %vm2394_vm4, %v2376_v47 }
 0x2df   : > { %3046 = vmatmul.mubr.msk.bf16.gmra.mrb[76].mxu1 %vm2394_vm4, %v2377_v30 }
 0x2e9   : > { %v3195_v43 = vpop.permute.xlu1 %3194 }
 0x2ea   : > { %v3197_v4 = vunpack.i.h.bf16 %v3195_v43  ;;  %v3196_v52 = vunpack.i.l.bf16 %v3195_v43 }
 0x2ec   : > { %v1666_v25 = vsel %vm455_vm0, %v1503_v55, %v3196_v52  ;;  %v1667_v34 = vsel %vm455_vm0, %v4537_v46, %v3197_v4 }
 0x2ed   : > { %v1686_v10 = vpack.c.bf16 %v1667_v34, %v1666_v25 }
 0x2ef   : > { %2291 = vmatmul.mubr.bf16.gmra.mrb[32].mxu0 %v1686_v10 }
 0x31a   : > { %v1867_v6 = vpop.f32.mrb[0].mxu1 }
 0x31b   : > { %v4609_v8 = vpop.f32.mrb[4].mxu0  ;;  %v1869_v56 = vpop.f32.mrb[1].mxu1 }
 0x31c   : > { %v2238_v11 = vpop.f32.mrb[5].mxu0  ;;  %v1870_v17 = vpop.f32.mrb[2].mxu1 }
 0x31d   : > { %v4611_v22 = vpop.f32.mrb[6].mxu0  ;;  %v1872_v1 = vpop.f32.mrb[3].mxu1 }
 0x31e   : > { %v2241_v36 = vpop.f32.mrb[7].mxu0 }
 0x322   : > { %v1875_v49 = vpop.f32.mrb[4].mxu1 }
 0x323   : > { %v4613_v23 = vpop.f32.mrb[8].mxu0  ;;  %v1877_v12 = vpop.f32.mrb[5].mxu1 }
 0x324   : > { %v2246_v31 = vpop.f32.mrb[9].mxu0  ;;  %v1878_v46 = vpop.f32.mrb[6].mxu1 }
 0x325   : > { %v4615_v21 = vpop.f32.mrb[10].mxu0  ;;  %v1880_v48 = vpop.f32.mrb[7].mxu1 }
 0x326   : > { %v2249_v50 = vpop.f32.mrb[11].mxu0 }
 0x32a   : > { %v1883_v15 = vpop.f32.mrb[8].mxu1 }
 0x32b   : > { %v4617_v45 = vpop.f32.mrb[12].mxu0  ;;  %v1885_v24 = vpop.f32.mrb[9].mxu1 }
 0x32c   : > { %v2254_v58 = vpop.f32.mrb[13].mxu0  ;;  %v1886_v54 = vpop.f32.mrb[10].mxu1 }
 0x32d   : > { %v4619_v59 = vpop.f32.mrb[14].mxu0  ;;  %v1888_v38 = vpop.f32.mrb[11].mxu1 }
 0x32e   : > { %v2257_v33 = vpop.f32.mrb[15].mxu0 }
 0x332   : > { %v1891_v40 = vpop.f32.mrb[12].mxu1 }
 0x333   : > { %v4621_v32 = vpop.f32.mrb[16].mxu0  ;;  %v1893_v51 = vpop.f32.mrb[13].mxu1 }
 0x334   : > { %v2262_v16 = vpop.f32.mrb[17].mxu0  ;;  %v1894_v63 = vpop.f32.mrb[14].mxu1 }
 0x335   : > { %v4623_v57 = vpop.f32.mrb[18].mxu0  ;;  %v1896_v2 = vpop.f32.mrb[15].mxu1 }
 0x336   : > { %v2265_v27 = vpop.f32.mrb[19].mxu0 }
 0x33a   : > { %v1899_v42 = vpop.f32.mrb[16].mxu1 }
 0x33b   : > { %v4625_v61 = vpop.f32.mrb[20].mxu0  ;;  %v1901_v53 = vpop.f32.mrb[17].mxu1 }
 0x33c   : > { %v2270_v60 = vpop.f32.mrb[21].mxu0  ;;  %v1902_v47 = vpop.f32.mrb[18].mxu1 }
 0x33d   : > { %v4627_v18 = vpop.f32.mrb[22].mxu0  ;;  %v1904_v20 = vpop.f32.mrb[19].mxu1 }
 0x33e   : > { %v2273_v35 = vpop.f32.mrb[23].mxu0 }
 0x342   : > { %v1907_v43 = vpop.f32.mrb[20].mxu1 }
 0x343   : > { %v4629_v30 = vpop.f32.mrb[24].mxu0  ;;  %v1909_v52 = vpop.f32.mrb[21].mxu1 }
 0x344   : > { %v2278_v4 = vpop.f32.mrb[25].mxu0  ;;  %v1910_v25 = vpop.f32.mrb[22].mxu1 }
 0x345   : > { %v4631_v55 = vpop.f32.mrb[26].mxu0  ;;  %v1912_v10 = vpop.f32.mrb[23].mxu1 }
 0x346   : > { %v2281_v34 = vpop.f32.mrb[27].mxu0 }
 0x34a   : > { %v1915_v56 = vpop.f32.mrb[24].mxu1 }
 0x34b   : > { %v4633_v11 = vpop.f32.mrb[28].mxu0  ;;  %v1917_v1 = vpop.f32.mrb[25].mxu1 }
 0x34c   : > { %v2286_v36 = vpop.f32.mrb[29].mxu0  ;;  %v1918_v12 = vpop.f32.mrb[26].mxu1 }
 0x34d   : > { %v4635_v31 = vpop.f32.mrb[30].mxu0  ;;  %v1920_v48 = vpop.f32.mrb[27].mxu1 }
 0x34e   : > { %v2289_v50 = vpop.f32.mrb[31].mxu0 }
 0x352   : > { %v1923_v58 = vpop.f32.mrb[28].mxu1 }
 0x353   : > { %v1925_v24 = vpop.f32.mrb[29].mxu1 }
 0x354   : > { %v4637_v33 = vpop.f32.mrb[30].mxu1 }
 0x355   : > { %v1928_v38 = vpop.f32.mrb[31].mxu1 }
 0x35a   : > { %v2039_v16 = vpop.f32.mrb[32].mxu1 }
 0x35b   : > { %v2040_v51 = vadd.f32 %v2039_v16, %v1867_v6  ;;  %v2041_v27 = vpop.f32.mrb[33].mxu1 }
 0x35c   : > { %v2042_v2 = vpop.f32.mrb[34].mxu1 }
 0x35d   : > { %v2299_v60 = vadd.f32 %v4609_v8, %v2040_v51  ;;  %v2043_v53 = vadd.f32 %v2042_v2, %v1870_v17  ;;  %v2044_v35 = vpop.f32.mrb[35].mxu1 }
 0x35f   : > { %v2300_v20 = vadd.f32 %v4611_v22, %v2043_v53 }
 0x362   : > { %v2047_v4 = vpop.f32.mrb[36].mxu1 }
 0x363   : > { %v2048_v52 = vadd.f32 %v2047_v4, %v1875_v49  ;;  %v2049_v34 = vpop.f32.mrb[37].mxu1 }
 0x364   : > { %v2050_v10 = vpop.f32.mrb[38].mxu1 }
 0x365   : > { %v2301_v36 = vadd.f32 %v4613_v23, %v2048_v52  ;;  %v2051_v1 = vadd.f32 %v2050_v10, %v1878_v46  ;;  %v2052_v50 = vpop.f32.mrb[39].mxu1 }
 0x367   : > { %v2302_v48 = vadd.f32 %v4615_v21, %v2051_v1 }
 0x36a   : > { %v2055_v24 = vpop.f32.mrb[40].mxu1 }
 0x36b   : > { %v2056_v6 = vadd.f32 %v2055_v24, %v1883_v15  ;;  %v2057_v38 = vpop.f32.mrb[41].mxu1 }
 0x36c   : > { %v2058_v16 = vpop.f32.mrb[42].mxu1 }
 0x36d   : > { %v4644_v8 = vadd.f32 %v4617_v45, %v2056_v6  ;;  %v2059_v17 = vadd.f32 %v2058_v16, %v1886_v54  ;;  %v2060_v51 = vpop.f32.mrb[43].mxu1 }
 0x36e   : > { %v4673_v51 = vld [vmem:[%s383_s20] ss:$0 sm:$0xff] }
 0x36f   : > { %v4647_v22 = vadd.f32 %v4619_v59, %v2059_v17 }
 0x372   : > { %v2063_v49 = vpop.f32.mrb[44].mxu1 }
 0x373   : > { %v2064_v27 = vadd.f32 %v2063_v49, %v1891_v40  ;;  %v2065_v2 = vpop.f32.mrb[45].mxu1 }
 0x374   : > { %v2066_v23 = vpop.f32.mrb[46].mxu1  ;;  %v2323_v2 = vadd.f32 %v4673_v51, %v2300_v20 }
 0x375   : > { %v2305_v46 = vadd.f32 %v4621_v32, %v2064_v27  ;;  %v2067_v53 = vadd.f32 %v2066_v23, %v1894_v63  ;;  %v2068_v21 = vpop.f32.mrb[47].mxu1  ;;  %v2325_v27 = vadd.f32 %v4673_v51, %v2302_v48 }
 0x376   : > { %v2339_v20 = vmul.f32 %v2323_v2, %v4030_v39 }
 0x377   : > { %v2306_v15 = vadd.f32 %v4623_v57, %v2067_v53  ;;  %v4686_v53 = vld [vmem:[%s4784_s9] ss:$0 sm:$0xff] }
 0x37a   : > { %v2071_v35 = vpop.f32.mrb[48].mxu1 }
 0x37b   : > { %v2072_v4 = vadd.f32 %v2071_v35, %v1899_v42  ;;  %v2073_v52 = vpop.f32.mrb[49].mxu1 }
 0x37c   : > { %v2074_v45 = vpop.f32.mrb[50].mxu1 }
 0x37d   : > { %v4652_v54 = vadd.f32 %v4625_v61, %v2072_v4  ;;  %v2075_v34 = vadd.f32 %v2074_v45, %v1902_v47  ;;  %v2076_v59 = vpop.f32.mrb[51].mxu1  ;;  %v2328_v45 = vadd.f32 %v4673_v51, %v2305_v46 }
 0x37e   : > { %v2326_v59 = vadd.f32 %v4673_v51, %v4644_v8 }
 0x37f   : > { %v4655_v10 = vadd.f32 %v4627_v18, %v2075_v34  ;;  %v2344_v46 = vmul.f32 %v2328_v45, %v4047_v26 }
 0x382   : > { %v2079_v40 = vpop.f32.mrb[52].mxu1 }
 0x383   : > { %v2080_v1 = vadd.f32 %v2079_v40, %v1907_v43  ;;  %v2081_v32 = vpop.f32.mrb[53].mxu1  ;;  %v2329_v40 = vadd.f32 %v4673_v51, %v2306_v15 }
 0x384   : > { %v2082_v63 = vpop.f32.mrb[54].mxu1  ;;  %v2342_v32 = vmul.f32 %v2326_v59, %v4036_v3 }
 0x385   : > { %v2309_v50 = vadd.f32 %v4629_v30, %v2080_v1  ;;  %v2083_v57 = vadd.f32 %v2082_v63, %v1910_v25  ;;  %v2084_v24 = vpop.f32.mrb[55].mxu1  ;;  %v2327_v1 = vadd.f32 %v4673_v51, %v4647_v22 }
 0x387   : > { %v4659_v42 = vadd.f32 %v4631_v55, %v2083_v57  ;;  %v2345_v57 = vmul.f32 %v2329_v40, %v4067_v7  ;;  %v2343_v22 = vmul.f32 %v2327_v1, %v4042_v19 }
 0x389   : > { %v2333_v19 = vadd.f32 %v4673_v51, %v4659_v42 }
 0x38a   : > { %v2087_v6 = vpop.f32.mrb[56].mxu1 }
 0x38b   : > { %v2088_v61 = vadd.f32 %v2087_v6, %v1915_v56  ;;  %v2089_v38 = vpop.f32.mrb[57].mxu1 }
 0x38c   : > { %v2090_v47 = vpop.f32.mrb[58].mxu1 }
 0x38d   : > { %v4662_v16 = vadd.f32 %v4633_v11, %v2088_v61  ;;  %v2091_v18 = vadd.f32 %v2090_v47, %v1918_v12  ;;  %v2092_v17 = vpop.f32.mrb[59].mxu1  ;;  %v2324_v12 = vadd.f32 %v4673_v51, %v2301_v36  ;;  %v2332_v47 = vadd.f32 %v4673_v51, %v2309_v50 }
 0x38e   : > { %v2330_v17 = vadd.f32 %v4673_v51, %v4652_v54  ;;  %v2331_v50 = vadd.f32 %v4673_v51, %v4655_v10 }
 0x38f   : > { %v4665_v43 = vadd.f32 %v4635_v31, %v2091_v18  ;;  %v2322_v31 = vadd.f32 %v4673_v51, %v2299_v60  ;;  %v2340_v23 = vmul.f32 %v2324_v12, %v4021_v14  ;;  %v2341_v60 = vmul.f32 %v2325_v27, %v4034_v5 }
 0x390   : > { %v2349_v12 = vmul.f32 %v2333_v19, %v4155_v44  ;;  %v2347_v10 = vmul.f32 %v2331_v50, %v4109_v41 }
 0x392   : > { %v2095_v30 = vpop.f32.mrb[60].mxu1 }
 0x393   : > { %v4671_v25 = vadd.f32 %v2095_v30, %v1923_v58  ;;  %v2097_v55 = vpop.f32.mrb[61].mxu1 }
 0x394   : > { %v2098_v56 = vpop.f32.mrb[62].mxu1  ;;  %v2348_v55 = vmul.f32 %v2332_v47, %v4117_v0 }
 0x395   : > { %v4676_v49 = vadd.f32 %v2098_v56, %v4637_v33  ;;  %v2100_v11 = vpop.f32.mrb[63].mxu1  ;;  %v2338_v33 = vmul.f32 %v2322_v31, %v3994_v29  ;;  %v2346_v56 = vmul.f32 %v2330_v17, %v4073_v13  ;;  %v2334_v13 = vadd.f32 %v4673_v51, %v4662_v16 }
 0x397   : > { %v2350_v16 = vmul.f32 %v2334_v13, %v4163_v9 }
 0x39a   : > { %v3035_v58 = vpop.f32.mrb[64].mxu1 }
 0x39b   : > { %v2518_v21 = vadd.f32 %v3035_v58, %v2340_v23  ;;  %v2453_v36 = vpop.f32.mrb[65].mxu1 }
 0x39c   : > { %v2516_v35 = vadd.f32 %v2453_v36, %v2338_v33  ;;  %v3036_v48 = vpop.f32.mrb[66].mxu1 }
 0x39d   : > { %v2541_v14 = vadd.f32 %v4686_v53, %v2518_v21  ;;  %v2519_v4 = vadd.f32 %v3036_v48, %v2341_v60  ;;  %v2456_v52 = vpop.f32.mrb[67].mxu1  ;;  %v2335_v21 = vadd.f32 %v4673_v51, %v4665_v43 }
 0x39e   : > { %v2539_v34 = vadd.f32 %v4686_v53, %v2516_v35  ;;  %v2517_v29 = vadd.f32 %v2456_v52, %v2339_v20 }
 0x39f   : > { %2561 = vst.msk [vmem:[%s3452_s18 + $0x20] sm:$0xff] %vm455_vm0, %v2541_v14  ;;  %v2542_v5 = vadd.f32 %v4686_v53, %v2519_v4  ;;  %v2351_v20 = vmul.f32 %v2335_v21, %v4303_v37 }
 0x3a0   : > { %2559 = vst.msk [vmem:[%s3452_s18 + $0x10] sm:$0xff] %vm455_vm0, %v2539_v34  ;;  %v2540_v39 = vadd.f32 %v4686_v53, %v2517_v29 }
 0x3a1   : > { %2562 = vst.msk [vmem:[%s3452_s18 + $0x28] sm:$0xff] %vm455_vm0, %v2542_v5 }
 0x3a2   : > { %2560 = vst.msk [vmem:[%s3452_s18 + $0x18] sm:$0xff] %vm455_vm0, %v2540_v39  ;;  %v3039_v8 = vpop.f32.mrb[68].mxu1 }
 0x3a3   : > { %v2522_v63 = vadd.f32 %v3039_v8, %v2344_v46  ;;  %v2469_v15 = vpop.f32.mrb[69].mxu1 }
 0x3a4   : > { %v2520_v24 = vadd.f32 %v2469_v15, %v2342_v32  ;;  %v3040_v6 = vpop.f32.mrb[70].mxu1 }
 0x3a5   : > { %v2545_v61 = vadd.f32 %v4686_v53, %v2522_v63  ;;  %v2523_v26 = vadd.f32 %v3040_v6, %v2345_v57  ;;  %v2472_v38 = vpop.f32.mrb[71].mxu1 }
 0x3a6   : > { %v2543_v18 = vadd.f32 %v4686_v53, %v2520_v24  ;;  %v2521_v3 = vadd.f32 %v2472_v38, %v2343_v22 }
 0x3a7   : > { %2565 = vst.msk [vmem:[%s3452_s18 + $0x40] sm:$0xff] %vm455_vm0, %v2545_v61  ;;  %v2546_v7 = vadd.f32 %v4686_v53, %v2523_v26 }
 0x3a8   : > { %2563 = vst.msk [vmem:[%s3452_s18 + $0x30] sm:$0xff] %vm455_vm0, %v2543_v18  ;;  %v2544_v30 = vadd.f32 %v4686_v53, %v2521_v3 }
 0x3a9   : > { %2566 = vst.msk [vmem:[%s3452_s18 + $0x48] sm:$0xff] %vm455_vm0, %v2546_v7 }
 0x3aa   : > { %2564 = vst.msk [vmem:[%s3452_s18 + $0x38] sm:$0xff] %vm455_vm0, %v2544_v30  ;;  %v3043_v54 = vpop.f32.mrb[72].mxu1 }
 0x3ab   : > { %v2526_v11 = vadd.f32 %v3043_v54, %v2348_v55  ;;  %v2485_v42 = vpop.f32.mrb[73].mxu1 }
 0x3ac   : > { %v2524_v31 = vadd.f32 %v2485_v42, %v2346_v56  ;;  %v3044_v27 = vpop.f32.mrb[74].mxu1 }
 0x3ad   : > { %v2549_v2 = vadd.f32 %v4686_v53, %v2526_v11  ;;  %v2527_v0 = vadd.f32 %v3044_v27, %v2349_v12  ;;  %v2488_v23 = vpop.f32.mrb[75].mxu1 }
 0x3ae   : > { %v2547_v58 = vadd.f32 %v4686_v53, %v2524_v31  ;;  %v2525_v33 = vadd.f32 %v2488_v23, %v2347_v10 }
 0x3af   : > { %2569 = vst.msk [vmem:[%s3452_s18 + $0x60] sm:$0xff] %vm455_vm0, %v2549_v2  ;;  %v2550_v44 = vadd.f32 %v4686_v53, %v2527_v0 }
 0x3b0   : > { %2567 = vst.msk [vmem:[%s3452_s18 + $0x50] sm:$0xff] %vm455_vm0, %v2547_v58  ;;  %v2548_v41 = vadd.f32 %v4686_v53, %v2525_v33 }
 0x3b1   : > { %2570 = vst.msk [vmem:[%s3452_s18 + $0x68] sm:$0xff] %vm455_vm0, %v2550_v44 }
 0x3b2   : > { %2568 = vst.msk [vmem:[%s3452_s18 + $0x58] sm:$0xff] %vm455_vm0, %v2548_v41  ;;  %v3047_v36 = vpop.f32.mrb[76].mxu1 }
 0x3b3   : > { %v2501_v60 = vpop.f32.mrb[77].mxu1 }
 0x3b4   : > { %v2528_v35 = vadd.f32 %v2501_v60, %v2350_v16  ;;  %v3048_v48 = vpop.f32.mrb[78].mxu1 }
 0x3b5   : > { %v2504_v14 = vpop.f32.mrb[79].mxu1 }
 0x3b6   : > { %v2551_v4 = vadd.f32 %v4686_v53, %v2528_v35  ;;  %v2529_v52 = vadd.f32 %v2504_v14, %v2351_v20 }
 0x3b8   : > { %2571 = vst.msk [vmem:[%s3452_s18 + $0x70] sm:$0xff] %vm455_vm0, %v2551_v4  ;;  %v2552_v43 = vadd.f32 %v4686_v53, %v2529_v52 }
 0x3ba   : > { %2572 = vst.msk [vmem:[%s3452_s18 + $0x78] sm:$0xff] %vm455_vm0, %v2552_v43 }
 0x3c2   : > { %v2292_v45 = vpop.f32.mrb[32].mxu0 }
 0x3c3   : > { %v2313_v9 = vadd.f32 %v2292_v45, %v4671_v25  ;;  %v2294_v34 = vpop.f32.mrb[33].mxu0 }
 0x3c4   : > { %v2295_v29 = vpop.f32.mrb[34].mxu0 }
 0x3c5   : > { %v2336_v59 = vadd.f32 %v4673_v51, %v2313_v9  ;;  %v2314_v37 = vadd.f32 %v2295_v29, %v4676_v49  ;;  %v2297_v5 = vpop.f32.mrb[35].mxu0 }
 0x3c7   : > { %v2352_v40 = vmul.f32 %v2336_v59, %v4326_v62  ;;  %v2337_v39 = vadd.f32 %v4673_v51, %v2314_v37 }
 0x3c9   : > { %v2530_v1 = vadd.f32 %v3047_v36, %v2352_v40  ;;  %v2353_v46 = vmul.f32 %v2337_v39, %v4333_v28 }
 0x3cb   : > { %v2553_v8 = vadd.f32 %v4686_v53, %v2530_v1  ;;  %v2531_v32 = vadd.f32 %v3048_v48, %v2353_v46 }
 0x3cd   : > { %2573 = vst.msk [vmem:[%s3452_s18 + $0x80] sm:$0xff] %vm455_vm0, %v2553_v8  ;;  %v2554_v25 = vadd.f32 %v4686_v53, %v2531_v32 }
 0x3cf   : > { %2574 = vst.msk [vmem:[%s3452_s18 + $0x88] sm:$0xff] %vm455_vm0, %v2554_v25 }
 0x3d0 PF: > { %s20_s13 = sadd.s32 1, %s3324_s13  }
 0x3d1   : > { %p17_p4 = scmp.ge.s32.totalorder %s20_s13, 4  }
 0x3d3   :  { %19 = sbr.rel (!%p17_p4) target bundleno = 1 (0x1), region = 98 }

</bundles_post_ra>
